<compile_context>
chip_gen: v7x
topology: tpu7x:2x2x1
jax: 0.10.0
libtpu: 0.0.40
codegen_flags: <defaults>
</compile_context>

<pallas_src>
import jax
import jax.numpy as jnp
from jax.experimental import pallas as pl
from jax.experimental.pallas import tpu as pltpu


# ----------------------------- kernel ---------------------------------------

def _zero_border(ref, H, W):
    """Zero the 1-pixel border ring of a (H+2, W+2, C) padded scratch ref."""
    C = ref.shape[-1]
    zrow = jnp.zeros((1, W + 2, C), ref.dtype)
    zcol = jnp.zeros((H + 2, 1, C), ref.dtype)
    ref[0:1, :, :] = zrow
    ref[H + 1:H + 2, :, :] = zrow
    ref[:, 0:1, :] = zcol
    ref[:, W + 1:W + 2, :] = zcol


def _im2col(xpad, H, W):
    """(H+2, W+2, C) padded value -> (H*W, 9*C) patch matrix (kh-major, kw, c)."""
    C = xpad.shape[-1]
    patches = jnp.concatenate(
        [xpad[kh:kh + H, kw:kw + W, :] for kh in range(3) for kw in range(3)],
        axis=-1)
    return patches.reshape(H * W, 9 * C)


def retinex_kernel(p1_ref, w1_ref, b1_ref, w2_ref, b2_ref, w3_ref, b3_ref,
                   out_ref, h1pad_ref, h2pad_ref):
    H = out_ref.shape[1]
    W = out_ref.shape[2]
    C3 = out_ref.shape[3]
    Cout = C3 // 2
    C1 = w1_ref.shape[1]
    C2 = w2_ref.shape[1]

    # Keep padded-scratch borders zero; the interior is overwritten every step.
    _zero_border(h1pad_ref, H, W)
    _zero_border(h2pad_ref, H, W)

    # conv1 (Cin -> C1) + ReLU: patches pre-built in the wrapper, single matmul.
    p1 = p1_ref[0].reshape(H * W, w1_ref.shape[0])                # bf16
    h1 = jnp.dot(p1, w1_ref[...], preferred_element_type=jnp.float32) + b1_ref[...]
    h1 = jnp.maximum(h1, 0.0)
    h1pad_ref[1:1 + H, 1:1 + W, :] = h1.reshape(H, W, C1).astype(h1pad_ref.dtype)

    # conv2 (C1 -> C2) + ReLU: in-kernel im2col, K = 9*C1, one matmul.
    p2 = _im2col(h1pad_ref[...], H, W).astype(jnp.bfloat16)
    h2 = jnp.dot(p2, w2_ref[...], preferred_element_type=jnp.float32) + b2_ref[...]
    h2 = jnp.maximum(h2, 0.0)
    h2pad_ref[1:1 + H, 1:1 + W, :] = h2.reshape(H, W, C2).astype(h2pad_ref.dtype)

    # conv3 (C2 -> 2*Cout): K = 9*C2, then fused ReLU/sigmoid via lane mask so the
    # store is one lane-dense 2*Cout(=128)-wide slab.
    p3 = _im2col(h2pad_ref[...], H, W).astype(jnp.bfloat16)
    feats = jnp.dot(p3, w3_ref[...], preferred_element_type=jnp.float32) + b3_ref[...]
    lane = jax.lax.broadcasted_iota(jnp.int32, feats.shape, 1)
    fused = jnp.where(lane < Cout, jnp.maximum(feats, 0.0), jax.nn.sigmoid(feats))
    out_ref[0] = fused.reshape(H, W, C3).astype(out_ref.dtype)


# ----------------------------- wrapper ---------------------------------------

def retinex_decomposition(x_nchw, params):
    """PyTorch-equivalent forward. x_nchw: (N, Cin, H, W). Returns NCHW pair."""
    w1, b1, w2, b2, w3, b3 = params
    x = jnp.transpose(x_nchw, (0, 2, 3, 1))                       # NCHW -> NHWC
    N, H, W, Cin = x.shape
    C1, C2, C3 = w1.shape[-1], w2.shape[-1], w3.shape[-1]
    Cout = C3 // 2

    # conv1 im2col in the wrapper (tap-major order matching the weight reshape).
    xpad = jnp.pad(x, ((0, 0), (1, 1), (1, 1), (0, 0)))
    p1 = jnp.concatenate(
        [xpad[:, kh:kh + H, kw:kw + W, :] for kh in range(3) for kw in range(3)],
        axis=-1).astype(jnp.bfloat16)                             # (N, H, W, 9*Cin)

    # HWIO weights -> (9*Cin, Cout) matmul form; bf16 operands, f32 accumulation.
    w1m = w1.reshape(9 * Cin, C1).astype(jnp.bfloat16)
    w2m = w2.reshape(9 * C1, C2).astype(jnp.bfloat16)
    w3m = w3.reshape(9 * C2, C3).astype(jnp.bfloat16)

    out = pl.pallas_call(
        retinex_kernel,
        out_shape=jax.ShapeDtypeStruct((N, H, W, C3), x.dtype),
        grid_spec=pltpu.PrefetchScalarGridSpec(
            num_scalar_prefetch=0,
            grid=(N,),
            in_specs=[
                pl.BlockSpec((1, H, W, 9 * Cin), lambda n: (n, 0, 0, 0)),
                pl.BlockSpec((9 * Cin, C1), lambda n: (0, 0)),
                pl.BlockSpec((1, C1), lambda n: (0, 0)),
                pl.BlockSpec((9 * C1, C2), lambda n: (0, 0)),
                pl.BlockSpec((1, C2), lambda n: (0, 0)),
                pl.BlockSpec((9 * C2, C3), lambda n: (0, 0)),
                pl.BlockSpec((1, C3), lambda n: (0, 0)),
            ],
            out_specs=pl.BlockSpec((1, H, W, C3), lambda n: (n, 0, 0, 0)),
            scratch_shapes=[
                pltpu.VMEM((H + 2, W + 2, C1), jnp.float32),      # padded conv1 act
                pltpu.VMEM((H + 2, W + 2, C2), jnp.float32),      # padded conv2 act
            ],
        ),
        compiler_params=pltpu.CompilerParams(
            dimension_semantics=("parallel",),
            vmem_limit_bytes=32 * 1024 * 1024,
        ),
    )(p1, w1m, b1.reshape(1, -1), w2m, b2.reshape(1, -1), w3m, b3.reshape(1, -1))

    refl = jnp.transpose(out[..., :Cout], (0, 3, 1, 2))
    illum = jnp.transpose(out[..., Cout:], (0, 3, 1, 2))
    return refl, illum


# --------------------------- plain-JAX reference ------------------------------

def _ref_conv3x3(h_nhwc, w, b):
    """3x3 'same' conv with bf16 operands + f32 accumulation (matches kernel)."""
    H, W = h_nhwc.shape[1], h_nhwc.shape[2]
    hp = jnp.pad(h_nhwc.astype(jnp.bfloat16), ((0, 0), (1, 1), (1, 1), (0, 0)))
    acc = jnp.zeros(h_nhwc.shape[:3] + (w.shape[-1],), jnp.float32)
    for kh in range(3):
        for kw in range(3):
            acc = acc + jnp.einsum(
                "nhwc,co->nhwo", hp[:, kh:kh + H, kw:kw + W, :],
                w[kh, kw].astype(jnp.bfloat16),
                preferred_element_type=jnp.float32)
    return acc + b


def retinex_reference(x_nchw, params):
    w1, b1, w2, b2, w3, b3 = params
    x = jnp.transpose(x_nchw, (0, 2, 3, 1))
    h1 = jnp.maximum(_ref_conv3x3(x, w1, b1), 0.0)
    h2 = jnp.maximum(_ref_conv3x3(h1, w2, b2), 0.0)
    f = _ref_conv3x3(h2, w3, b3)
    Cout = f.shape[-1] // 2
    refl = jnp.maximum(f[..., :Cout], 0.0)
    illum = jax.nn.sigmoid(f[..., Cout:])
    return (jnp.transpose(refl, (0, 3, 1, 2)),
            jnp.transpose(illum, (0, 3, 1, 2)))


# ------------------------------- main -----------------------------------------

if __name__ == "__main__":
    key = jax.random.PRNGKey(0)
    kx, k1, k2, k3, kb1, kb2, kb3 = jax.random.split(key, 7)

    in_channels, out_channels = 3, 64
    N, H, W = 2, 16, 16

    # Deterministic synthetic parameters (HWIO weights, matching nn.Conv2d shapes).
    w1 = 0.1 * jax.random.normal(k1, (3, 3, in_channels, 32), jnp.float32)
    b1 = 0.01 * jax.random.normal(kb1, (32,), jnp.float32)
    w2 = 0.1 * jax.random.normal(k2, (3, 3, 32, 64), jnp.float32)
    b2 = 0.01 * jax.random.normal(kb2, (64,), jnp.float32)
    w3 = 0.1 * jax.random.normal(k3, (3, 3, 64, out_channels * 2), jnp.float32)
    b3 = 0.01 * jax.random.normal(kb3, (out_channels * 2,), jnp.float32)
    params = (w1, b1, w2, b2, w3, b3)

    x = jax.random.normal(kx, (N, in_channels, H, W), jnp.float32)  # NCHW like PyTorch

    refl, illum = jax.jit(retinex_decomposition)(x, params)
    refl = jax.block_until_ready(refl)
    illum = jax.block_until_ready(illum)

    refl_ref, illum_ref = retinex_reference(x, params)

    assert refl.shape == (N, out_channels, H, W) and illum.shape == (N, out_channels, H, W)
    assert jnp.allclose(refl, refl_ref, rtol=5e-3, atol=5e-3)
    assert jnp.allclose(illum, illum_ref, rtol=5e-3, atol=5e-3)

    print("KERNEL_OK")
</pallas_src>

<mosaic_0001>
module attributes {stable_mosaic.version = 11 : i64} {
  func.func @retinex_kernel(%arg0: i32, %arg1: memref<1x16x16x27xbf16, #tpu.memory_space<vmem>>, %arg2: memref<27x32xbf16, #tpu.memory_space<vmem>>, %arg3: memref<1x32xf32, #tpu.memory_space<vmem>>, %arg4: memref<288x64xbf16, #tpu.memory_space<vmem>>, %arg5: memref<1x64xf32, #tpu.memory_space<vmem>>, %arg6: memref<576x128xbf16, #tpu.memory_space<vmem>>, %arg7: memref<1x128xf32, #tpu.memory_space<vmem>>, %arg8: memref<1x16x16x128xf32, #tpu.memory_space<vmem>>, %arg9: memref<18x18x32xf32, #tpu.memory_space<vmem>>, %arg10: memref<18x18x64xf32, #tpu.memory_space<vmem>>) attributes {dimension_semantics = [#tpu.dimension_semantics<parallel>], iteration_bounds = array<i64: 2>, scalar_prefetch = 0 : i64, scratch_operands = 2 : i64, tpu.core_type = #tpu.core_type<tc>, window_params = [{transform_indices = @transform_0, window_bounds = array<i64: 1, 16, 16, 27>}, {pipeline_mode = #tpu.pipeline_mode<synchronous>, transform_indices = @transform_1, window_bounds = array<i64: 27, 32>}, {pipeline_mode = #tpu.pipeline_mode<synchronous>, transform_indices = @transform_2, window_bounds = array<i64: 1, 32>}, {pipeline_mode = #tpu.pipeline_mode<synchronous>, transform_indices = @transform_3, window_bounds = array<i64: 288, 64>}, {pipeline_mode = #tpu.pipeline_mode<synchronous>, transform_indices = @transform_4, window_bounds = array<i64: 1, 64>}, {pipeline_mode = #tpu.pipeline_mode<synchronous>, transform_indices = @transform_5, window_bounds = array<i64: 576, 128>}, {pipeline_mode = #tpu.pipeline_mode<synchronous>, transform_indices = @transform_6, window_bounds = array<i64: 1, 128>}, {transform_indices = @transform_7, window_bounds = array<i64: 1, 16, 16, 128>}]} {
    %cst = arith.constant 0.000000e+00 : f32
    %0 = vector.broadcast %cst : f32 to vector<1x18x32xf32>
    %cst_0 = arith.constant 0.000000e+00 : f32
    %1 = vector.broadcast %cst_0 : f32 to vector<18x1x32xf32>
    %c0 = arith.constant 0 : index
    %c0_1 = arith.constant 0 : index
    %c0_2 = arith.constant 0 : index
    %2 = vector.load %arg9[%c0, %c0_1, %c0_2] : memref<18x18x32xf32, #tpu.memory_space<vmem>>, vector<1x18x32xf32>
    tpu.vector_store %arg9[%c0, %c0_1, %c0_2], %0 {strides = array<i32>} : memref<18x18x32xf32, #tpu.memory_space<vmem>>, vector<1x18x32xf32>,
    %c17 = arith.constant 17 : index
    %c0_3 = arith.constant 0 : index
    %c0_4 = arith.constant 0 : index
    %3 = vector.load %arg9[%c17, %c0_3, %c0_4] : memref<18x18x32xf32, #tpu.memory_space<vmem>>, vector<1x18x32xf32>
    tpu.vector_store %arg9[%c17, %c0_3, %c0_4], %0 {strides = array<i32>} : memref<18x18x32xf32, #tpu.memory_space<vmem>>, vector<1x18x32xf32>,
    %c0_5 = arith.constant 0 : index
    %c0_6 = arith.constant 0 : index
    %c0_7 = arith.constant 0 : index
    %4 = vector.load %arg9[%c0_5, %c0_6, %c0_7] : memref<18x18x32xf32, #tpu.memory_space<vmem>>, vector<18x1x32xf32>
    tpu.vector_store %arg9[%c0_5, %c0_6, %c0_7], %1 {strides = array<i32>} : memref<18x18x32xf32, #tpu.memory_space<vmem>>, vector<18x1x32xf32>,
    %c0_8 = arith.constant 0 : index
    %c17_9 = arith.constant 17 : index
    %c0_10 = arith.constant 0 : index
    %5 = vector.load %arg9[%c0_8, %c17_9, %c0_10] : memref<18x18x32xf32, #tpu.memory_space<vmem>>, vector<18x1x32xf32>
    tpu.vector_store %arg9[%c0_8, %c17_9, %c0_10], %1 {strides = array<i32>} : memref<18x18x32xf32, #tpu.memory_space<vmem>>, vector<18x1x32xf32>,
    %cst_11 = arith.constant 0.000000e+00 : f32
    %6 = vector.broadcast %cst_11 : f32 to vector<1x18x64xf32>
    %cst_12 = arith.constant 0.000000e+00 : f32
    %7 = vector.broadcast %cst_12 : f32 to vector<18x1x64xf32>
    %c0_13 = arith.constant 0 : index
    %c0_14 = arith.constant 0 : index
    %c0_15 = arith.constant 0 : index
    %8 = vector.load %arg10[%c0_13, %c0_14, %c0_15] : memref<18x18x64xf32, #tpu.memory_space<vmem>>, vector<1x18x64xf32>
    tpu.vector_store %arg10[%c0_13, %c0_14, %c0_15], %6 {strides = array<i32>} : memref<18x18x64xf32, #tpu.memory_space<vmem>>, vector<1x18x64xf32>,
    %c17_16 = arith.constant 17 : index
    %c0_17 = arith.constant 0 : index
    %c0_18 = arith.constant 0 : index
    %9 = vector.load %arg10[%c17_16, %c0_17, %c0_18] : memref<18x18x64xf32, #tpu.memory_space<vmem>>, vector<1x18x64xf32>
    tpu.vector_store %arg10[%c17_16, %c0_17, %c0_18], %6 {strides = array<i32>} : memref<18x18x64xf32, #tpu.memory_space<vmem>>, vector<1x18x64xf32>,
    %c0_19 = arith.constant 0 : index
    %c0_20 = arith.constant 0 : index
    %c0_21 = arith.constant 0 : index
    %10 = vector.load %arg10[%c0_19, %c0_20, %c0_21] : memref<18x18x64xf32, #tpu.memory_space<vmem>>, vector<18x1x64xf32>
    tpu.vector_store %arg10[%c0_19, %c0_20, %c0_21], %7 {strides = array<i32>} : memref<18x18x64xf32, #tpu.memory_space<vmem>>, vector<18x1x64xf32>,
    %c0_22 = arith.constant 0 : index
    %c17_23 = arith.constant 17 : index
    %c0_24 = arith.constant 0 : index
    %11 = vector.load %arg10[%c0_22, %c17_23, %c0_24] : memref<18x18x64xf32, #tpu.memory_space<vmem>>, vector<18x1x64xf32>
    tpu.vector_store %arg10[%c0_22, %c17_23, %c0_24], %7 {strides = array<i32>} : memref<18x18x64xf32, #tpu.memory_space<vmem>>, vector<18x1x64xf32>,
    %c0_25 = arith.constant 0 : index
    %c0_26 = arith.constant 0 : index
    %c0_27 = arith.constant 0 : index
    %c0_28 = arith.constant 0 : index
    %12 = vector.load %arg1[%c0_25, %c0_26, %c0_27, %c0_28] : memref<1x16x16x27xbf16, #tpu.memory_space<vmem>>, vector<1x16x16x27xbf16>
    %13 = vector.shape_cast %12 : vector<1x16x16x27xbf16> to vector<16x16x27xbf16>
    %14 = vector.shape_cast %13 : vector<16x16x27xbf16> to vector<256x27xbf16>
    %c0_29 = arith.constant 0 : index
    %c0_30 = arith.constant 0 : index
    %15 = vector.load %arg2[%c0_29, %c0_30] : memref<27x32xbf16, #tpu.memory_space<vmem>>, vector<27x32xbf16>
    %cst_31 = arith.constant dense<0.000000e+00> : vector<256x32xf32>
    %16 = tpu.matmul %14, %15, %cst_31 {dimension_numbers = #tpu.dot_dimension_numbers<[1], [0], [0], [1], [0, 0, 1, 1], [], []>} : vector<256x27xbf16>, vector<27x32xbf16>, vector<256x32xf32> -> vector<256x32xf32>
    %c0_32 = arith.constant 0 : index
    %c0_33 = arith.constant 0 : index
    %17 = vector.load %arg3[%c0_32, %c0_33] : memref<1x32xf32, #tpu.memory_space<vmem>>, vector<1x32xf32>
    %18 = vector.broadcast %17 : vector<1x32xf32> to vector<256x32xf32>
    %19 = arith.addf %16, %18 : vector<256x32xf32>
    %cst_34 = arith.constant 0.000000e+00 : f32
    %20 = vector.broadcast %cst_34 : f32 to vector<256x32xf32>
    %21 = arith.maximumf %19, %20 : vector<256x32xf32>
    %22 = vector.shape_cast %21 : vector<256x32xf32> to vector<16x16x32xf32>
    %c1 = arith.constant 1 : index
    %c1_35 = arith.constant 1 : index
    %c0_36 = arith.constant 0 : index
    %23 = vector.load %arg9[%c1, %c1_35, %c0_36] : memref<18x18x32xf32, #tpu.memory_space<vmem>>, vector<16x16x32xf32>
    tpu.vector_store %arg9[%c1, %c1_35, %c0_36], %22 {strides = array<i32>} : memref<18x18x32xf32, #tpu.memory_space<vmem>>, vector<16x16x32xf32>,
    %c0_37 = arith.constant 0 : index
    %c0_38 = arith.constant 0 : index
    %c0_39 = arith.constant 0 : index
    %24 = vector.load %arg9[%c0_37, %c0_38, %c0_39] : memref<18x18x32xf32, #tpu.memory_space<vmem>>, vector<18x18x32xf32>
    %25 = vector.extract_strided_slice %24 {offsets = [0, 0, 0], sizes = [16, 16, 32], strides = [1, 1, 1]} : vector<18x18x32xf32> to vector<16x16x32xf32>
    %26 = vector.extract_strided_slice %24 {offsets = [0, 1, 0], sizes = [16, 16, 32], strides = [1, 1, 1]} : vector<18x18x32xf32> to vector<16x16x32xf32>
    %27 = vector.extract_strided_slice %24 {offsets = [0, 2, 0], sizes = [16, 16, 32], strides = [1, 1, 1]} : vector<18x18x32xf32> to vector<16x16x32xf32>
    %28 = vector.extract_strided_slice %24 {offsets = [1, 0, 0], sizes = [16, 16, 32], strides = [1, 1, 1]} : vector<18x18x32xf32> to vector<16x16x32xf32>
    %29 = vector.extract_strided_slice %24 {offsets = [1, 1, 0], sizes = [16, 16, 32], strides = [1, 1, 1]} : vector<18x18x32xf32> to vector<16x16x32xf32>
    %30 = vector.extract_strided_slice %24 {offsets = [1, 2, 0], sizes = [16, 16, 32], strides = [1, 1, 1]} : vector<18x18x32xf32> to vector<16x16x32xf32>
    %31 = vector.extract_strided_slice %24 {offsets = [2, 0, 0], sizes = [16, 16, 32], strides = [1, 1, 1]} : vector<18x18x32xf32> to vector<16x16x32xf32>
    %32 = vector.extract_strided_slice %24 {offsets = [2, 1, 0], sizes = [16, 16, 32], strides = [1, 1, 1]} : vector<18x18x32xf32> to vector<16x16x32xf32>
    %33 = vector.extract_strided_slice %24 {offsets = [2, 2, 0], sizes = [16, 16, 32], strides = [1, 1, 1]} : vector<18x18x32xf32> to vector<16x16x32xf32>
    %34 = tpu.concatenate %25, %26, %27, %28, %29, %30, %31, %32, %33 in 2 : vector<16x16x32xf32>, vector<16x16x32xf32>, vector<16x16x32xf32>, vector<16x16x32xf32>, vector<16x16x32xf32>, vector<16x16x32xf32>, vector<16x16x32xf32>, vector<16x16x32xf32>, vector<16x16x32xf32> -> vector<16x16x288xf32>
    %35 = vector.shape_cast %34 : vector<16x16x288xf32> to vector<256x288xf32>
    %36 = arith.truncf %35 : vector<256x288xf32> to vector<256x288xbf16>
    %c0_40 = arith.constant 0 : index
    %c0_41 = arith.constant 0 : index
    %37 = vector.load %arg4[%c0_40, %c0_41] : memref<288x64xbf16, #tpu.memory_space<vmem>>, vector<288x64xbf16>
    %cst_42 = arith.constant dense<0.000000e+00> : vector<256x64xf32>
    %38 = tpu.matmul %36, %37, %cst_42 {dimension_numbers = #tpu.dot_dimension_numbers<[1], [0], [0], [1], [0, 0, 1, 1], [], []>} : vector<256x288xbf16>, vector<288x64xbf16>, vector<256x64xf32> -> vector<256x64xf32>
    %c0_43 = arith.constant 0 : index
    %c0_44 = arith.constant 0 : index
    %39 = vector.load %arg5[%c0_43, %c0_44] : memref<1x64xf32, #tpu.memory_space<vmem>>, vector<1x64xf32>
    %40 = vector.broadcast %39 : vector<1x64xf32> to vector<256x64xf32>
    %41 = arith.addf %38, %40 : vector<256x64xf32>
    %cst_45 = arith.constant 0.000000e+00 : f32
    %42 = vector.broadcast %cst_45 : f32 to vector<256x64xf32>
    %43 = arith.maximumf %41, %42 : vector<256x64xf32>
    %44 = vector.shape_cast %43 : vector<256x64xf32> to vector<16x16x64xf32>
    %c1_46 = arith.constant 1 : index
    %c1_47 = arith.constant 1 : index
    %c0_48 = arith.constant 0 : index
    %45 = vector.load %arg10[%c1_46, %c1_47, %c0_48] : memref<18x18x64xf32, #tpu.memory_space<vmem>>, vector<16x16x64xf32>
    tpu.vector_store %arg10[%c1_46, %c1_47, %c0_48], %44 {strides = array<i32>} : memref<18x18x64xf32, #tpu.memory_space<vmem>>, vector<16x16x64xf32>,
    %c0_49 = arith.constant 0 : index
    %c0_50 = arith.constant 0 : index
    %c0_51 = arith.constant 0 : index
    %46 = vector.load %arg10[%c0_49, %c0_50, %c0_51] : memref<18x18x64xf32, #tpu.memory_space<vmem>>, vector<18x18x64xf32>
    %47 = vector.extract_strided_slice %46 {offsets = [0, 0, 0], sizes = [16, 16, 64], strides = [1, 1, 1]} : vector<18x18x64xf32> to vector<16x16x64xf32>
    %48 = vector.extract_strided_slice %46 {offsets = [0, 1, 0], sizes = [16, 16, 64], strides = [1, 1, 1]} : vector<18x18x64xf32> to vector<16x16x64xf32>
    %49 = vector.extract_strided_slice %46 {offsets = [0, 2, 0], sizes = [16, 16, 64], strides = [1, 1, 1]} : vector<18x18x64xf32> to vector<16x16x64xf32>
    %50 = vector.extract_strided_slice %46 {offsets = [1, 0, 0], sizes = [16, 16, 64], strides = [1, 1, 1]} : vector<18x18x64xf32> to vector<16x16x64xf32>
    %51 = vector.extract_strided_slice %46 {offsets = [1, 1, 0], sizes = [16, 16, 64], strides = [1, 1, 1]} : vector<18x18x64xf32> to vector<16x16x64xf32>
    %52 = vector.extract_strided_slice %46 {offsets = [1, 2, 0], sizes = [16, 16, 64], strides = [1, 1, 1]} : vector<18x18x64xf32> to vector<16x16x64xf32>
    %53 = vector.extract_strided_slice %46 {offsets = [2, 0, 0], sizes = [16, 16, 64], strides = [1, 1, 1]} : vector<18x18x64xf32> to vector<16x16x64xf32>
    %54 = vector.extract_strided_slice %46 {offsets = [2, 1, 0], sizes = [16, 16, 64], strides = [1, 1, 1]} : vector<18x18x64xf32> to vector<16x16x64xf32>
    %55 = vector.extract_strided_slice %46 {offsets = [2, 2, 0], sizes = [16, 16, 64], strides = [1, 1, 1]} : vector<18x18x64xf32> to vector<16x16x64xf32>
    %56 = tpu.concatenate %47, %48, %49, %50, %51, %52, %53, %54, %55 in 2 : vector<16x16x64xf32>, vector<16x16x64xf32>, vector<16x16x64xf32>, vector<16x16x64xf32>, vector<16x16x64xf32>, vector<16x16x64xf32>, vector<16x16x64xf32>, vector<16x16x64xf32>, vector<16x16x64xf32> -> vector<16x16x576xf32>
    %57 = vector.shape_cast %56 : vector<16x16x576xf32> to vector<256x576xf32>
    %58 = arith.truncf %57 : vector<256x576xf32> to vector<256x576xbf16>
    %c0_52 = arith.constant 0 : index
    %c0_53 = arith.constant 0 : index
    %59 = vector.load %arg6[%c0_52, %c0_53] : memref<576x128xbf16, #tpu.memory_space<vmem>>, vector<576x128xbf16>
    %cst_54 = arith.constant dense<0.000000e+00> : vector<256x128xf32>
    %60 = tpu.matmul %58, %59, %cst_54 {dimension_numbers = #tpu.dot_dimension_numbers<[1], [0], [0], [1], [0, 0, 1, 1], [], []>} : vector<256x576xbf16>, vector<576x128xbf16>, vector<256x128xf32> -> vector<256x128xf32>
    %c0_55 = arith.constant 0 : index
    %c0_56 = arith.constant 0 : index
    %61 = vector.load %arg7[%c0_55, %c0_56] : memref<1x128xf32, #tpu.memory_space<vmem>>, vector<1x128xf32>
    %62 = vector.broadcast %61 : vector<1x128xf32> to vector<256x128xf32>
    %63 = arith.addf %60, %62 : vector<256x128xf32>
    %64 = tpu.iota {dimensions = array<i32: 1>} : vector<256x128xi32>
    %c64_i32 = arith.constant 64 : i32
    %65 = vector.broadcast %c64_i32 : i32 to vector<256x128xi32>
    %66 = arith.cmpi slt, %64, %65 : vector<256x128xi32>
    %cst_57 = arith.constant 0.000000e+00 : f32
    %67 = vector.broadcast %cst_57 : f32 to vector<256x128xf32>
    %68 = arith.maximumf %63, %67 : vector<256x128xf32>
    %69 = arith.negf %63 : vector<256x128xf32>
    %70 = math.exp %69 : vector<256x128xf32>
    %cst_58 = arith.constant 1.000000e+00 : f32
    %71 = vector.broadcast %cst_58 : f32 to vector<256x128xf32>
    %72 = arith.addf %71, %70 : vector<256x128xf32>
    %73 = arith.divf %71, %72 : vector<256x128xf32>
    %74 = arith.select %66, %68, %73 : vector<256x128xi1>, vector<256x128xf32>
    %75 = vector.shape_cast %74 : vector<256x128xf32> to vector<16x16x128xf32>
    %c0_59 = arith.constant 0 : index
    %c0_60 = arith.constant 0 : index
    %c0_61 = arith.constant 0 : index
    %c0_62 = arith.constant 0 : index
    %76 = vector.load %arg8[%c0_59, %c0_60, %c0_61, %c0_62] : memref<1x16x16x128xf32, #tpu.memory_space<vmem>>, vector<1x16x16x128xf32>
    %77 = vector.shape_cast %76 : vector<1x16x16x128xf32> to vector<16x16x128xf32>
    %78 = vector.shape_cast %75 : vector<16x16x128xf32> to vector<1x16x16x128xf32>
    tpu.vector_store %arg8[%c0_59, %c0_60, %c0_61, %c0_62], %78 {strides = array<i32>} : memref<1x16x16x128xf32, #tpu.memory_space<vmem>>, vector<1x16x16x128xf32>,
    return
  }
  func.func @transform_0(%arg0: i32) -> (i32, i32, i32, i32) {
    %c0_i32 = arith.constant 0 : i32
    %c0_i32_0 = arith.constant 0 : i32
    %c0_i32_1 = arith.constant 0 : i32
    %c0_i32_2 = arith.constant 0 : i32
    return %arg0, %c0_i32, %c0_i32_0, %c0_i32_1 : i32, i32, i32, i32
  }
  func.func @transform_1(%arg0: i32) -> (i32, i32) {
    %c0_i32 = arith.constant 0 : i32
    %c0_i32_0 = arith.constant 0 : i32
    %c0_i32_1 = arith.constant 0 : i32
    return %c0_i32, %c0_i32_0 : i32, i32
  }
  func.func @transform_2(%arg0: i32) -> (i32, i32) {
    %c0_i32 = arith.constant 0 : i32
    %c0_i32_0 = arith.constant 0 : i32
    %c0_i32_1 = arith.constant 0 : i32
    return %c0_i32, %c0_i32_0 : i32, i32
  }
  func.func @transform_3(%arg0: i32) -> (i32, i32) {
    %c0_i32 = arith.constant 0 : i32
    %c0_i32_0 = arith.constant 0 : i32
    %c0_i32_1 = arith.constant 0 : i32
    return %c0_i32, %c0_i32_0 : i32, i32
  }
  func.func @transform_4(%arg0: i32) -> (i32, i32) {
    %c0_i32 = arith.constant 0 : i32
    %c0_i32_0 = arith.constant 0 : i32
    %c0_i32_1 = arith.constant 0 : i32
    return %c0_i32, %c0_i32_0 : i32, i32
  }
  func.func @transform_5(%arg0: i32) -> (i32, i32) {
    %c0_i32 = arith.constant 0 : i32
    %c0_i32_0 = arith.constant 0 : i32
    %c0_i32_1 = arith.constant 0 : i32
    return %c0_i32, %c0_i32_0 : i32, i32
  }
  func.func @transform_6(%arg0: i32) -> (i32, i32) {
    %c0_i32 = arith.constant 0 : i32
    %c0_i32_0 = arith.constant 0 : i32
    %c0_i32_1 = arith.constant 0 : i32
    return %c0_i32, %c0_i32_0 : i32, i32
  }
  func.func @transform_7(%arg0: i32) -> (i32, i32, i32, i32) {
    %c0_i32 = arith.constant 0 : i32
    %c0_i32_0 = arith.constant 0 : i32
    %c0_i32_1 = arith.constant 0 : i32
    %c0_i32_2 = arith.constant 0 : i32
    return %arg0, %c0_i32, %c0_i32_0, %c0_i32_1 : i32, i32, i32, i32
  }
}

</mosaic_0001>

<bundles_post_ra>
// kernel: retinex_decomposition.1
= control target key start
LH: loop header
LB: loop body
LE: loop exit
PB: predicated region body
PF: predicated region fallthrough
CT: control target
= control target key end

     0   :  { %s6254_s24 = smov 0   ;;  %s9267_s0 = inlined_call_operand.vmem [shape: bf16[2,16,16,27], index: 0, kind: input, shape index: {}]   ;;  %s9268_s1 = inlined_call_operand.vmem [shape: bf16[27,32], index: 1, kind: input, shape index: {}]   ;;  %s9269_s2 = inlined_call_operand.vmem [shape: f32[1,32], index: 2, kind: input, shape index: {}]   ;;  %s9270_s3 = inlined_call_operand.vmem [shape: bf16[288,64], index: 3, kind: input, shape index: {}]   ;;  %s9271_s4 = inlined_call_operand.vmem [shape: f32[1,64], index: 4, kind: input, shape index: {}]   ;;  %s9272_s5 = inlined_call_operand.vmem [shape: bf16[576,128], index: 5, kind: input, shape index: {}]   ;;  %s9273_s6 = inlined_call_operand.vmem [shape: f32[1,128], index: 6, kind: input, shape index: {}]   ;;  %s9274_s7 = inlined_call_operand.vmem [shape: f32[2,16,16,128], index: 7, kind: output, shape index: {}]  }
   0x1 LB: > { %s4538_s25 = sadd.s32 4294967295, %s6207_s24   ;;  %p4542_p0 = scmp.ge.s32.totalorder %s6207_s24, 1  ;;  %s6207_s24 = sphi %s6254_s24, %s17_s24  }
   0x2   : > { %p237_p1 = scmp.lt.s32.totalorder %s6207_s24, 3 }
   0x4   : > { %p238_p2 = pnand %p4542_p0, %p237_p1 }
   0x6   : > { %241 = sbr.rel (%p238_p2) target bundleno = 1224 (0x4c8), region = 48 }
   0xd   : > { %v5957_v0 = vld [vmem:[%s9268_s1] sm:$0xff]   ;;  %vm555_vm0 = vcmask 1044480   ;;  %v5958_v1 = vld [vmem:[%s9268_s1 + $0x8] sm:$0x3f]   ;;  %vm556_vm1 = vcmask 1045504   ;;  %p269_p3 = scmp.lt.s32.totalorder %s4538_s25, 1 }
   0xe   : > { %5098 = vmatprep.subr.bf16.mxu0 %v5957_v0  ;;  %5210 = vmatprep.subr.bf16.mxu1 %v5957_v0  ;;  %v6209_v2 = vmov 65535   ;;  %vm506_vm2 = vcmask 220160   ;;  %vm280_vm3 = vcmask 261120   ;;  %vm283_vm4 = vcmask 254976   ;;  %s6211_s11 = smov 64   ;;  %s6212_s12 = smov 32  }
   0xf   : > { %5099 = vmatpush3.bf16.msra.mxu0 %v5957_v0  ;;  %5212 = vmatpush3.bf16.msra.mxu1 %v5957_v0  ;;  %v557_v3 = vsel %vm555_vm0, 4294967295, %v6209_v2  ;;  %s9485_s25 = smov (!%p269_p3, %s4538_s25), 1  ;;  %v9275_v22 = vmov 0.0   ;;  %vm289_vm5 = vcmask 253952   ;;  %vm890_vm6 = vcmask 1046528   ;;  %v5975_v38 = vld [vmem:[%s9270_s3 + $0x80] sm:$0xff]  }
  0x10   : > { %v558_v4 = vsel %vm556_vm1, %v557_v3, 0  ;;  %s4704_s30 = sshll.u32 %s9485_s25, 7  ;;  %281 = vst.msk [vmem:[#allocation2] sm:$0xff] %vm280_vm3, %v9275_v22  ;;  %282 = vst.msk [vmem:[#allocation2 + $0x8] sm:$0xff] %vm280_vm3, %v9275_v22  ;;  %v5976_v39 = vld [vmem:[%s9270_s3 + $0x88] sm:$0xff]   ;;  %v5977_v62 = vld [vmem:[%s9270_s3 + $0x40] sm:$0xff]  }
  0x11   : > { %v560_v5 = vand.u32 %v5958_v1, %v558_v4  ;;  %s6275_s10 = scalar_lea.vmem %s9267_s0, %s4704_s30  ;;  %284 = vst.msk [vmem:[#allocation2 + $0x10] sm:$0x3] %vm283_vm4, %v9275_v22  ;;  %288 = vst.msk [vmem:[#allocation2 + $0x1a8] sm:$0x3] %vm283_vm4, %v9275_v22  ;;  %v6406_v40 = vld [vmem:[%s9269_s2] ss:$0 sm:$0xff] }
  0x12   : > { %v5959_v6 = vld [vmem:[%s6275_s10] sm:$0xff]   ;;  %v5961_v8 = vld [vmem:[%s6275_s10 + $0x8] sm:$0xff]   ;;  %v5963_v10 = vld [vmem:[%s6275_s10 + $0x10] sm:$0xff]   ;;  %286 = vst.msk [vmem:[#allocation2 + $0x198] sm:$0xff] %vm280_vm3, %v9275_v22  ;;  %s6213_s16 = smov 96   ;;  %vm326_vm7 = vcmask 523264  }
  0x13   : > { %5100 = vmatprep.subr.bf16.mxu0 %v560_v5  ;;  %5211 = vmatprep.subr.bf16.mxu1 %v560_v5  ;;  %v5960_v7 = vld [vmem:[%s6275_s10 + $0x40] sm:$0xff]   ;;  %v5962_v9 = vld [vmem:[%s6275_s10 + $0x48] sm:$0xff]   ;;  %v5964_v11 = vld [vmem:[%s6275_s10 + $0x18] sm:$0xff]   ;;  %287 = vst.msk [vmem:[#allocation2 + $0x1a0] sm:$0xff] %vm280_vm3, %v9275_v22  ;;  %vm1781_vm8 = vcmask 785408   ;;  %vm329_vm9 = vcmask 517120  }
  0x14   : > { %5101 = vmatpush3.bf16.msra.mxu0 %v560_v5  ;;  %5213 = vmatpush3.bf16.msra.mxu1 %v560_v5  ;;  %v5965_v12 = vld [vmem:[%s6275_s10 + $0x20] sm:$0xff]   ;;  %v5969_v13 = vld [vmem:[%s6275_s10 + $0x50] sm:$0xff]   ;;  %v5970_v14 = vld [vmem:[%s6275_s10 + $0x58] sm:$0xff]   ;;  %290 = vst.msk [vmem:[#allocation2] sm:$0x1] %vm289_vm5, %v9275_v22  ;;  %vm335_vm10 = vcmask 516096  }
  0x15   : > { %5102 = vmatprep.mubr.msk.bf16.mxu0 %vm506_vm2, %v5959_v6  ;;  %5118 = vmatprep.mubr.msk.bf16.mxu1 %vm506_vm2, %v5960_v7  ;;  %v5971_v15 = vld [vmem:[%s6275_s10 + $0x60] sm:$0xff]   ;;  %v5966_v16 = vld [vmem:[%s6275_s10 + $0x28] sm:$0xff]   ;;  %v5967_v17 = vld [vmem:[%s6275_s10 + $0x30] sm:$0xff]   ;;  %308 = vst.msk [vmem:[#allocation2 + $0x11] sm:$0x1] %vm289_vm5, %v9275_v22  ;;  %s4705_s9 = sshll.u32 %s9485_s25, 8 }
  0x16   : > { %v5972_v18 = vld [vmem:[%s6275_s10 + $0x68] sm:$0xff]   ;;  %v5973_v19 = vld [vmem:[%s6275_s10 + $0x70] sm:$0xff]   ;;  %v5968_v20 = vld [vmem:[%s6275_s10 + $0x38] sm:$0xff]   ;;  %291 = vst.msk [vmem:[#allocation2 + $0x18] sm:$0x1] %vm289_vm5, %v9275_v22  ;;  %5134 = vmatprep.subr.bf16.mxu0 %v5975_v38  ;;  %4724 = vmatprep.subr.bf16.mxu1 %v5977_v62  ;;  %s9039_s13 = scalar_lea.vmem %s9274_s7, %s4705_s9 }
  0x17   : > { %5103 = vmatmul.mubr.msk.bf16.vlgmr.msra.gmra.mrb[0].mxu0 %vm506_vm2, %v5961_v8  ;;  %5119 = vmatmul.mubr.msk.bf16.vlgmr.msra.gmra.mrb[0].mxu1 %vm506_vm2, %v5962_v9  ;;  %v5974_v21 = vld [vmem:[%s6275_s10 + $0x78] sm:$0xff]   ;;  %292 = vst.msk [vmem:[#allocation2 + $0x30] sm:$0x1] %vm289_vm5, %v9275_v22  ;;  %293 = vst.msk [vmem:[#allocation2 + $0x48] sm:$0x1] %vm289_vm5, %v9275_v22  ;;  %v789_v24 = vld [vmem:[#allocation2 + $0x8] sm:$0xff] }
  0x18   : > { %5106 = vmatprep.mubr.msk.bf16.mxu0 %vm506_vm2, %v5963_v10  ;;  %5122 = vmatprep.mubr.msk.bf16.mxu1 %vm506_vm2, %v5969_v13  ;;  %294 = vst.msk [vmem:[#allocation2 + $0x60] sm:$0x1] %vm289_vm5, %v9275_v22  ;;  %295 = vst.msk [vmem:[#allocation2 + $0x78] sm:$0x1] %vm289_vm5, %v9275_v22  ;;  %v1068_v27 = vrot.slane %v789_v24, 2  ;;  %v892_v30 = vrot.slane %v789_v24, 1 }
  0x19   : > { %296 = vst.msk [vmem:[#allocation2 + $0x90] sm:$0x1] %vm289_vm5, %v9275_v22  ;;  %297 = vst.msk [vmem:[#allocation2 + $0xa8] sm:$0x1] %vm289_vm5, %v9275_v22  ;;  %5135 = vmatpush3.bf16.msra.mxu0 %v5975_v38  ;;  %v5978_v63 = vld [vmem:[%s9270_s3] sm:$0xff]   ;;  %v5979_v7 = vld [vmem:[%s9270_s3 + $0x48] sm:$0xff]  }
  0x1a   : > { %298 = vst.msk [vmem:[#allocation2 + $0xc0] sm:$0x1] %vm289_vm5, %v9275_v22  ;;  %299 = vst.msk [vmem:[#allocation2 + $0xd8] sm:$0x1] %vm289_vm5, %v9275_v22  ;;  %5136 = vmatprep.subr.bf16.mxu0 %v5976_v39  ;;  %4725 = vmatpush3.bf16.msra.mxu1 %v5978_v63  ;;  %v5980_v8 = vld [vmem:[%s9270_s3 + $0x8] sm:$0xff]  }
  0x1b   : > { %300 = vst.msk [vmem:[#allocation2 + $0xf0] sm:$0x1] %vm289_vm5, %v9275_v22  ;;  %301 = vst.msk [vmem:[#allocation2 + $0x108] sm:$0x1] %vm289_vm5, %v9275_v22  ;;  %v788_v23 = vld [vmem:[#allocation2] sm:$0xff]  ;;  %4726 = vmatprep.subr.bf16.mxu1 %v5979_v7 }
  0x1c   : > { %302 = vst.msk [vmem:[#allocation2 + $0x120] sm:$0x1] %vm289_vm5, %v9275_v22  ;;  %303 = vst.msk [vmem:[#allocation2 + $0x138] sm:$0x1] %vm289_vm5, %v9275_v22  ;;  %v790_v25 = vld [vmem:[#allocation2 + $0x10] sm:$0x3] }
  0x1d   : > { %304 = vst.msk [vmem:[#allocation2 + $0x150] sm:$0x1] %vm289_vm5, %v9275_v22  ;;  %305 = vst.msk [vmem:[#allocation2 + $0x168] sm:$0x1] %vm289_vm5, %v9275_v22  ;;  %v1067_v26 = vrot.slane %v788_v23, 2  ;;  %v1070_v28 = vrot.slane %v790_v25, 2  ;;  %5137 = vmatpush3.bf16.msra.mxu0 %v5976_v39 }
  0x1e   : > { %306 = vst.msk [vmem:[#allocation2 + $0x180] sm:$0x1] %vm289_vm5, %v9275_v22  ;;  %309 = vst.msk [vmem:[#allocation2 + $0x29] sm:$0x1] %vm289_vm5, %v9275_v22  ;;  %v891_v29 = vrot.slane %v788_v23, 1  ;;  %v894_v31 = vrot.slane %v790_v25, 1  ;;  %4727 = vmatpush3.bf16.msra.mxu1 %v5980_v8 }
  0x1f   : > { %5107 = vmatmul.mubr.msk.bf16.gmra.mrb[4].mxu0 %vm506_vm2, %v5964_v11  ;;  %5123 = vmatmul.mubr.msk.bf16.gmra.mrb[4].mxu1 %vm506_vm2, %v5970_v14  ;;  %310 = vst.msk [vmem:[#allocation2 + $0x41] sm:$0x1] %vm289_vm5, %v9275_v22  ;;  %311 = vst.msk [vmem:[#allocation2 + $0x59] sm:$0x1] %vm289_vm5, %v9275_v22  ;;  %v1069_v32 = vsel %vm556_vm1, %v1067_v26, %v1068_v27  ;;  %v1071_v33 = vsel %vm556_vm1, %v1068_v27, %v1070_v28  ;;  %v5984_v8 = vld [vmem:[%s9270_s3 + $0x18] sm:$0xff]  }
  0x20   : > { %5110 = vmatprep.mubr.msk.bf16.mxu0 %vm506_vm2, %v5965_v12  ;;  %5126 = vmatprep.mubr.msk.bf16.mxu1 %vm506_vm2, %v5971_v15  ;;  %312 = vst.msk [vmem:[#allocation2 + $0x71] sm:$0x1] %vm289_vm5, %v9275_v22  ;;  %313 = vst.msk [vmem:[#allocation2 + $0x89] sm:$0x1] %vm289_vm5, %v9275_v22  ;;  %v5232_v34 = vpack.i.bf16 %v1071_v33, %v1069_v32  ;;  %v893_v35 = vsel %vm890_vm6, %v891_v29, %v892_v30 }
  0x21   : > { %314 = vst.msk [vmem:[#allocation2 + $0xa1] sm:$0x1] %vm289_vm5, %v9275_v22  ;;  %315 = vst.msk [vmem:[#allocation2 + $0xb9] sm:$0x1] %vm289_vm5, %v9275_v22  ;;  %v895_v36 = vsel %vm890_vm6, %v892_v30, %v894_v31 }
  0x22   : > { %316 = vst.msk [vmem:[#allocation2 + $0xd1] sm:$0x1] %vm289_vm5, %v9275_v22  ;;  %317 = vst.msk [vmem:[#allocation2 + $0xe9] sm:$0x1] %vm289_vm5, %v9275_v22  ;;  %v5227_v37 = vpack.i.bf16 %v895_v36, %v893_v35  ;;  %5233 = vrot.lane.b32.xlu1 %v5232_v34, %s6211_s11 }
  0x23   : > { %318 = vst.msk [vmem:[#allocation2 + $0x101] sm:$0x1] %vm289_vm5, %v9275_v22  ;;  %319 = vst.msk [vmem:[#allocation2 + $0x119] sm:$0x1] %vm289_vm5, %v9275_v22 }
  0x24   : > { %320 = vst.msk [vmem:[#allocation2 + $0x131] sm:$0x1] %vm289_vm5, %v9275_v22  ;;  %321 = vst.msk [vmem:[#allocation2 + $0x149] sm:$0x1] %vm289_vm5, %v9275_v22  ;;  %5228 = vrot.lane.b32.xlu0 %v5227_v37, %s6212_s12 }
  0x25   : > { %322 = vst.msk [vmem:[#allocation2 + $0x161] sm:$0x1] %vm289_vm5, %v9275_v22  ;;  %323 = vst.msk [vmem:[#allocation2 + $0x179] sm:$0x1] %vm289_vm5, %v9275_v22 }
  0x26   : > { %324 = vst.msk [vmem:[#allocation2 + $0x191] sm:$0x1] %vm289_vm5, %v9275_v22  ;;  %325 = vst.msk [vmem:[#allocation2 + $0x1a9] sm:$0x1] %vm289_vm5, %v9275_v22 }
  0x27   : > { %5111 = vmatmul.mubr.msk.bf16.gmra.mrb[8].mxu0 %vm506_vm2, %v5966_v16  ;;  %5127 = vmatmul.mubr.msk.bf16.gmra.mrb[8].mxu1 %vm506_vm2, %v5972_v18  ;;  %307 = vst.msk [vmem:[#allocation2 + $0x198] sm:$0x1] %vm289_vm5, %v9275_v22 }
  0x28   : > { %5114 = vmatprep.mubr.msk.bf16.mxu0 %vm506_vm2, %v5967_v17  ;;  %5130 = vmatprep.mubr.msk.bf16.mxu1 %vm506_vm2, %v5973_v19 }
  0x2f   : > { %5115 = vmatmul.mubr.msk.bf16.gmra.mrb[12].mxu0 %vm506_vm2, %v5968_v20  ;;  %5131 = vmatmul.mubr.msk.bf16.gmra.mrb[12].mxu1 %vm506_vm2, %v5974_v21 }
  0xea   : > { %v5104_v41 = vpop.f32.mrb[0].mxu0  ;;  %v5120_v43 = vpop.f32.mrb[0].mxu1 }
  0xeb   : > { %v605_v42 = vadd.f32 %v5104_v41, %v6406_v40  ;;  %v596_v44 = vpop.f32.mrb[1].mxu0  ;;  %v669_v45 = vadd.f32 %v5120_v43, %v6406_v40  ;;  %v660_v47 = vpop.f32.mrb[1].mxu1 }
  0xec   : > { %v597_v46 = vadd.f32 %v6406_v40, %v596_v44  ;;  %v5105_v48 = vpop.f32.mrb[2].mxu0  ;;  %v661_v50 = vadd.f32 %v6406_v40, %v660_v47  ;;  %v5121_v52 = vpop.f32.mrb[2].mxu1 }
  0xed   : > { %v725_v49 = vmax.f32 %v605_v42, 0.0  ;;  %v608_v51 = vadd.f32 %v5105_v48, %v6406_v40  ;;  %v599_v53 = vpop.f32.mrb[3].mxu0  ;;  %v741_v54 = vmax.f32 %v669_v45, 0.0  ;;  %v672_v56 = vadd.f32 %v5121_v52, %v6406_v40  ;;  %v663_v58 = vpop.f32.mrb[3].mxu1  ;;  %v5981_v48 = vld [vmem:[%s9270_s3 + $0x50] sm:$0xff]  }
  0xee   : > { %v723_v55 = vmax.f32 %v597_v46, 0.0  ;;  %v600_v57 = vadd.f32 %v6406_v40, %v599_v53  ;;  %v739_v59 = vmax.f32 %v661_v50, 0.0  ;;  %v664_v61 = vadd.f32 %v6406_v40, %v663_v58  ;;  %4728 = vmatprep.subr.bf16.mxu1 %v5981_v48 }
  0xef   : > { %758 = vst.msk [vmem:[#allocation2 + $0x31] sm:$0xff] %vm280_vm3, %v725_v49  ;;  %v726_v60 = vmax.f32 %v608_v51, 0.0  ;;  %774 = vst.msk [vmem:[#allocation2 + $0xf1] sm:$0xff] %vm280_vm3, %v741_v54  ;;  %v742_v0 = vmax.f32 %v672_v56, 0.0  ;;  %v5982_v49 = vld [vmem:[%s9270_s3 + $0x10] sm:$0xff]  }
  0xf0   : > { %756 = vst.msk [vmem:[#allocation2 + $0x19] sm:$0xff] %vm280_vm3, %v723_v55  ;;  %v724_v1 = vmax.f32 %v600_v57, 0.0  ;;  %772 = vst.msk [vmem:[#allocation2 + $0xd9] sm:$0xff] %vm280_vm3, %v739_v59  ;;  %v740_v2 = vmax.f32 %v664_v61, 0.0  ;;  %4729 = vmatpush3.bf16.msra.mxu1 %v5982_v49 }
  0xf1   : > { %759 = vst.msk [vmem:[#allocation2 + $0x39] sm:$0xff] %vm280_vm3, %v726_v60  ;;  %775 = vst.msk [vmem:[#allocation2 + $0xf9] sm:$0xff] %vm280_vm3, %v742_v0  ;;  %v5983_v0 = vld [vmem:[%s9270_s3 + $0x58] sm:$0xff]  }
  0xf2   : > { %757 = vst.msk [vmem:[#allocation2 + $0x21] sm:$0xff] %vm280_vm3, %v724_v1  ;;  %v5108_v3 = vpop.f32.mrb[4].mxu0  ;;  %773 = vst.msk [vmem:[#allocation2 + $0xe1] sm:$0xff] %vm280_vm3, %v740_v2  ;;  %v5124_v6 = vpop.f32.mrb[4].mxu1  ;;  %4730 = vmatprep.subr.bf16.mxu1 %v5983_v0  ;;  %v5987_v0 = vld [vmem:[%s9270_s3 + $0x68] sm:$0xff]  }
  0xf3   : > { %v621_v4 = vadd.f32 %v5108_v3, %v6406_v40  ;;  %v612_v5 = vpop.f32.mrb[5].mxu0  ;;  %v685_v11 = vadd.f32 %v5124_v6, %v6406_v40  ;;  %v676_v12 = vpop.f32.mrb[5].mxu1 }
  0xf4   : > { %v613_v9 = vadd.f32 %v6406_v40, %v612_v5  ;;  %v5109_v10 = vpop.f32.mrb[6].mxu0  ;;  %v677_v16 = vadd.f32 %v6406_v40, %v676_v12  ;;  %v5125_v17 = vpop.f32.mrb[6].mxu1  ;;  %4731 = vmatpush3.bf16.msra.mxu1 %v5984_v8 }
  0xf5   : > { %v729_v13 = vmax.f32 %v621_v4, 0.0  ;;  %v624_v14 = vadd.f32 %v5109_v10, %v6406_v40  ;;  %v615_v15 = vpop.f32.mrb[7].mxu0  ;;  %v745_v21 = vmax.f32 %v685_v11, 0.0  ;;  %v6442_v23 = vpop.f32.mrb[7].mxu1  ;;  %v6492_v62 = vadd.f32 %v5125_v17, %v6406_v40 }
  0xf6   : > { %v727_v18 = vmax.f32 %v613_v9, 0.0  ;;  %v616_v19 = vadd.f32 %v6406_v40, %v615_v15  ;;  %v794_v20 = vld [vmem:[#allocation2 + $0x30] sm:$0xff]  ;;  %v743_v26 = vmax.f32 %v677_v16, 0.0 }
  0xf7   : > { %762 = vst.msk [vmem:[#allocation2 + $0x61] sm:$0xff] %vm280_vm3, %v729_v13  ;;  %v730_v24 = vmax.f32 %v624_v14, 0.0  ;;  %v1077_v25 = vrot.slane %v794_v20, 2  ;;  %v6446_v28 = vld [vmem:[#allocation2 + $0xf0] sm:$0xff]  ;;  %v901_v31 = vrot.slane %v794_v20, 1  ;;  %778 = vst.msk [vmem:[#allocation2 + $0x121] sm:$0xff] %vm280_vm3, %v745_v21 }
  0xf8   : > { %760 = vst.msk [vmem:[#allocation2 + $0x49] sm:$0xff] %vm280_vm3, %v727_v18  ;;  %v728_v27 = vmax.f32 %v616_v19, 0.0  ;;  %v795_v29 = vld [vmem:[#allocation2 + $0x38] sm:$0xff]  ;;  %v796_v30 = vld [vmem:[#allocation2 + $0x40] sm:$0x3]  ;;  %776 = vst.msk [vmem:[#allocation2 + $0x109] sm:$0xff] %vm280_vm3, %v743_v26 }
  0xf9   : > { %763 = vst.msk [vmem:[#allocation2 + $0x69] sm:$0xff] %vm280_vm3, %v730_v24  ;;  %v6450_v32 = vld [vmem:[#allocation2 + $0xf8] sm:$0xff]  ;;  %v5237_v33 = vpack.i.bf16 %v795_v29, %v794_v20  ;;  %v1078_v34 = vrot.slane %v795_v29, 2  ;;  %v1080_v35 = vrot.slane %v796_v30, 2  ;;  %v902_v38 = vrot.slane %v795_v29, 1  ;;  %v6462_v45 = vld [vmem:[#allocation2 + $0xe0] sm:$0xff] }
  0xfa   : > { %761 = vst.msk [vmem:[#allocation2 + $0x51] sm:$0xff] %vm280_vm3, %v728_v27  ;;  %v5112_v36 = vpop.f32.mrb[8].mxu0  ;;  %v6456_v37 = vpack.i.bf16 %v6450_v32, %v6446_v28  ;;  %v904_v39 = vrot.slane %v796_v30, 1  ;;  %v941_v46 = vrot.slane %v6446_v28, 1  ;;  %v6465_v47 = vpop.f32.mrb[8].mxu1  ;;  %v6476_v53 = vld [vmem:[#allocation2 + $0xd8] sm:$0xff] }
  0xfb   : > { %v637_v41 = vadd.f32 %v5112_v36, %v6406_v40  ;;  %5238 = vrot.lane.b32.xlu1 %v5237_v33, %s6211_s11  ;;  %v628_v42 = vpop.f32.mrb[9].mxu0  ;;  %v1079_v43 = vsel %vm556_vm1, %v1077_v25, %v1078_v34  ;;  %v1081_v44 = vsel %vm556_vm1, %v1078_v34, %v1080_v35  ;;  %v6479_v54 = vsel %vm890_vm6, %v901_v31, %v902_v38  ;;  %v6484_v56 = vld [vmem:[#allocation2 + $0x20] sm:$0xff]  ;;  %v6486_v57 = vpop.f32.mrb[9].mxu1  ;;  %v6505_v4 = vld [vmem:[#allocation2 + $0x18] sm:$0xff] }
  0xfc   : > { %5248 = vrot.lane.b32.xlu0 %v6456_v37, %s6211_s11  ;;  %v629_v50 = vadd.f32 %v6406_v40, %v628_v42  ;;  %v5113_v51 = vpop.f32.mrb[10].mxu0  ;;  %v1912_v52 = vpack.c.bf16 %v1081_v44, %v1079_v43  ;;  %9347 = vst [vmem:[#allocation4_spill] sm:$0xff] %v6479_v54  ;;  %v6482_v55 = vsel %vm890_vm6, %v902_v38, %v904_v39  ;;  %v6489_v61 = vld [vmem:[#allocation2 + $0x100] sm:$0x3]  ;;  %v6494_v63 = vpop.f32.mrb[10].mxu1  ;;  %v942_v5 = vrot.slane %v6450_v32, 1 }
  0xfd   : > { %9348 = vst [vmem:[#allocation5_spill] sm:$0xff] %v6482_v55  ;;  %v733_v58 = vmax.f32 %v637_v41, 0.0  ;;  %v640_v59 = vadd.f32 %v5113_v51, %v6406_v40  ;;  %v631_v60 = vpop.f32.mrb[11].mxu0  ;;  %v6503_v3 = vpack.i.bf16 %v6462_v45, %v6476_v53  ;;  %v6510_v7 = vpop.f32.mrb[11].mxu1  ;;  %v6519_v10 = vpack.i.bf16 %v6482_v55, %v6479_v54  ;;  %v5985_v34 = vld [vmem:[%s9270_s3 + $0x60] sm:$0xff]  }
  0xfe   : > { %v731_v1 = vmax.f32 %v629_v50, 0.0  ;;  %v632_v2 = vadd.f32 %v6406_v40, %v631_v60  ;;  %5138 = vmatprep.mubr.msk.bf16.mxu0 %vm280_vm3, %v1912_v52  ;;  %v6508_v6 = vld [vmem:[#allocation2 + $0x60] sm:$0xff]  ;;  %v5252_v11 = vpack.i.bf16 %v6484_v56, %v6505_v4  ;;  %v6529_v15 = vpack.i.bf16 %v1081_v44, %v1079_v43  ;;  %v6588_v60 = vld [vmem:[#allocation2 + $0x28] sm:$0x3]  ;;  %4732 = vmatprep.subr.bf16.mxu1 %v5985_v34 }
  0xff   : > { %766 = vst.msk [vmem:[#allocation2 + $0x91] sm:$0xff] %vm280_vm3, %v733_v58  ;;  %v734_v9 = vmax.f32 %v640_v59, 0.0  ;;  %5243 = vrot.lane.b32.xlu1 %v5237_v33, %s6213_s16  ;;  %v6523_v12 = vld [vmem:[#allocation2 + $0x48] sm:$0xff]  ;;  %v1087_v13 = vrot.slane %v6508_v6, 2  ;;  %v6542_v21 = vsel %vm890_vm6, %v941_v46, %v942_v5  ;;  %v944_v24 = vrot.slane %v6489_v61, 1  ;;  %v5986_v42 = vld [vmem:[%s9270_s3 + $0x20] sm:$0xff]  }
 0x100   : > { %764 = vst.msk [vmem:[#allocation2 + $0x79] sm:$0xff] %vm280_vm3, %v731_v1  ;;  %v732_v14 = vmax.f32 %v632_v2, 0.0  ;;  %5258 = vrot.lane.b32.xlu0 %v6503_v3, %s6211_s11  ;;  %v1082_v16 = vrot.slane %v6523_v12, 2  ;;  %v6532_v17 = vld [vmem:[#allocation2 + $0x68] sm:$0xff]  ;;  %v6534_v18 = vld [vmem:[#allocation2 + $0x70] sm:$0x3]  ;;  %4733 = vmatpush3.bf16.msra.mxu1 %v5986_v42 }
 0x101   : > { %767 = vst.msk [vmem:[#allocation2 + $0x99] sm:$0xff] %vm280_vm3, %v734_v9  ;;  %v6537_v19 = vld [vmem:[#allocation2 + $0x50] sm:$0xff]  ;;  %v6539_v20 = vld [vmem:[#allocation2 + $0x58] sm:$0x3]  ;;  %9349 = vst [vmem:[#allocation6_spill] sm:$0xff] %v6542_v21  ;;  %v1088_v25 = vrot.slane %v6532_v17, 2  ;;  %v6586_v59 = vsel %vm890_vm6, %v942_v5, %v944_v24  ;;  %4734 = vmatprep.subr.bf16.mxu1 %v5987_v0 }
 0x102   : > { %v1090_v26 = vrot.slane %v6534_v18, 2  ;;  %765 = vst.msk [vmem:[#allocation2 + $0x81] sm:$0xff] %vm280_vm3, %v732_v14  ;;  %v5116_v27 = vpop.f32.mrb[12].mxu0  ;;  %v1083_v29 = vrot.slane %v6537_v19, 2  ;;  %v1085_v30 = vrot.slane %v6539_v20, 2  ;;  %v1118_v31 = vrot.slane %v6450_v32, 2 }
 0x103   : > { %v1120_v33 = vrot.slane %v6489_v61, 2  ;;  %v653_v35 = vadd.f32 %v5116_v27, %v6406_v40  ;;  %v644_v36 = vpop.f32.mrb[13].mxu0  ;;  %5253 = vrot.lane.b32.xlu1 %v5252_v11, %s6213_s16  ;;  %v6558_v38 = vsel %vm556_vm1, %v1087_v13, %v1088_v25  ;;  %v1117_v32 = vrot.slane %v6446_v28, 2  ;;  %v6564_v41 = vpop.f32.mrb[12].mxu1  ;;  %9350 = vst [vmem:[#allocation7_spill] sm:$0xff] %v6586_v59  ;;  %v5988_v11 = vld [vmem:[%s9270_s3 + $0x28] sm:$0xff]  }
 0x104   : > { %v6561_v39 = vsel %vm556_vm1, %v1088_v25, %v1090_v26  ;;  %5268 = vrot.lane.b32.xlu0 %v6519_v10, %s6213_s16  ;;  %v645_v43 = vadd.f32 %v6406_v40, %v644_v36  ;;  %v5117_v44 = vpop.f32.mrb[14].mxu0  ;;  %v6573_v46 = vsel %vm556_vm1, %v1082_v16, %v1083_v29  ;;  %v6576_v48 = vsel %vm556_vm1, %v1083_v29, %v1085_v30  ;;  %v6580_v49 = vpop.f32.mrb[13].mxu1  ;;  %v5989_v36 = vld [vmem:[%s9270_s3 + $0x70] sm:$0xff]   ;;  %v817_v0 = vld [vmem:[#allocation2 + $0xe8] sm:$0x3] }
 0x105   : > { %v1918_v28 = vpack.c.bf16 %v6561_v39, %v6558_v38  ;;  %v737_v50 = vmax.f32 %v653_v35, 0.0  ;;  %v656_v51 = vadd.f32 %v5117_v44, %v6406_v40  ;;  %v647_v52 = vpop.f32.mrb[15].mxu0  ;;  %v1915_v58 = vpack.c.bf16 %v6576_v48, %v6573_v46  ;;  %v6590_v61 = vpop.f32.mrb[14].mxu1  ;;  %4735 = vmatpush3.bf16.msra.mxu1 %v5988_v11 }
 0x106   : > { %v735_v1 = vmax.f32 %v645_v43, 0.0  ;;  %v648_v2 = vadd.f32 %v6406_v40, %v647_v52  ;;  %v6597_v8 = vsel %vm556_vm1, %v1117_v32, %v1118_v31  ;;  %v6600_v9 = vsel %vm556_vm1, %v1118_v31, %v1120_v33  ;;  %v6602_v5 = vpop.f32.mrb[15].mxu1  ;;  %4736 = vmatprep.subr.bf16.mxu1 %v5989_v36 }
 0x107   : > { %770 = vst.msk [vmem:[#allocation2 + $0xc1] sm:$0xff] %vm280_vm3, %v737_v50  ;;  %v738_v13 = vmax.f32 %v656_v51, 0.0  ;;  %5139 = vmatmul.mubr.msk.bf16.vlgmr.msra.gmra.mrb[16].mxu0 %vm280_vm3, %v1915_v58  ;;  %5263 = vrot.lane.b32.xlu1 %v6503_v3, %s6213_s16  ;;  %v6611_v14 = vld [vmem:[#allocation2 + $0x78] sm:$0xff]  ;;  %v680_v16 = vadd.f32 %v6406_v40, %v6442_v23  ;;  %v1073_v26 = vrot.slane %v6484_v56, 2  ;;  %v1075_v27 = vrot.slane %v6588_v60, 2  ;;  %v6622_v3 = vld [vmem:[#allocation2 + $0x90] sm:$0xff] }
 0x108   : > { %768 = vst.msk [vmem:[#allocation2 + $0xa9] sm:$0xff] %vm280_vm3, %v735_v1  ;;  %v736_v24 = vmax.f32 %v648_v2, 0.0  ;;  %5273 = vrot.lane.b32.xlu0 %v6529_v15, %s6212_s12  ;;  %5142 = vmatprep.mubr.msk.bf16.mxu0 %vm280_vm3, %v1918_v28  ;;  %v1092_v25 = vrot.slane %v6611_v14, 2  ;;  %v6624_v29 = vld [vmem:[#allocation2 + $0x98] sm:$0xff]  ;;  %v6629_v23 = vpack.i.bf16 %v6586_v59, %v6542_v21  ;;  %v6633_v30 = vpack.i.bf16 %v6600_v9, %v6597_v8  ;;  %v6648_v44 = vld [vmem:[#allocation2 + $0xa0] sm:$0x3] }
 0x109   : > { %771 = vst.msk [vmem:[#allocation2 + $0xc9] sm:$0xff] %vm280_vm3, %v738_v13  ;;  %v6635_v31 = vld [vmem:[#allocation2 + $0x80] sm:$0xff]  ;;  %v6637_v33 = vld [vmem:[#allocation2 + $0x88] sm:$0x3]  ;;  %v897_v34 = vrot.slane %v6484_v56, 1  ;;  %v746_v35 = vmax.f32 %v6492_v62, 0.0  ;;  %v1076_v13 = vsel %vm556_vm1, %v1073_v26, %v1075_v27 }
 0x10a   : > { %9351 = vst [vmem:[#allocation8_spill] sm:$0xff] %v6633_v30  ;;  %769 = vst.msk [vmem:[#allocation2 + $0xb1] sm:$0xff] %vm280_vm3, %v736_v24  ;;  %v1093_v32 = vrot.slane %v6635_v31, 2  ;;  %v1095_v42 = vrot.slane %v6637_v33, 2  ;;  %v899_v43 = vrot.slane %v6588_v60, 1  ;;  %v5990_v56 = vld [vmem:[%s9270_s3 + $0x30] sm:$0xff]  }
 0x10b   : > { %5278 = vrot.lane.b32.xlu1 %v6519_v10, %s6212_s12  ;;  %v1072_v62 = vrot.slane %v6505_v4, 2  ;;  %779 = vst.msk [vmem:[#allocation2 + $0x129] sm:$0xff] %vm280_vm3, %v746_v35  ;;  %v744_v28 = vmax.f32 %v680_v16, 0.0  ;;  %v1097_v50 = vrot.slane %v6622_v3, 2  ;;  %v1098_v51 = vrot.slane %v6624_v29, 2  ;;  %v5991_v1 = vld [vmem:[%s9270_s3 + $0x78] sm:$0xff]   ;;  %4737 = vmatpush3.bf16.msra.mxu1 %v5990_v56 }
 0x10c   : > { %5288 = vrot.lane.b32.xlu0 %v6629_v23, %s6213_s16  ;;  %v6662_v52 = vsel %vm556_vm1, %v1092_v25, %v1093_v32  ;;  %v6665_v58 = vsel %vm556_vm1, %v1093_v32, %v1095_v42  ;;  %v896_v10 = vrot.slane %v6505_v4, 1  ;;  %v1100_v60 = vrot.slane %v6648_v44, 2  ;;  %4738 = vmatprep.subr.bf16.mxu1 %v5991_v1 }
 0x10d   : > { %v1921_v2 = vpack.c.bf16 %v6665_v58, %v6662_v52  ;;  %v1074_v11 = vsel %vm556_vm1, %v1072_v62, %v1073_v26  ;;  %777 = vst.msk [vmem:[#allocation2 + $0x111] sm:$0xff] %vm280_vm3, %v744_v28  ;;  %v6678_v16 = vsel %vm556_vm1, %v1097_v50, %v1098_v51  ;;  %v6684_v24 = vsel %vm890_vm6, %v897_v34, %v899_v43  ;;  %v5992_v26 = vld [vmem:[%s9270_s3 + $0x38] sm:$0xff]  }
 0x10e   : > { %v6681_v4 = vsel %vm890_vm6, %v896_v10, %v897_v34  ;;  %9353 = vst [vmem:[#allocation10_spill] sm:$0xff] %v6684_v24  ;;  %v6687_v25 = vsel %vm556_vm1, %v1098_v51, %v1100_v60  ;;  %v937_v35 = vrot.slane %v6462_v45, 1  ;;  %v6690_v36 = vld [vmem:[#allocation2 + $0xc0] sm:$0xff]  ;;  %v939_v32 = vrot.slane %v817_v0, 1 }
 0x10f   : > { %9352 = vst [vmem:[#allocation9_spill] sm:$0xff] %v6681_v4  ;;  %5143 = vmatmul.mubr.msk.bf16.gmra.mrb[20].mxu0 %vm280_vm3, %v1921_v2  ;;  %5283 = vrot.lane.b32.xlu1 %v6529_v15, %s6211_s11  ;;  %v1924_v27 = vpack.c.bf16 %v6687_v25, %v6678_v16  ;;  %v6700_v34 = vld [vmem:[#allocation2 + $0xa8] sm:$0xff]  ;;  %v936_v43 = vrot.slane %v6476_v53, 1  ;;  %v1107_v28 = vrot.slane %v6690_v36, 2  ;;  %v5297_v15 = vpack.i.bf16 %v1076_v13, %v1074_v11 }
 0x110   : > { %5293 = vrot.lane.b32.xlu0 %v6633_v30, %s6212_s12  ;;  %v1102_v42 = vrot.slane %v6700_v34, 2  ;;  %v6706_v56 = vld [vmem:[#allocation2 + $0xc8] sm:$0xff]  ;;  %v6708_v62 = vld [vmem:[#allocation2 + $0xd0] sm:$0x3]  ;;  %v5302_v50 = vpack.i.bf16 %v6684_v24, %v6681_v4  ;;  %4739 = vmatpush3.bf16.msra.mxu1 %v5992_v26  ;;  %v6726_v1 = vsel %vm890_vm6, %v937_v35, %v939_v32  ;;  %v1113_v11 = vrot.slane %v6462_v45, 2 }
 0x111   : > { %5146 = vmatprep.mubr.msk.bf16.mxu0 %vm280_vm3, %v1924_v27  ;;  %v6714_v51 = vld [vmem:[#allocation2 + $0xb0] sm:$0xff]  ;;  %v6716_v10 = vld [vmem:[#allocation2 + $0xb8] sm:$0x3]  ;;  %v6721_v22 = vsel %vm890_vm6, %v936_v43, %v937_v35  ;;  %v1108_v59 = vrot.slane %v6706_v56, 2  ;;  %9355 = vst [vmem:[#allocation12_spill] sm:$0xff] %v6726_v1  ;;  %v1115_v13 = vrot.slane %v817_v0, 2  ;;  %v6778_v30 = vpack.i.bf16 %v6665_v58, %v6662_v52 }
 0x112   : > { %v1103_v60 = vrot.slane %v6714_v51, 2  ;;  %v1105_v2 = vrot.slane %v6716_v10, 2  ;;  %9354 = vst [vmem:[#allocation11_spill] sm:$0xff] %v6721_v22  ;;  %v1110_v27 = vrot.slane %v6708_v62, 2  ;;  %v1112_v26 = vrot.slane %v6476_v53, 2 }
 0x113   : > { %5303 = vrot.lane.b32.xlu1 %v5302_v50, %s6212_s12  ;;  %v1109_v54 = vsel %vm556_vm1, %v1107_v28, %v1108_v59  ;;  %v5312_v35 = vpack.i.bf16 %v6726_v1, %v6721_v22  ;;  %v1116_v32 = vsel %vm556_vm1, %v1113_v11, %v1115_v13  ;;  %v5332_v1 = vpack.i.bf16 %v6532_v17, %v6508_v6 }
 0x114   : > { %5298 = vrot.lane.b32.xlu0 %v5297_v15, %s6212_s12  ;;  %v1104_v21 = vsel %vm556_vm1, %v1102_v42, %v1103_v60  ;;  %v1106_v43 = vsel %vm556_vm1, %v1103_v60, %v1105_v2  ;;  %v1111_v50 = vsel %vm556_vm1, %v1108_v59, %v1110_v27  ;;  %v1114_v0 = vsel %vm556_vm1, %v1112_v26, %v1113_v11  ;;  %v6744_v42 = vld [vmem:[#allocation2 + $0x108] sm:$0xff]  ;;  %v6746_v53 = vld [vmem:[#allocation2 + $0x110] sm:$0xff]  ;;  %v6748_v59 = vld [vmem:[#allocation2 + $0x118] sm:$0x3] }
 0x115   : > { %v1927_v55 = vpack.c.bf16 %v1106_v43, %v1104_v21  ;;  %v1930_v45 = vpack.c.bf16 %v1111_v50, %v1109_v54  ;;  %v5317_v28 = vpack.i.bf16 %v1116_v32, %v1114_v0  ;;  %v6750_v60 = vld [vmem:[#allocation2 + $0x120] sm:$0xff]  ;;  %v1933_v2 = vpack.c.bf16 %v1116_v32, %v1114_v0 }
 0x116   : > { %v1122_v11 = vrot.slane %v6744_v42, 2  ;;  %v1123_v13 = vrot.slane %v6746_v53, 2  ;;  %v1125_v27 = vrot.slane %v6748_v59, 2  ;;  %v1127_v26 = vrot.slane %v6750_v60, 2 }
 0x117   : > { %5147 = vmatmul.mubr.msk.bf16.gmra.mrb[24].mxu0 %vm280_vm3, %v1927_v55  ;;  %5308 = vrot.lane.b32.xlu1 %v5297_v15, %s6211_s11  ;;  %v6752_v55 = vld [vmem:[#allocation2 + $0x128] sm:$0xff]  ;;  %v6754_v15 = vld [vmem:[#allocation2 + $0x130] sm:$0x3]  ;;  %v6791_v52 = vpack.i.bf16 %v6746_v53, %v6744_v42 }
 0x118   : > { %5313 = vrot.lane.b32.xlu0 %v5312_v35, %s6213_s16  ;;  %5150 = vmatprep.mubr.msk.bf16.mxu0 %vm280_vm3, %v1930_v45  ;;  %v1128_v45 = vrot.slane %v6752_v55, 2  ;;  %v1130_v22 = vrot.slane %v6754_v15, 2  ;;  %v1124_v0 = vsel %vm556_vm1, %v1122_v11, %v1123_v13  ;;  %v1126_v32 = vsel %vm556_vm1, %v1123_v13, %v1125_v27 }
 0x119   : > { %v1939_v11 = vpack.c.bf16 %v1126_v32, %v1124_v0 }
 0x11a   : > { %v1129_v4 = vsel %vm556_vm1, %v1127_v26, %v1128_v45  ;;  %v1131_v24 = vsel %vm556_vm1, %v1128_v45, %v1130_v22  ;;  %v6787_v22 = vpack.i.bf16 %v1111_v50, %v1109_v54  ;;  %v906_v54 = vrot.slane %v6523_v12, 1 }
 0x11b   : > { %5323 = vrot.lane.b32.xlu1 %v5312_v35, %s6212_s12  ;;  %v1936_v35 = vpack.c.bf16 %v6600_v9, %v6597_v8  ;;  %v5342_v8 = vpack.i.bf16 %v6537_v19, %v6523_v12  ;;  %v911_v9 = vrot.slane %v6508_v6, 1  ;;  %v1942_v13 = vpack.c.bf16 %v1131_v24, %v1129_v4 }
 0x11c   : > { %5318 = vrot.lane.b32.xlu0 %v5317_v28, %s6212_s12  ;;  %v907_v50 = vrot.slane %v6537_v19, 1  ;;  %v693_v26 = vadd.f32 %v6406_v40, %v6486_v57  ;;  %v6821_v45 = vpack.i.bf16 %v1126_v32, %v1124_v0  ;;  %v5372_v57 = vpack.i.bf16 %v6561_v39, %v6558_v38 }
 0x11d   : > { %v6844_v38 = vpack.i.bf16 %v1131_v24, %v1129_v4  ;;  %v717_v39 = vadd.f32 %v6564_v41, %v6406_v40  ;;  %v709_v0 = vadd.f32 %v6406_v40, %v6580_v49 }
 0x11e   : > { %v747_v12 = vmax.f32 %v693_v26, 0.0 }
 0x11f   : > { %5151 = vmatmul.mubr.msk.bf16.gmra.mrb[28].mxu0 %vm280_vm3, %v1933_v2  ;;  %5328 = vrot.lane.b32.xlu1 %v5317_v28, %s6211_s11  ;;  %v912_v28 = vrot.slane %v6532_v17, 1  ;;  %v914_v2 = vrot.slane %v6534_v18, 1  ;;  %v701_v17 = vadd.f32 %v6465_v47, %v6406_v40  ;;  %v6803_v18 = vpack.i.bf16 %v1106_v43, %v1104_v21 }
 0x120   : > { %5333 = vrot.lane.b32.xlu0 %v5332_v1, %s6211_s11  ;;  %5154 = vmatprep.mubr.msk.bf16.mxu0 %vm280_vm3, %v1936_v35  ;;  %v909_v47 = vrot.slane %v6539_v20, 1  ;;  %v704_v21 = vadd.f32 %v6494_v63, %v6406_v40  ;;  %v696_v43 = vadd.f32 %v6406_v40, %v6510_v7  ;;  %780 = vst.msk [vmem:[#allocation2 + $0x139] sm:$0xff] %vm280_vm3, %v747_v12  ;;  %v9356_v20 = vmov 0.0  }
 0x121   : > { %v6794_v58 = vsel %vm890_vm6, %v911_v9, %v912_v28  ;;  %v6797_v6 = vsel %vm890_vm6, %v912_v28, %v914_v2  ;;  %v749_v27 = vmax.f32 %v701_v17, 0.0  ;;  %v6828_v63 = vsel %vm890_vm6, %v906_v54, %v907_v50  ;;  %327 = vst.msk [vmem:[#allocation3] sm:$0xff] %vm326_vm7, %v9356_v20  ;;  %328 = vst.msk [vmem:[#allocation3 + $0x8] sm:$0xff] %vm326_vm7, %v9356_v20 }
 0x122   : > { %v750_v19 = vmax.f32 %v704_v21, 0.0  ;;  %v748_v35 = vmax.f32 %v696_v43, 0.0  ;;  %v6831_v7 = vsel %vm890_vm6, %v907_v50, %v909_v47  ;;  %332 = vst.msk [vmem:[#allocation3 + $0x198] sm:$0xff] %vm326_vm7, %v9356_v20  ;;  %333 = vst.msk [vmem:[#allocation3 + $0x1a0] sm:$0xff] %vm326_vm7, %v9356_v20  ;;  %v712_v9 = vadd.f32 %v6406_v40, %v6602_v5 }
 0x123   : > { %5338 = vrot.lane.b32.xlu1 %v5332_v1, %s6213_s16  ;;  %v5367_v1 = vpack.i.bf16 %v6797_v6, %v6794_v58  ;;  %782 = vst.msk [vmem:[#allocation2 + $0x151] sm:$0xff] %vm280_vm3, %v749_v27  ;;  %v5387_v32 = vpack.i.bf16 %v6831_v7, %v6828_v63  ;;  %v753_v28 = vmax.f32 %v717_v39, 0.0  ;;  %v751_v24 = vmax.f32 %v709_v0, 0.0 }
 0x124   : > { %5343 = vrot.lane.b32.xlu0 %v5342_v8, %s6211_s11  ;;  %783 = vst.msk [vmem:[#allocation2 + $0x159] sm:$0xff] %vm280_vm3, %v750_v19  ;;  %781 = vst.msk [vmem:[#allocation2 + $0x141] sm:$0xff] %vm280_vm3, %v748_v35  ;;  %v752_v41 = vmax.f32 %v712_v9, 0.0  ;;  %v5397_v27 = vpack.i.bf16 %v6624_v29, %v6622_v3  ;;  %v921_v43 = vrot.slane %v6622_v3, 1  ;;  %v922_v35 = vrot.slane %v6624_v29, 1 }
 0x125   : > { %786 = vst.msk [vmem:[#allocation2 + $0x181] sm:$0xff] %vm280_vm3, %v753_v28  ;;  %784 = vst.msk [vmem:[#allocation2 + $0x169] sm:$0xff] %vm280_vm3, %v751_v24 }
 0x126   : > { %785 = vst.msk [vmem:[#allocation2 + $0x171] sm:$0xff] %vm280_vm3, %v752_v41  ;;  %v916_v41 = vrot.slane %v6611_v14, 1 }
 0x127   : > { %5155 = vmatmul.mubr.msk.bf16.gmra.mrb[32].mxu0 %vm280_vm3, %v1939_v11  ;;  %5348 = vrot.lane.b32.xlu1 %v5342_v8, %s6213_s16  ;;  %v720_v8 = vadd.f32 %v6590_v61, %v6406_v40  ;;  %v6861_v49 = vld [vmem:[#allocation2 + $0x138] sm:$0xff]  ;;  %v5392_v40 = vpack.i.bf16 %v6576_v48, %v6573_v46 }
 0x128   : > { %5353 = vrot.lane.b32.xlu0 %v6791_v52, %s6211_s11  ;;  %5158 = vmatprep.mubr.msk.bf16.mxu0 %vm280_vm3, %v1942_v13  ;;  %v1132_v13 = vrot.slane %v6861_v49, 2 }
 0x129   : > { %v754_v2 = vmax.f32 %v720_v8, 0.0 }
 0x12a   : > { %v6857_v4 = vld [vmem:[#allocation2 + $0x150] sm:$0xff] }
 0x12b   : > { %5368 = vrot.lane.b32.xlu1 %v5367_v1, %s6212_s12  ;;  %v1137_v11 = vrot.slane %v6857_v4, 2  ;;  %v6868_v61 = vld [vmem:[#allocation2 + $0x140] sm:$0xff]  ;;  %v6870_v5 = vld [vmem:[#allocation2 + $0x148] sm:$0x3]  ;;  %v6873_v17 = vld [vmem:[#allocation2 + $0x158] sm:$0xff]  ;;  %787 = vst.msk [vmem:[#allocation2 + $0x189] sm:$0xff] %vm280_vm3, %v754_v2 }
 0x12c   : > { %5358 = vrot.lane.b32.xlu0 %v5367_v1, %s6213_s16  ;;  %v1133_v54 = vrot.slane %v6868_v61, 2  ;;  %v1135_v1 = vrot.slane %v6870_v5, 2  ;;  %v6879_v50 = vld [vmem:[#allocation2 + $0x160] sm:$0x3]  ;;  %v1138_v46 = vrot.slane %v6873_v17, 2  ;;  %v6902_v3 = vld [vmem:[#allocation2 + $0x168] sm:$0xff] }
 0x12d   : > { %v1140_v48 = vrot.slane %v6879_v50, 2  ;;  %v836_v9 = vld [vmem:[#allocation2 + $0x180] sm:$0xff]  ;;  %v6906_v29 = vld [vmem:[#allocation2 + $0x170] sm:$0xff]  ;;  %v1142_v28 = vrot.slane %v6902_v3, 2 }
 0x12e   : > { %v1134_v26 = vsel %vm556_vm1, %v1132_v13, %v1133_v54  ;;  %v1136_v47 = vsel %vm556_vm1, %v1133_v54, %v1135_v1  ;;  %v1139_v21 = vsel %vm556_vm1, %v1137_v11, %v1138_v46  ;;  %v1379_v2 = vrot.slane %v836_v9, 2 }
 0x12f   : > { %5373 = vrot.lane.b32.xlu1 %v5372_v57, %s6211_s11  ;;  %v1945_v12 = vpack.c.bf16 %v1136_v47, %v1134_v26  ;;  %v1141_v19 = vsel %vm556_vm1, %v1138_v46, %v1140_v48  ;;  %v6894_v0 = vpack.i.bf16 %v1136_v47, %v1134_v26  ;;  %v1143_v11 = vrot.slane %v6906_v29, 2 }
 0x130   : > { %5363 = vrot.lane.b32.xlu0 %v5372_v57, %s6212_s12  ;;  %v924_v57 = vrot.slane %v6648_v44, 1  ;;  %v1948_v39 = vpack.c.bf16 %v1141_v19, %v1139_v21  ;;  %v6900_v8 = vpack.i.bf16 %v1141_v19, %v1139_v21  ;;  %v6908_v44 = vld [vmem:[#allocation2 + $0x178] sm:$0x3]  ;;  %v6915_v1 = vsel %vm890_vm6, %v921_v43, %v922_v35 }
 0x131   : > { %5159 = vmatmul.mubr.msk.bf16.gmra.mrb[36].mxu0 %vm280_vm3, %v1945_v12  ;;  %v1144_v26 = vsel %vm556_vm1, %v1142_v28, %v1143_v11  ;;  %v1342_v21 = vrot.slane %v836_v9, 1  ;;  %v919_v28 = vrot.slane %v6637_v33, 1  ;;  %v5432_v33 = vpack.i.bf16 %v6687_v25, %v6678_v16 }
 0x132   : > { %5162 = vmatprep.mubr.msk.bf16.mxu0 %vm280_vm3, %v1948_v39  ;;  %v837_v24 = vld [vmem:[#allocation2 + $0x188] sm:$0xff]  ;;  %v838_v13 = vld [vmem:[#allocation2 + $0x190] sm:$0x3]  ;;  %v6918_v46 = vsel %vm890_vm6, %v922_v35, %v924_v57  ;;  %v917_v39 = vrot.slane %v6635_v31, 1  ;;  %v5462_v16 = vpack.i.bf16 %v6706_v56, %v6690_v36  ;;  %v931_v25 = vrot.slane %v6690_v36, 1 }
 0x133   : > { %5388 = vrot.lane.b32.xlu1 %v5387_v32, %s6212_s12  ;;  %v1380_v54 = vrot.slane %v837_v24, 2  ;;  %v1382_v48 = vrot.slane %v838_v13, 2  ;;  %v1343_v19 = vrot.slane %v837_v24, 1  ;;  %v1345_v35 = vrot.slane %v838_v13, 1 }
 0x134   : > { %5378 = vrot.lane.b32.xlu0 %v5387_v32, %s6213_s16  ;;  %v5407_v32 = vpack.i.bf16 %v6635_v31, %v6611_v14  ;;  %v5427_v57 = vpack.i.bf16 %v6918_v46, %v6915_v1 }
 0x135   : > { %v6926_v47 = vsel %vm556_vm1, %v1379_v2, %v1380_v54  ;;  %v6930_v12 = vsel %vm556_vm1, %v1380_v54, %v1382_v48  ;;  %v934_v54 = vrot.slane %v6708_v62, 1  ;;  %v5472_v48 = vpack.i.bf16 %v6714_v51, %v6700_v34 }
 0x136   : > { %v1954_v2 = vpack.c.bf16 %v6930_v12, %v6926_v47  ;;  %v927_v62 = vrot.slane %v6714_v51, 1  ;;  %v946_v51 = vrot.slane %v6744_v42, 1 }
 0x137   : > { %5393 = vrot.lane.b32.xlu1 %v5392_v40, %s6211_s11 }
 0x138   : > { %5383 = vrot.lane.b32.xlu0 %v5392_v40, %s6212_s12  ;;  %v1145_v40 = vrot.slane %v6908_v44, 2 }
 0x13a   : > { %v1146_v14 = vsel %vm556_vm1, %v1143_v11, %v1145_v40  ;;  %v6955_v11 = vsel %vm890_vm6, %v916_v41, %v917_v39  ;;  %v6958_v40 = vsel %vm890_vm6, %v917_v39, %v919_v28  ;;  %v932_v41 = vrot.slane %v6706_v56, 1 }
 0x13b   : > { %5403 = vrot.lane.b32.xlu1 %v5397_v27, %s6213_s16  ;;  %v1951_v43 = vpack.c.bf16 %v1146_v14, %v1144_v26  ;;  %v5447_v13 = vpack.i.bf16 %v6958_v40, %v6955_v11  ;;  %v926_v56 = vrot.slane %v6700_v34, 1  ;;  %v952_v39 = vrot.slane %v6752_v55, 1 }
 0x13c   : > { %5398 = vrot.lane.b32.xlu0 %v5397_v27, %s6211_s11  ;;  %v6920_v27 = vpack.i.bf16 %v837_v24, %v836_v9  ;;  %v6939_v9 = vsel %vm890_vm6, %v1342_v21, %v1343_v19  ;;  %v6946_v24 = vpack.i.bf16 %v1146_v14, %v1144_v26  ;;  %v6980_v26 = vsel %vm890_vm6, %v931_v25, %v932_v41 }
 0x13d   : > { %9357 = vst [vmem:[#allocation13_spill] sm:$0xff] %v6939_v9  ;;  %5163 = vmatmul.mubr.msk.bf16.gmra.mrb[40].mxu0 %vm280_vm3, %v1951_v43  ;;  %v929_v14 = vrot.slane %v6716_v10, 1  ;;  %v6997_v21 = vsel %vm890_vm6, %v926_v56, %v927_v62  ;;  %v947_v10 = vrot.slane %v6746_v53, 1  ;;  %v954_v28 = vrot.slane %v6754_v15, 1 }
 0x13e   : > { %5166 = vmatprep.mubr.msk.bf16.mxu0 %vm280_vm3, %v1954_v2  ;;  %v959_v56 = vrot.slane %v6870_v5, 1 }
 0x13f   : > { %5413 = vrot.lane.b32.xlu1 %v5407_v32, %s6213_s16  ;;  %v7000_v43 = vsel %vm890_vm6, %v927_v62, %v929_v14  ;;  %v7051_v25 = vsel %vm890_vm6, %v952_v39, %v954_v28  ;;  %v5567_v14 = vpack.i.bf16 %v6868_v61, %v6861_v49  ;;  %v6158_v28 = vld [vmem:[#allocation2 + $0x8] sm:$0xff] }
 0x140   : > { %5408 = vrot.lane.b32.xlu0 %v5407_v32, %s6211_s11  ;;  %v6942_v32 = vsel %vm890_vm6, %v1343_v19, %v1345_v35  ;;  %v5497_v34 = vpack.i.bf16 %v7000_v43, %v6997_v21  ;;  %v949_v19 = vrot.slane %v6748_v59, 1  ;;  %v7014_v35 = vpop.permute.xlu1 %5233  ;;  %v951_v59 = vrot.slane %v6750_v60, 1  ;;  %9363 = vst [vmem:[#allocation17_spill] sm:$0xff] %v7051_v25 }
 0x141   : > { %9358 = vst [vmem:[#allocation14_spill] sm:$0xff] %v6942_v32 }
 0x143   : > { %5428 = vrot.lane.b32.xlu1 %v5427_v57, %s6212_s12 }
 0x144   : > { %5418 = vrot.lane.b32.xlu0 %v5427_v57, %s6213_s16  ;;  %v7020_v57 = vsel %vm890_vm6, %v947_v10, %v949_v19 }
 0x145   : > { %9360 = vst [vmem:[#allocation16_spill] sm:$0xff] %v7020_v57 }
 0x147   : > { %5433 = vrot.lane.b32.xlu1 %v5432_v33, %s6211_s11 }
 0x148   : > { %5423 = vrot.lane.b32.xlu0 %v5432_v33, %s6212_s12 }
 0x14b   : > { %5448 = vrot.lane.b32.xlu1 %v5447_v13, %s6212_s12 }
 0x14c   : > { %5438 = vrot.lane.b32.xlu0 %v5447_v13, %s6213_s16  ;;  %v5527_v13 = vpack.i.bf16 %v6752_v55, %v6750_v60 }
 0x14f   : > { %5453 = vrot.lane.b32.xlu1 %v6778_v30, %s6211_s11 }
 0x150   : > { %5443 = vrot.lane.b32.xlu0 %v6778_v30, %s6212_s12  ;;  %v6983_v30 = vsel %vm890_vm6, %v932_v41, %v934_v54 }
 0x151   : > { %v5487_v36 = vpack.i.bf16 %v6983_v30, %v6980_v26 }
 0x153   : > { %5463 = vrot.lane.b32.xlu1 %v5462_v16, %s6213_s16 }
 0x154   : > { %5458 = vrot.lane.b32.xlu0 %v5462_v16, %s6211_s11  ;;  %v9361_v16 = vld [vmem:[#allocation8_spill] sm:$0xff] }
 0x157   : > { %5473 = vrot.lane.b32.xlu1 %v5472_v48, %s6213_s16 }
 0x158   : > { %5468 = vrot.lane.b32.xlu0 %v5472_v48, %s6211_s11  ;;  %v956_v48 = vrot.slane %v6861_v49, 1 }
 0x15b   : > { %5488 = vrot.lane.b32.xlu1 %v5487_v36, %s6212_s12 }
 0x15c   : > { %5478 = vrot.lane.b32.xlu0 %v5487_v36, %s6213_s16  ;;  %v957_v36 = vrot.slane %v6868_v61, 1  ;;  %v6157_v61 = vld [vmem:[#allocation2] sm:$0xff] }
 0x15f   : > { %5493 = vrot.lane.b32.xlu1 %v6787_v22, %s6211_s11 }
 0x160   : > { %5483 = vrot.lane.b32.xlu0 %v6787_v22, %s6212_s12  ;;  %v7017_v22 = vsel %vm890_vm6, %v946_v51, %v947_v10  ;;  %v7078_v51 = vsel %vm890_vm6, %v956_v48, %v957_v36  ;;  %v7081_v10 = vsel %vm890_vm6, %v957_v36, %v959_v56 }
 0x161   : > { %9359 = vst [vmem:[#allocation15_spill] sm:$0xff] %v7017_v22  ;;  %v5507_v42 = vpack.i.bf16 %v7020_v57, %v7017_v22  ;;  %9364 = vst [vmem:[#allocation18_spill] sm:$0xff] %v7078_v51  ;;  %v5577_v49 = vpack.i.bf16 %v7081_v10, %v7078_v51  ;;  %v961_v51 = vrot.slane %v6857_v4, 1 }
 0x162   : > { %9365 = vst [vmem:[#allocation19_spill] sm:$0xff] %v7081_v10 }
 0x163   : > { %5513 = vrot.lane.b32.xlu1 %v6456_v37, %s6213_s16  ;;  %v5229_v37 = vpop.permute.xlu0 %5228 }
 0x164   : > { %5498 = vrot.lane.b32.xlu0 %v5497_v34, %s6213_s16  ;;  %v5231_v5 = vunpack.i.h.bf16 %v5229_v37 }
 0x167   : > { %5523 = vrot.lane.b32.xlu1 %v6629_v23, %s6212_s12 }
 0x168   : > { %5503 = vrot.lane.b32.xlu0 %v6803_v18, %s6212_s12 }
 0x16b   : > { %5533 = vrot.lane.b32.xlu1 %v5497_v34, %s6212_s12  ;;  %v5230_v34 = vunpack.i.l.bf16 %v5229_v37  ;;  %v1718_v37 = vsel %vm280_vm3, %v6158_v28, %v5231_v5 }
 0x16c   : > { %5508 = vrot.lane.b32.xlu0 %v5507_v42, %s6213_s16 }
 0x16d   : > { %v7028_v23 = vpop.permute.xlu1 %5238 }
 0x16e   : > { %v7030_v53 = vpop.permute.xlu0 %5248  ;;  %v5241_v5 = vunpack.i.h.bf16 %v7028_v23  ;;  %v5240_v28 = vunpack.i.l.bf16 %v7028_v23 }
 0x16f   : > { %5538 = vrot.lane.b32.xlu1 %v6803_v18, %s6211_s11  ;;  %v7048_v18 = vsel %vm890_vm6, %v951_v59, %v952_v39  ;;  %v5236_v39 = vunpack.i.h.bf16 %v7014_v35 }
 0x170   : > { %5518 = vrot.lane.b32.xlu0 %v6821_v45, %s6212_s12  ;;  %9362 = vst [vmem:[#allocation8_spill] sm:$0xff] %v7048_v18  ;;  %v5547_v54 = vpack.i.bf16 %v7051_v25, %v7048_v18  ;;  %v9367_v18 = vld [vmem:[#allocation9_spill] sm:$0xff] }
 0x171   : > { %v7039_v2 = vpop.permute.xlu1 %5243  ;;  %v1750_v10 = vsel %vm326_vm7, %v1718_v37, %v5236_v39 }
 0x172   : > { %v7041_v33 = vpop.permute.xlu0 %5258 }
 0x173   : > { %5543 = vrot.lane.b32.xlu1 %v9361_v16, %s6211_s11 }
 0x174   : > { %5528 = vrot.lane.b32.xlu0 %v5527_v13, %s6211_s11 }
 0x175   : > { %v5254_v15 = vpop.permute.xlu1 %5253 }
 0x176   : > { %v5269_v41 = vpop.permute.xlu0 %5268  ;;  %v5256_v36 = vunpack.i.h.bf16 %v5254_v15  ;;  %v5255_v56 = vunpack.i.l.bf16 %v5254_v15  ;;  %v5597_v15 = vpack.i.bf16 %v6873_v17, %v6857_v4 }
 0x177   : > { %5553 = vrot.lane.b32.xlu1 %v6791_v52, %s6213_s16 }
 0x178   : > { %5548 = vrot.lane.b32.xlu0 %v5547_v54, %s6213_s16  ;;  %v1783_v23 = vsel %vm1781_vm8, %v1750_v10, %v5256_v36 }
 0x179   : > { %v7059_v60 = vpop.permute.xlu1 %5263 }
 0x17a   : > { %v7061_v55 = vpop.permute.xlu0 %5273 }
 0x17b   : > { %5563 = vrot.lane.b32.xlu1 %v5507_v42, %s6212_s12  ;;  %v5235_v42 = vunpack.i.l.bf16 %v7014_v35  ;;  %v962_v35 = vrot.slane %v6873_v17, 1 }
 0x17c   : > { %5558 = vrot.lane.b32.xlu0 %v6844_v38, %s6212_s12 }
 0x17d   : > { %v7069_v62 = vpop.permute.xlu1 %5278 }
 0x17e   : > { %v7071_v52 = vpop.permute.xlu0 %5288 }
 0x17f   : > { %5573 = vrot.lane.b32.xlu1 %v6821_v45, %s6211_s11  ;;  %v1717_v45 = vsel %vm280_vm3, %v6157_v61, %v5230_v34 }
 0x180   : > { %5568 = vrot.lane.b32.xlu0 %v5567_v14, %s6211_s11  ;;  %v1749_v48 = vsel %vm326_vm7, %v1717_v45, %v5235_v42  ;;  %v5271_v42 = vunpack.i.h.bf16 %v5269_v41  ;;  %v9366_v45 = vld [vmem:[#allocation10_spill] sm:$0xff] }
 0x181   : > { %v7084_v19 = vpop.permute.xlu1 %5283  ;;  %v1782_v39 = vsel %vm1781_vm8, %v1749_v48, %v5255_v56 }
 0x182   : > { %v7087_v59 = vpop.permute.xlu0 %5293  ;;  %v1910_v36 = vpack.c.bf16 %v1783_v23, %v1782_v39 }
 0x183   : > { %5583 = vrot.lane.b32.xlu1 %v5527_v13, %s6213_s16  ;;  %v964_v13 = vrot.slane %v6879_v50, 1 }
 0x184   : > { %5578 = vrot.lane.b32.xlu0 %v5577_v49, %s6213_s16 }
 0x185   : > { %v7096_v16 = vpop.permute.xlu1 %5303  ;;  %v7130_v10 = vsel %vm890_vm6, %v962_v35, %v964_v13  ;;  %v5627_v13 = vpack.i.bf16 %v6906_v29, %v6902_v3 }
 0x186   : > { %v5299_v31 = vpop.permute.xlu0 %5298  ;;  %9369 = vst [vmem:[#allocation9_spill] sm:$0xff] %v7130_v10 }
 0x187   : > { %v5301_v34 = vunpack.i.h.bf16 %v5299_v31  ;;  %v5300_v61 = vunpack.i.l.bf16 %v5299_v31  ;;  %5593 = vrot.lane.b32.xlu1 %v5547_v54, %s6212_s12  ;;  %v5270_v31 = vunpack.i.l.bf16 %v5269_v41 }
 0x188   : > { %5588 = vrot.lane.b32.xlu0 %v6894_v0, %s6212_s12 }
 0x189   : > { %v1815_v54 = vsel %vm280_vm3, %v9366_v45, %v5301_v34  ;;  %v1814_v50 = vsel %vm280_vm3, %v9367_v18, %v5300_v61  ;;  %v7114_v25 = vpop.permute.xlu1 %5308  ;;  %v7127_v18 = vsel %vm890_vm6, %v961_v51, %v962_v35 }
 0x18a   : > { %v7118_v37 = vpop.permute.xlu0 %5313  ;;  %v1846_v22 = vsel %vm326_vm7, %v1814_v50, %v5240_v28  ;;  %v1847_v4 = vsel %vm326_vm7, %v1815_v54, %v5241_v5  ;;  %9368 = vst [vmem:[#allocation10_spill] sm:$0xff] %v7127_v18  ;;  %v967_v28 = vrot.slane %v6906_v29, 1  ;;  %v5657_v54 = vpack.i.bf16 %v6942_v32, %v6939_v9  ;;  %v6159_v9 = vld [vmem:[#allocation2 + $0x18] sm:$0xff] }
 0x18b   : > { %5603 = vrot.lane.b32.xlu1 %v6844_v38, %s6211_s11  ;;  %v1878_v17 = vsel %vm1781_vm8, %v1846_v22, %v5270_v31  ;;  %v1879_v41 = vsel %vm1781_vm8, %v1847_v4, %v5271_v42  ;;  %v5607_v38 = vpack.i.bf16 %v7130_v10, %v7127_v18  ;;  %v969_v42 = vrot.slane %v6908_v44, 1  ;;  %v7183_v44 = vld [vmem:[#allocation2 + $0x198] sm:$0xff]  ;;  %v841_v4 = vld [vmem:[#allocation2 + $0x1a8] sm:$0x3]  ;;  %v6160_v10 = vld [vmem:[#allocation2 + $0x20] sm:$0xff] }
 0x18c   : > { %5598 = vrot.lane.b32.xlu0 %v5597_v15, %s6211_s11  ;;  %v1911_v48 = vpack.c.bf16 %v1879_v41, %v1878_v17  ;;  %v5306_v50 = vunpack.i.h.bf16 %v7096_v16  ;;  %v5310_v23 = vunpack.i.l.bf16 %v7114_v25  ;;  %v5311_v17 = vunpack.i.h.bf16 %v7114_v25 }
 0x18d   : > { %v7133_v56 = vpop.permute.xlu1 %5323  ;;  %v7181_v29 = vsel %vm890_vm6, %v967_v28, %v969_v42  ;;  %v5275_v25 = vunpack.i.l.bf16 %v7061_v55  ;;  %v1582_v18 = vrot.slane %v841_v4, 1 }
 0x18e   : > { %9370 = vst [vmem:[#allocation20_spill] sm:$0xff] %v7133_v56  ;;  %v7135_v34 = vpop.permute.xlu0 %5318  ;;  %2189 = vmatprep.mubr.bf16.mxu1 %v1911_v48  ;;  %9374 = vst [vmem:[#allocation24_spill] sm:$0xff] %v7181_v29  ;;  %v1720_v57 = vsel %vm280_vm3, %v6160_v10, %v5306_v50  ;;  %v5246_v10 = vunpack.i.h.bf16 %v7039_v2  ;;  %v9375_v50 = vld [vmem:[#allocation5_spill] sm:$0xff] }
 0x18f   : > { %2190 = vmatmul.mubr.bf16.vlgmr.msra.gmra.mrb[16].mxu1 %v1910_v36  ;;  %5613 = vrot.lane.b32.xlu1 %v5567_v14, %s6213_s16  ;;  %v1680_v36 = vrot.slane %v7183_v44, 2 }
 0x190   : > { %5608 = vrot.lane.b32.xlu0 %v5607_v38, %s6213_s16 }
 0x191   : > { %v7141_v22 = vpop.permute.xlu1 %5328 }
 0x192   : > { %9371 = vst [vmem:[#allocation21_spill] sm:$0xff] %v7141_v22  ;;  %v7143_v51 = vpop.permute.xlu0 %5333 }
 0x193   : > { %5623 = vrot.lane.b32.xlu1 %v5577_v49, %s6212_s12  ;;  %v966_v49 = vrot.slane %v6902_v3, 1 }
 0x194   : > { %5618 = vrot.lane.b32.xlu0 %v6900_v8, %s6212_s12 }
 0x195   : > { %v7148_v61 = vpop.permute.xlu1 %5338  ;;  %v7178_v3 = vsel %vm890_vm6, %v966_v49, %v967_v28  ;;  %v5276_v49 = vunpack.i.h.bf16 %v7061_v55  ;;  %v5245_v55 = vunpack.i.l.bf16 %v7039_v2 }
 0x196   : > { %v7150_v35 = vpop.permute.xlu0 %5343  ;;  %9373 = vst [vmem:[#allocation23_spill] sm:$0xff] %v7178_v3 }
 0x197   : > { %5633 = vrot.lane.b32.xlu1 %v6894_v0, %s6211_s11  ;;  %v7169_v0 = vld [vmem:[#allocation2 + $0x1a0] sm:$0xff]  ;;  %v5346_v20 = vunpack.i.h.bf16 %v7150_v35 }
 0x198   : > { %5628 = vrot.lane.b32.xlu0 %v5627_v13, %s6211_s11  ;;  %v1580_v39 = vrot.slane %v7169_v0, 1  ;;  %v1681_v48 = vrot.slane %v7169_v0, 2 }
 0x199   : > { %v7157_v14 = vpop.permute.xlu1 %5348 }
 0x19a   : > { %v7159_v5 = vpop.permute.xlu0 %5353 }
 0x19b   : > { %9372 = vst [vmem:[#allocation22_spill] sm:$0xff] %v7159_v5  ;;  %5638 = vrot.lane.b32.xlu1 %v5597_v15, %s6213_s16  ;;  %v5305_v15 = vunpack.i.l.bf16 %v7096_v16  ;;  %v5667_v16 = vpack.i.bf16 %v7181_v29, %v7178_v3  ;;  %v5345_v3 = vunpack.i.l.bf16 %v7150_v35  ;;  %v9376_v5 = vld [vmem:[#allocation4_spill] sm:$0xff] }
 0x19c   : > { %5648 = vrot.lane.b32.xlu0 %v6920_v27, %s6211_s11 }
 0x19d   : > { %v7167_v31 = vpop.permute.xlu1 %5368  ;;  %v1719_v32 = vsel %vm280_vm3, %v6159_v9, %v5305_v15  ;;  %v1752_v9 = vsel %vm326_vm7, %v1720_v57, %v5311_v17 }
 0x19e   : > { %v7171_v45 = vpop.permute.xlu0 %5358  ;;  %v1751_v42 = vsel %vm326_vm7, %v1719_v32, %v5310_v23  ;;  %v1816_v32 = vsel %vm280_vm3, %v9376_v5, %v5275_v25 }
 0x19f   : > { %5643 = vrot.lane.b32.xlu1 %v5607_v38, %s6212_s12  ;;  %v1683_v38 = vrot.slane %v841_v4, 2  ;;  %v1817_v4 = vsel %vm280_vm3, %v9375_v50, %v5276_v49  ;;  %v1784_v57 = vsel %vm1781_vm8, %v1751_v42, %v5245_v55  ;;  %v1848_v17 = vsel %vm326_vm7, %v1816_v32, %v5345_v3 }
 0x1a0   : > { %5658 = vrot.lane.b32.xlu0 %v5657_v54, %s6213_s16  ;;  %v1579_v54 = vrot.slane %v7183_v44, 1  ;;  %v1849_v2 = vsel %vm326_vm7, %v1817_v4, %v5346_v20  ;;  %v1583_v49 = vsel %vm890_vm6, %v1580_v39, %v1582_v18  ;;  %v5281_v42 = vunpack.i.h.bf16 %v7069_v62 }
 0x1a1   : > { %v7190_v41 = vpop.permute.xlu1 %5373  ;;  %v1684_v15 = vsel %vm556_vm1, %v1681_v48, %v1683_v38  ;;  %v5280_v3 = vunpack.i.l.bf16 %v7069_v62  ;;  %v5286_v20 = vunpack.i.h.bf16 %v7084_v19  ;;  %v5351_v18 = vunpack.i.h.bf16 %v7157_v14 }
 0x1a2   : > { %v7195_v28 = vpop.permute.xlu0 %5363  ;;  %v9377_v62 = vpack.i.bf16 %v6930_v12, %v6926_v47 }
 0x1a3   : > { %5653 = vrot.lane.b32.xlu1 %v6900_v8, %s6211_s11  ;;  %v1682_v8 = vsel %vm556_vm1, %v1680_v36, %v1681_v48  ;;  %v1785_v48 = vsel %vm1781_vm8, %v1752_v9, %v5246_v10  ;;  %v5360_v10 = vunpack.i.l.bf16 %v7171_v45 }
 0x1a4   : > { %5668 = vrot.lane.b32.xlu0 %v5667_v16, %s6213_s16  ;;  %v1957_v22 = vpack.c.bf16 %v1684_v15, %v1682_v8  ;;  %v5336_v15 = vunpack.i.h.bf16 %v7143_v51 }
 0x1a5   : > { %v7212_v29 = vpop.permute.xlu1 %5388 }
 0x1a6   : > { %v5379_v35 = vpop.permute.xlu0 %5378  ;;  %5167 = vmatmul.mubr.msk.bf16.gmra.mrb[44].mxu0 %vm280_vm3, %v1957_v22  ;;  %v5285_v22 = vunpack.i.l.bf16 %v7084_v19  ;;  %v5361_v19 = vunpack.i.h.bf16 %v7171_v45 }
 0x1a7   : > { %v5381_v23 = vunpack.i.h.bf16 %v5379_v35  ;;  %v5380_v56 = vunpack.i.l.bf16 %v5379_v35  ;;  %5663 = vrot.lane.b32.xlu1 %v5627_v13, %s6213_s16  ;;  %v1581_v13 = vsel %vm890_vm6, %v1579_v54, %v1580_v39  ;;  %v5335_v54 = vunpack.i.l.bf16 %v7143_v51  ;;  %v6162_v35 = vld [vmem:[#allocation2 + $0x30] sm:$0xff] }
 0x1a8   : > { %5673 = vrot.lane.b32.xlu0 %v6946_v24, %s6212_s12  ;;  %v5350_v39 = vunpack.i.l.bf16 %v7157_v14  ;;  %v6161_v14 = vld [vmem:[#allocation2 + $0x38] sm:$0xff]  ;;  %v1721_v47 = vsel %vm280_vm3, %v6162_v35, %v5280_v3 }
 0x1a9   : > { %v7230_v36 = vpop.permute.xlu1 %5393  ;;  %v1880_v5 = vsel %vm1781_vm8, %v1848_v17, %v5380_v56  ;;  %v1881_v38 = vsel %vm1781_vm8, %v1849_v2, %v5381_v23  ;;  %v1913_v56 = vpack.c.bf16 %v1785_v48, %v1784_v57  ;;  %v1722_v4 = vsel %vm280_vm3, %v6161_v14, %v5281_v42 }
 0x1aa   : > { %v5384_v25 = vpop.permute.xlu0 %5383  ;;  %v1914_v55 = vpack.c.bf16 %v1881_v38, %v1880_v5  ;;  %v1753_v23 = vsel %vm326_vm7, %v1721_v47, %v5285_v22  ;;  %v1754_v57 = vsel %vm326_vm7, %v1722_v4, %v5286_v20  ;;  %v9378_v17 = vpack.i.bf16 %v7169_v0, %v7183_v44 }
 0x1ab   : > { %v5386_v9 = vunpack.i.h.bf16 %v5384_v25  ;;  %v5385_v8 = vunpack.i.l.bf16 %v5384_v25  ;;  %5693 = vrot.lane.b32.xlu1 %v5667_v16, %s6212_s12  ;;  %v5687_v48 = vpack.i.bf16 %v1583_v49, %v1581_v13  ;;  %v1786_v5 = vsel %vm1781_vm8, %v1753_v23, %v5350_v39 }
 0x1ac   : > { %5678 = vrot.lane.b32.xlu0 %v9377_v62, %s6212_s12  ;;  %2197 = vmatprep.mubr.bf16.mxu1 %v1914_v55  ;;  %v1787_v38 = vsel %vm1781_vm8, %v1754_v57, %v5351_v18  ;;  %v5391_v44 = vunpack.i.h.bf16 %v7212_v29  ;;  %v5390_v13 = vunpack.i.l.bf16 %v7212_v29  ;;  %v5396_v49 = vunpack.i.h.bf16 %v7230_v36 }
 0x1ad   : > { %v1819_v16 = vsel %vm280_vm3, %v6831_v7, %v5386_v9  ;;  %v1818_v51 = vsel %vm280_vm3, %v6828_v63, %v5385_v8  ;;  %2198 = vmatmul.mubr.bf16.gmra.mrb[20].mxu1 %v1913_v56  ;;  %v7255_v50 = vpop.permute.xlu1 %5403  ;;  %v1916_v3 = vpack.c.bf16 %v1787_v38, %v1786_v5  ;;  %v5395_v25 = vunpack.i.l.bf16 %v7230_v36  ;;  %v6163_v8 = vld [vmem:[#allocation2 + $0x50] sm:$0xff] }
 0x1ae   : > { %v7259_v12 = vpop.permute.xlu0 %5398  ;;  %v1850_v32 = vsel %vm326_vm7, %v1818_v51, %v5335_v54  ;;  %v1851_v45 = vsel %vm326_vm7, %v1819_v16, %v5336_v15  ;;  %v5365_v9 = vunpack.i.l.bf16 %v7195_v28  ;;  %v1724_v56 = vsel %vm280_vm3, %v6163_v8, %v5391_v44  ;;  %v6164_v15 = vld [vmem:[#allocation2 + $0x48] sm:$0xff] }
 0x1af   : > { %5698 = vrot.lane.b32.xlu1 %v6946_v24, %s6211_s11  ;;  %v1882_v63 = vsel %vm1781_vm8, %v1850_v32, %v5360_v10  ;;  %v1883_v7 = vsel %vm1781_vm8, %v1851_v45, %v5361_v19  ;;  %v1723_v54 = vsel %vm280_vm3, %v6164_v15, %v5390_v13  ;;  %v1756_v62 = vsel %vm326_vm7, %v1724_v56, %v5396_v49 }
 0x1b0   : > { %5683 = vrot.lane.b32.xlu0 %v9378_v17, %s6211_s11  ;;  %v1917_v2 = vpack.c.bf16 %v1883_v7, %v1882_v63  ;;  %v1755_v36 = vsel %vm326_vm7, %v1723_v54, %v5395_v25  ;;  %v5341_v19 = vunpack.i.h.bf16 %v7148_v61  ;;  %v5340_v10 = vunpack.i.l.bf16 %v7148_v61 }
 0x1b1   : > { %v7275_v24 = vpop.permute.xlu1 %5413  ;;  %v1820_v51 = vsel %vm280_vm3, %v6794_v58, %v5365_v9  ;;  %v5370_v23 = vunpack.i.l.bf16 %v7167_v31  ;;  %v5376_v58 = vunpack.i.h.bf16 %v7190_v41  ;;  %v6165_v9 = vld [vmem:[#allocation2 + $0x68] sm:$0xff] }
 0x1b2   : > { %v5409_v42 = vpop.permute.xlu0 %5408  ;;  %2205 = vmatprep.mubr.bf16.mxu1 %v1917_v2  ;;  %v1788_v32 = vsel %vm1781_vm8, %v1755_v36, %v5340_v10  ;;  %v1789_v45 = vsel %vm1781_vm8, %v1756_v62, %v5341_v19  ;;  %v5375_v2 = vunpack.i.l.bf16 %v7190_v41  ;;  %v5416_v44 = vunpack.i.h.bf16 %v7275_v24 }
 0x1b3   : > { %5703 = vrot.lane.b32.xlu1 %v6920_v27, %s6213_s16  ;;  %v5366_v27 = vunpack.i.h.bf16 %v7195_v28  ;;  %v5411_v18 = vunpack.i.h.bf16 %v5409_v42  ;;  %v5410_v29 = vunpack.i.l.bf16 %v5409_v42  ;;  %v1919_v38 = vpack.c.bf16 %v1789_v45, %v1788_v32 }
 0x1b4   : > { %5688 = vrot.lane.b32.xlu0 %v5687_v48, %s6213_s16  ;;  %v5401_v42 = vunpack.i.h.bf16 %v7259_v12  ;;  %v5415_v13 = vunpack.i.l.bf16 %v7275_v24  ;;  %v5261_v32 = vunpack.i.h.bf16 %v7041_v33 }
 0x1b5   : > { %2206 = vmatmul.mubr.bf16.gmra.mrb[24].mxu1 %v1916_v3  ;;  %v7280_v20 = vpop.permute.xlu1 %5428  ;;  %v1821_v28 = vsel %vm280_vm3, %v6797_v6, %v5366_v27  ;;  %v1852_v35 = vsel %vm326_vm7, %v1820_v51, %v5410_v29  ;;  %v5371_v6 = vunpack.i.h.bf16 %v7167_v31  ;;  %v5400_v3 = vunpack.i.l.bf16 %v7259_v12  ;;  %v6166_v12 = vld [vmem:[#allocation2 + $0x60] sm:$0xff] }
 0x1b6   : > { %v5419_v0 = vpop.permute.xlu0 %5418  ;;  %v1853_v47 = vsel %vm326_vm7, %v1821_v28, %v5411_v18  ;;  %v1725_v56 = vsel %vm280_vm3, %v6166_v12, %v5370_v23 }
 0x1b7   : > { %v5421_v49 = vunpack.i.h.bf16 %v5419_v0  ;;  %v5420_v31 = vunpack.i.l.bf16 %v5419_v0  ;;  %v1726_v8 = vsel %vm280_vm3, %v6165_v9, %v5371_v6  ;;  %v6167_v6 = vld [vmem:[#allocation2 + $0x80] sm:$0xff] }
 0x1b8   : > { %v1758_v18 = vsel %vm326_vm7, %v1726_v8, %v5376_v58  ;;  %v6168_v58 = vld [vmem:[#allocation2 + $0x78] sm:$0xff] }
 0x1b9   : > { %v7286_v55 = vpop.permute.xlu1 %5433  ;;  %v1791_v62 = vsel %vm1781_vm8, %v1758_v18, %v5416_v44  ;;  %v5321_v44 = vunpack.i.h.bf16 %v7135_v34  ;;  %v6170_v18 = vld [vmem:[#allocation2 + $0x90] sm:$0xff] }
 0x1ba   : > { %v7288_v22 = vpop.permute.xlu0 %5423 }
 0x1bd   : > { %v7294_v39 = vpop.permute.xlu1 %5448 }
 0x1be   : > { %v5439_v16 = vpop.permute.xlu0 %5438  ;;  %v5451_v51 = vunpack.i.h.bf16 %v7294_v39 }
 0x1bf   : > { %v5441_v14 = vunpack.i.h.bf16 %v5439_v16  ;;  %v5440_v4 = vunpack.i.l.bf16 %v5439_v16 }
 0x1c0   : > { %v1728_v23 = vsel %vm280_vm3, %v6167_v6, %v5451_v51 }
 0x1c1   : > { %v5454_v63 = vpop.permute.xlu1 %5453  ;;  %v1884_v61 = vsel %vm1781_vm8, %v1852_v35, %v5440_v4  ;;  %v1885_v7 = vsel %vm1781_vm8, %v1853_v47, %v5441_v14  ;;  %v5450_v14 = vunpack.i.l.bf16 %v7294_v39  ;;  %v5260_v39 = vunpack.i.l.bf16 %v7041_v33 }
 0x1c2   : > { %v5444_v57 = vpop.permute.xlu0 %5443  ;;  %v1920_v17 = vpack.c.bf16 %v1885_v7, %v1884_v61  ;;  %v5456_v35 = vunpack.i.h.bf16 %v5454_v63  ;;  %v5455_v47 = vunpack.i.l.bf16 %v5454_v63  ;;  %v5426_v61 = vunpack.i.h.bf16 %v7288_v22 }
 0x1c3   : > { %v5446_v48 = vunpack.i.h.bf16 %v5444_v57  ;;  %v5445_v5 = vunpack.i.l.bf16 %v5444_v57  ;;  %v5425_v7 = vunpack.i.l.bf16 %v7288_v22  ;;  %v1727_v57 = vsel %vm280_vm3, %v6168_v58, %v5450_v14 }
 0x1c4   : > { %2213 = vmatprep.mubr.bf16.mxu1 %v1920_v17  ;;  %v1759_v63 = vsel %vm326_vm7, %v1727_v57, %v5455_v47 }
 0x1c5   : > { %v1823_v25 = vsel %vm280_vm3, %v6958_v40, %v5446_v48  ;;  %v1822_v41 = vsel %vm280_vm3, %v6955_v11, %v5445_v5  ;;  %2214 = vmatmul.mubr.bf16.gmra.mrb[28].mxu1 %v1919_v38  ;;  %v7322_v27 = vpop.permute.xlu1 %5463  ;;  %v1757_v11 = vsel %vm326_vm7, %v1725_v56, %v5375_v2  ;;  %v5316_v2 = vunpack.i.h.bf16 %v7118_v37 }
 0x1c6   : > { %v7326_v15 = vpop.permute.xlu0 %5458  ;;  %v1854_v24 = vsel %vm326_vm7, %v1822_v41, %v5400_v3  ;;  %v1855_v0 = vsel %vm326_vm7, %v1823_v25, %v5401_v42  ;;  %v1790_v36 = vsel %vm1781_vm8, %v1757_v11, %v5415_v13  ;;  %v1760_v48 = vsel %vm326_vm7, %v1728_v23, %v5456_v35  ;;  %v6169_v11 = vld [vmem:[#allocation2 + $0x98] sm:$0xff] }
 0x1c7   : > { %v1886_v40 = vsel %vm1781_vm8, %v1854_v24, %v5420_v31  ;;  %v1887_v54 = vsel %vm1781_vm8, %v1855_v0, %v5421_v49  ;;  %v1922_v16 = vpack.c.bf16 %v1791_v62, %v1790_v36  ;;  %v5406_v5 = vunpack.i.h.bf16 %v7255_v50 }
 0x1c8   : > { %v1923_v29 = vpack.c.bf16 %v1887_v54, %v1886_v40  ;;  %v5405_v38 = vunpack.i.l.bf16 %v7255_v50  ;;  %v5315_v3 = vunpack.i.l.bf16 %v7118_v37  ;;  %v5431_v13 = vunpack.i.h.bf16 %v7280_v20 }
 0x1c9   : > { %v7336_v19 = vpop.permute.xlu1 %5473  ;;  %v5430_v49 = vunpack.i.l.bf16 %v7280_v20  ;;  %v1825_v25 = vsel %vm280_vm3, %v6918_v46, %v5426_v61  ;;  %v1824_v41 = vsel %vm280_vm3, %v6915_v1, %v5425_v7  ;;  %v1793_v8 = vsel %vm1781_vm8, %v1760_v48, %v5406_v5 }
 0x1ca   : > { %v5469_v10 = vpop.permute.xlu0 %5468  ;;  %2221 = vmatprep.mubr.bf16.mxu1 %v1923_v29  ;;  %v1792_v50 = vsel %vm1781_vm8, %v1759_v63, %v5405_v38  ;;  %v5320_v40 = vunpack.i.l.bf16 %v7135_v34  ;;  %v5435_v20 = vunpack.i.l.bf16 %v7286_v55  ;;  %v1730_v1 = vsel %vm280_vm3, %v6169_v11, %v5431_v13  ;;  %v9379_v11 = vld [vmem:[#allocation12_spill] sm:$0xff] }
 0x1cb   : > { %v5471_v22 = vunpack.i.h.bf16 %v5469_v10  ;;  %v5470_v42 = vunpack.i.l.bf16 %v5469_v10  ;;  %v1729_v29 = vsel %vm280_vm3, %v6170_v18, %v5430_v49  ;;  %v5475_v51 = vunpack.i.l.bf16 %v7336_v19  ;;  %v9380_v18 = vld [vmem:[#allocation11_spill] sm:$0xff] }
 0x1cc   : > { %v1925_v47 = vpack.c.bf16 %v1793_v8, %v1792_v50  ;;  %v5476_v63 = vunpack.i.h.bf16 %v7336_v19  ;;  %v1761_v48 = vsel %vm326_vm7, %v1729_v29, %v5435_v20 }
 0x1cd   : > { %2222 = vmatmul.mubr.bf16.gmra.mrb[32].mxu1 %v1922_v16  ;;  %v7338_v28 = vpop.permute.xlu1 %5488  ;;  %v1856_v54 = vsel %vm326_vm7, %v1824_v41, %v5470_v42  ;;  %v1857_v46 = vsel %vm326_vm7, %v1825_v25, %v5471_v22  ;;  %v5436_v16 = vunpack.i.h.bf16 %v7286_v55  ;;  %v5460_v55 = vunpack.i.l.bf16 %v7326_v15 }
 0x1ce   : > { %v7342_v4 = vpop.permute.xlu0 %5478 }
 0x1cf   : > { %v5480_v38 = vunpack.i.l.bf16 %v7342_v4  ;;  %v1762_v41 = vsel %vm326_vm7, %v1730_v1, %v5436_v16  ;;  %v1831_v1 = vsel %vm280_vm3, %v9379_v11, %v5321_v44  ;;  %v6172_v16 = vld [vmem:[#allocation2 + $0xa8] sm:$0xff] }
 0x1d1   : > { %v7345_v45 = vpop.permute.xlu1 %5493 }
 0x1d2   : > { %v5484_v17 = vpop.permute.xlu0 %5483 }
 0x1d3   : > { %v5486_v12 = vunpack.i.h.bf16 %v5484_v17  ;;  %v5485_v56 = vunpack.i.l.bf16 %v5484_v17  ;;  %v5461_v17 = vunpack.i.h.bf16 %v7326_v15 }
 0x1d5   : > { %v7361_v31 = vpop.permute.xlu1 %5513  ;;  %v1829_v7 = vsel %vm280_vm3, %v6983_v30, %v5486_v12  ;;  %v1828_v6 = vsel %vm280_vm3, %v6980_v26, %v5485_v56  ;;  %v5481_v30 = vunpack.i.h.bf16 %v7342_v4  ;;  %v1795_v56 = vsel %vm1781_vm8, %v1762_v41, %v5476_v63 }
 0x1d6   : > { %v5499_v9 = vpop.permute.xlu0 %5498  ;;  %v1860_v25 = vsel %vm326_vm7, %v1828_v6, %v5260_v39  ;;  %v1861_v4 = vsel %vm326_vm7, %v1829_v7, %v5261_v32  ;;  %v5465_v7 = vunpack.i.l.bf16 %v7322_v27  ;;  %v5491_v63 = vunpack.i.h.bf16 %v7338_v28 }
 0x1d7   : > { %v5501_v24 = vunpack.i.h.bf16 %v5499_v9  ;;  %v5500_v0 = vunpack.i.l.bf16 %v5499_v9  ;;  %v1794_v9 = vsel %vm1781_vm8, %v1761_v48, %v5475_v51  ;;  %v1892_v33 = vsel %vm1781_vm8, %v1860_v25, %v5315_v3 }
 0x1d8   : > { %v1893_v32 = vsel %vm1781_vm8, %v1861_v4, %v5316_v2  ;;  %v1830_v3 = vsel %vm280_vm3, %v9380_v18, %v5320_v40  ;;  %v1928_v37 = vpack.c.bf16 %v1795_v56, %v1794_v9  ;;  %v5250_v2 = vunpack.i.l.bf16 %v7030_v53  ;;  %v9382_v9 = vld [vmem:[#allocation22_spill] sm:$0xff] }
 0x1d9   : > { %v7375_v36 = vpop.permute.xlu1 %5523  ;;  %v1888_v62 = vsel %vm1781_vm8, %v1856_v54, %v5500_v0  ;;  %v1889_v10 = vsel %vm1781_vm8, %v1857_v46, %v5501_v24  ;;  %v5251_v46 = vunpack.i.h.bf16 %v7030_v53  ;;  %v5466_v53 = vunpack.i.h.bf16 %v7322_v27 }
 0x1da   : > { %v5504_v14 = vpop.permute.xlu0 %5503  ;;  %v1926_v35 = vpack.c.bf16 %v1889_v10, %v1888_v62  ;;  %v7381_v61 = vpop.f32.mrb[16].mxu0  ;;  %v6171_v62 = vld [vmem:[#allocation2 + $0xb0] sm:$0xff]  ;;  %v5490_v48 = vunpack.i.l.bf16 %v7338_v28  ;;  %v5496_v27 = vunpack.i.h.bf16 %v7345_v45  ;;  %v5296_v28 = vunpack.i.h.bf16 %v7087_v59 }
 0x1db   : > { %v5506_v23 = vunpack.i.h.bf16 %v5504_v14  ;;  %v5505_v58 = vunpack.i.l.bf16 %v5504_v14  ;;  %v7387_v57 = vpop.f32.mrb[17].mxu0  ;;  %v1932_v14 = vpack.c.bf16 %v1893_v32, %v1892_v33  ;;  %v5295_v25 = vunpack.i.l.bf16 %v7087_v59  ;;  %v6174_v33 = vld [vmem:[#allocation2 + $0xc0] sm:$0xff] }
 0x1dc   : > { %2229 = vmatprep.mubr.bf16.mxu1 %v1926_v35  ;;  %v7393_v5 = vpop.f32.mrb[18].mxu0  ;;  %v5356_v56 = vunpack.i.h.bf16 %v9382_v9  ;;  %v1733_v59 = vsel %vm280_vm3, %v6174_v33, %v5490_v48  ;;  %v6176_v48 = vld [vmem:[#allocation2 + $0xd8] sm:$0xff] }
 0x1dd   : > { %v1827_v26 = vsel %vm280_vm3, %v7000_v43, %v5506_v23  ;;  %v1826_v22 = vsel %vm280_vm3, %v6997_v21, %v5505_v58  ;;  %2230 = vmatmul.mubr.bf16.gmra.mrb[36].mxu1 %v1925_v47  ;;  %v5534_v42 = vpop.permute.xlu1 %5533  ;;  %v7401_v15 = vpop.f32.mrb[19].mxu0  ;;  %v1862_v23 = vsel %vm326_vm7, %v1830_v3, %v5250_v2  ;;  %v1863_v58 = vsel %vm326_vm7, %v1831_v1, %v5251_v46 }
 0x1de   : > { %v7403_v19 = vpop.permute.xlu0 %5508  ;;  %v1858_v13 = vsel %vm326_vm7, %v1826_v22, %v5460_v55  ;;  %v1859_v49 = vsel %vm326_vm7, %v1827_v26, %v5461_v17  ;;  %v5536_v50 = vunpack.i.h.bf16 %v5534_v42  ;;  %v5535_v8 = vunpack.i.l.bf16 %v5534_v42 }
 0x1df   : > { %v1890_v43 = vsel %vm1781_vm8, %v1858_v13, %v5480_v38  ;;  %v1891_v21 = vsel %vm1781_vm8, %v1859_v49, %v5481_v30  ;;  %v5291_v17 = vunpack.i.h.bf16 %v7071_v52  ;;  %v5290_v55 = vunpack.i.l.bf16 %v7071_v52 }
 0x1e0   : > { %v1929_v12 = vpack.c.bf16 %v1891_v21, %v1890_v43  ;;  %v1732_v10 = vsel %vm280_vm3, %v6171_v62, %v5536_v50  ;;  %v1731_v51 = vsel %vm280_vm3, %v6172_v16, %v5535_v8  ;;  %v5495_v26 = vunpack.i.l.bf16 %v7345_v45  ;;  %v9381_v21 = vld [vmem:[#allocation20_spill] sm:$0xff]  ;;  %v9384_v62 = vld [vmem:[#allocation21_spill] sm:$0xff] }
 0x1e1   : > { %v5539_v24 = vpop.permute.xlu1 %5538  ;;  %v1894_v42 = vsel %vm1781_vm8, %v1862_v23, %v5290_v55  ;;  %v1895_v13 = vsel %vm1781_vm8, %v1863_v58, %v5291_v17  ;;  %v5266_v52 = vunpack.i.h.bf16 %v7059_v60  ;;  %v5265_v49 = vunpack.i.l.bf16 %v7059_v60  ;;  %v6173_v60 = vld [vmem:[#allocation2 + $0xc8] sm:$0xff] }
 0x1e2   : > { %v7422_v39 = vpop.permute.xlu0 %5518  ;;  %v5541_v0 = vunpack.i.h.bf16 %v5539_v24  ;;  %v5540_v20 = vunpack.i.l.bf16 %v5539_v24  ;;  %2237 = vmatprep.mubr.bf16.mxu1 %v1929_v12  ;;  %v7424_v54 = vpop.f32.mrb[20].mxu0  ;;  %v5326_v45 = vunpack.i.h.bf16 %v9381_v21  ;;  %v5325_v41 = vunpack.i.l.bf16 %v9381_v21 }
 0x1e3   : > { %v7433_v29 = vpop.f32.mrb[21].mxu0  ;;  %v5355_v50 = vunpack.i.l.bf16 %v9382_v9  ;;  %v1734_v24 = vsel %vm280_vm3, %v6173_v60, %v5491_v63  ;;  %v1935_v32 = vpack.c.bf16 %v1895_v13, %v1894_v42  ;;  %v5511_v11 = vunpack.i.h.bf16 %v7403_v19 }
 0x1e4   : > { %v7438_v35 = vpop.f32.mrb[22].mxu0  ;;  %v1763_v34 = vsel %vm326_vm7, %v1731_v51, %v5540_v20  ;;  %v1764_v44 = vsel %vm326_vm7, %v1732_v10, %v5541_v0  ;;  %v1765_v20 = vsel %vm326_vm7, %v1733_v59, %v5495_v26  ;;  %v1766_v46 = vsel %vm326_vm7, %v1734_v24, %v5496_v27 }
 0x1e5   : > { %2238 = vmatmul.mubr.bf16.gmra.mrb[40].mxu1 %v1928_v37  ;;  %v7442_v40 = vpop.permute.xlu1 %5543  ;;  %v7444_v47 = vpop.f32.mrb[23].mxu0  ;;  %v1796_v30 = vsel %vm1781_vm8, %v1763_v34, %v5465_v7  ;;  %v1797_v38 = vsel %vm1781_vm8, %v1764_v44, %v5466_v53  ;;  %v5510_v1 = vunpack.i.l.bf16 %v7403_v19  ;;  %v9383_v37 = vld [vmem:[#allocation6_spill] sm:$0xff]  ;;  %v5331_v10 = vunpack.i.h.bf16 %v9384_v62 }
 0x1e6   : > { %v7448_v6 = vpop.permute.xlu0 %5528  ;;  %2245 = vmatprep.mubr.bf16.mxu1 %v1932_v14  ;;  %v1931_v8 = vpack.c.bf16 %v1797_v38, %v1796_v30  ;;  %v1832_v2 = vsel %vm280_vm3, %v9383_v37, %v5295_v25  ;;  %v5330_v16 = vunpack.i.l.bf16 %v9384_v62  ;;  %v9385_v14 = vld [vmem:[#allocation7_spill] sm:$0xff]  ;;  %v5515_v44 = vunpack.i.l.bf16 %v7361_v31 }
 0x1e7   : > { %v1833_v34 = vsel %vm280_vm3, %v9385_v14, %v5296_v28  ;;  %v1864_v53 = vsel %vm326_vm7, %v1832_v2, %v5355_v50  ;;  %v9386_v7 = vmov 0.0   ;;  %v5516_v23 = vunpack.i.h.bf16 %v7361_v31  ;;  %v6175_v31 = vld [vmem:[#allocation2 + $0xe0] sm:$0xff] }
 0x1e8   : > { %330 = vst.msk [vmem:[#allocation3 + $0x10] sm:$0x3] %vm329_vm9, %v9386_v7  ;;  %334 = vst.msk [vmem:[#allocation3 + $0x1a8] sm:$0x3] %vm329_vm9, %v9386_v7  ;;  %v7504_v58 = vsel %vm1781_vm8, %v1765_v20, %v5265_v49  ;;  %v1799_v17 = vsel %vm1781_vm8, %v1766_v46, %v5266_v52  ;;  %v1865_v55 = vsel %vm326_vm7, %v1833_v34, %v5356_v56  ;;  %v5521_v28 = vunpack.i.h.bf16 %v7422_v39  ;;  %v9387_v46 = vld [vmem:[#allocation16_spill] sm:$0xff] }
 0x1e9   : > { %v7460_v22 = vpop.permute.xlu1 %5553  ;;  %336 = vst.msk [vmem:[#allocation3] sm:$0x1] %vm335_vm10, %v9386_v7  ;;  %354 = vst.msk [vmem:[#allocation3 + $0x11] sm:$0x1] %vm335_vm10, %v9386_v7  ;;  %v1736_v63 = vsel %vm280_vm3, %v6175_v31, %v5326_v45  ;;  %v1735_v30 = vsel %vm280_vm3, %v6176_v48, %v5325_v41  ;;  %v1896_v27 = vsel %vm1781_vm8, %v1864_v53, %v5510_v1  ;;  %v5520_v25 = vunpack.i.l.bf16 %v7422_v39  ;;  %v2545_v41 = vld [vmem:[#allocation3 + $0x8] sm:$0xff] }
 0x1ea   : > { %v7468_v4 = vpop.permute.xlu0 %5548  ;;  %v7470_v43 = vpop.f32.mrb[24].mxu0  ;;  %337 = vst.msk [vmem:[#allocation3 + $0x18] sm:$0x1] %vm335_vm10, %v9386_v7  ;;  %338 = vst.msk [vmem:[#allocation3 + $0x30] sm:$0x1] %vm335_vm10, %v9386_v7  ;;  %v1897_v26 = vsel %vm1781_vm8, %v1865_v55, %v5511_v11  ;;  %v1767_v52 = vsel %vm326_vm7, %v1735_v30, %v5330_v16  ;;  %v1768_v49 = vsel %vm326_vm7, %v1736_v63, %v5331_v10  ;;  %v5531_v9 = vunpack.i.h.bf16 %v7448_v6  ;;  %v9388_v11 = vld [vmem:[#allocation15_spill] sm:$0xff] }
 0x1eb   : > { %v7475_v12 = vpop.f32.mrb[25].mxu0  ;;  %339 = vst.msk [vmem:[#allocation3 + $0x48] sm:$0x1] %vm335_vm10, %v9386_v7  ;;  %340 = vst.msk [vmem:[#allocation3 + $0x60] sm:$0x1] %vm335_vm10, %v9386_v7  ;;  %v1934_v45 = vpack.c.bf16 %v1799_v17, %v7504_v58  ;;  %v1800_v19 = vsel %vm1781_vm8, %v1767_v52, %v5515_v44  ;;  %v5530_v50 = vunpack.i.l.bf16 %v7448_v6  ;;  %v1938_v56 = vpack.c.bf16 %v1897_v26, %v1896_v27 }
 0x1ec   : > { %v7480_v0 = vpop.f32.mrb[26].mxu0  ;;  %341 = vst.msk [vmem:[#allocation3 + $0x78] sm:$0x1] %vm335_vm10, %v9386_v7  ;;  %342 = vst.msk [vmem:[#allocation3 + $0x90] sm:$0x1] %vm335_vm10, %v9386_v7  ;;  %v1801_v60 = vsel %vm1781_vm8, %v1768_v49, %v5516_v23  ;;  %v5551_v24 = vunpack.i.h.bf16 %v7468_v4  ;;  %v5550_v39 = vunpack.i.l.bf16 %v7468_v4  ;;  %v2647_v20 = vrot.slane %v2545_v41, 1 }
 0x1ed   : > { %2246 = vmatmul.mubr.bf16.gmra.mrb[44].mxu1 %v1931_v8  ;;  %v7486_v18 = vpop.permute.xlu1 %5563  ;;  %v7488_v3 = vpop.f32.mrb[27].mxu0  ;;  %343 = vst.msk [vmem:[#allocation3 + $0xa8] sm:$0x1] %vm335_vm10, %v9386_v7  ;;  %344 = vst.msk [vmem:[#allocation3 + $0xc0] sm:$0x1] %vm335_vm10, %v9386_v7  ;;  %v1835_v6 = vsel %vm280_vm3, %v9387_v46, %v5521_v28  ;;  %v1834_v1 = vsel %vm280_vm3, %v9388_v11, %v5520_v25  ;;  %v1937_v37 = vpack.c.bf16 %v1801_v60, %v1800_v19  ;;  %v6177_v19 = vld [vmem:[#allocation2 + $0xf8] sm:$0xff] }
 0x1ee   : > { %v7494_v51 = vpop.permute.xlu0 %5558  ;;  %2253 = vmatprep.mubr.bf16.mxu1 %v1935_v32  ;;  %345 = vst.msk [vmem:[#allocation3 + $0xd8] sm:$0x1] %vm335_vm10, %v9386_v7  ;;  %346 = vst.msk [vmem:[#allocation3 + $0xf0] sm:$0x1] %vm335_vm10, %v9386_v7  ;;  %v1866_v10 = vsel %vm326_vm7, %v1834_v1, %v5530_v50  ;;  %v1867_v4 = vsel %vm326_vm7, %v1835_v6, %v5531_v9  ;;  %v5526_v34 = vunpack.i.h.bf16 %v7375_v36  ;;  %v5525_v44 = vunpack.i.l.bf16 %v7375_v36  ;;  %v9390_v6 = vld [vmem:[#allocation8_spill] sm:$0xff] }
 0x1ef   : > { %347 = vst.msk [vmem:[#allocation3 + $0x108] sm:$0x1] %vm335_vm10, %v9386_v7  ;;  %348 = vst.msk [vmem:[#allocation3 + $0x120] sm:$0x1] %vm335_vm10, %v9386_v7  ;;  %v1899_v23 = vsel %vm1781_vm8, %v1867_v4, %v5551_v24  ;;  %v5546_v58 = vunpack.i.h.bf16 %v7442_v40  ;;  %v5545_v17 = vunpack.i.l.bf16 %v7442_v40  ;;  %v5556_v55 = vunpack.i.h.bf16 %v7460_v22 }
 0x1f0   : > { %349 = vst.msk [vmem:[#allocation3 + $0x138] sm:$0x1] %vm335_vm10, %v9386_v7  ;;  %350 = vst.msk [vmem:[#allocation3 + $0x150] sm:$0x1] %vm335_vm10, %v9386_v7  ;;  %v2544_v2 = vld [vmem:[#allocation3] sm:$0xff]  ;;  %v5555_v36 = vunpack.i.l.bf16 %v7460_v22  ;;  %v5561_v30 = vunpack.i.h.bf16 %v7494_v51  ;;  %v5560_v27 = vunpack.i.l.bf16 %v7494_v51  ;;  %v1738_v41 = vsel %vm280_vm3, %v6177_v19, %v5526_v34 }
 0x1f1   : > { %351 = vst.msk [vmem:[#allocation3 + $0x168] sm:$0x1] %vm335_vm10, %v9386_v7  ;;  %352 = vst.msk [vmem:[#allocation3 + $0x180] sm:$0x1] %vm335_vm10, %v9386_v7  ;;  %v7586_v38 = vpop.permute.xlu1 %5573  ;;  %v2546_v62 = vld [vmem:[#allocation3 + $0x10] sm:$0x3] }
 0x1f2   : > { %353 = vst.msk [vmem:[#allocation3 + $0x198] sm:$0x1] %vm335_vm10, %v9386_v7  ;;  %355 = vst.msk [vmem:[#allocation3 + $0x29] sm:$0x1] %vm335_vm10, %v9386_v7  ;;  %v7592_v42 = vpop.permute.xlu0 %5568  ;;  %v7594_v13 = vpop.f32.mrb[28].mxu0  ;;  %v2646_v16 = vrot.slane %v2544_v2, 1  ;;  %v1836_v11 = vsel %vm280_vm3, %v9390_v6, %v5560_v27  ;;  %v5576_v34 = vunpack.i.h.bf16 %v7586_v38 }
 0x1f3   : > { %356 = vst.msk [vmem:[#allocation3 + $0x41] sm:$0x1] %vm335_vm10, %v9386_v7  ;;  %357 = vst.msk [vmem:[#allocation3 + $0x59] sm:$0x1] %vm335_vm10, %v9386_v7  ;;  %v7600_v21 = vpop.f32.mrb[29].mxu0  ;;  %v2649_v14 = vrot.slane %v2546_v62, 1  ;;  %v5571_v40 = vunpack.i.h.bf16 %v7592_v42  ;;  %v5570_v49 = vunpack.i.l.bf16 %v7592_v42  ;;  %v1770_v42 = vsel %vm326_vm7, %v1738_v41, %v5546_v58 }
 0x1f4   : > { %358 = vst.msk [vmem:[#allocation3 + $0x71] sm:$0x1] %vm335_vm10, %v9386_v7  ;;  %359 = vst.msk [vmem:[#allocation3 + $0x89] sm:$0x1] %vm335_vm10, %v9386_v7  ;;  %v7606_v8 = vpop.f32.mrb[30].mxu0  ;;  %v2648_v48 = vsel %vm890_vm6, %v2646_v16, %v2647_v20  ;;  %v6178_v22 = vld [vmem:[#allocation2 + $0xf0] sm:$0xff]  ;;  %v1803_v1 = vsel %vm1781_vm8, %v1770_v42, %v5556_v55  ;;  %v5566_v16 = vunpack.i.h.bf16 %v7486_v18 }
 0x1f5   : > { %360 = vst.msk [vmem:[#allocation3 + $0xa1] sm:$0x1] %vm335_vm10, %v9386_v7  ;;  %361 = vst.msk [vmem:[#allocation3 + $0xb9] sm:$0x1] %vm335_vm10, %v9386_v7  ;;  %2254 = vmatmul.mubr.bf16.gmra.mrb[48].mxu1 %v1934_v45  ;;  %v7611_v33 = vpop.f32.mrb[31].mxu0  ;;  %v7613_v59 = vpop.permute.xlu1 %5583  ;;  %v2650_v52 = vsel %vm890_vm6, %v2647_v20, %v2649_v14  ;;  %v1737_v9 = vsel %vm280_vm3, %v6178_v22, %v5525_v44  ;;  %v9389_v20 = vld [vmem:[#allocation17_spill] sm:$0xff]  ;;  %v5565_v14 = vunpack.i.l.bf16 %v7486_v18 }
 0x1f6   : > { %362 = vst.msk [vmem:[#allocation3 + $0xd1] sm:$0x1] %vm335_vm10, %v9386_v7  ;;  %363 = vst.msk [vmem:[#allocation3 + $0xe9] sm:$0x1] %vm335_vm10, %v9386_v7  ;;  %v5579_v32 = vpop.permute.xlu0 %5578  ;;  %2261 = vmatprep.mubr.bf16.mxu1 %v1938_v56  ;;  %v5712_v45 = vpack.i.bf16 %v2650_v52, %v2648_v48  ;;  %v1769_v24 = vsel %vm326_vm7, %v1737_v9, %v5545_v17  ;;  %v1837_v46 = vsel %vm280_vm3, %v9389_v20, %v5561_v30  ;;  %v9392_v9 = vld [vmem:[#allocation18_spill] sm:$0xff] }
 0x1f7   : > { %364 = vst.msk [vmem:[#allocation3 + $0x101] sm:$0x1] %vm335_vm10, %v9386_v7  ;;  %365 = vst.msk [vmem:[#allocation3 + $0x119] sm:$0x1] %vm335_vm10, %v9386_v7  ;;  %v5581_v50 = vunpack.i.h.bf16 %v5579_v32  ;;  %v5580_v51 = vunpack.i.l.bf16 %v5579_v32  ;;  %v1802_v32 = vsel %vm1781_vm8, %v1769_v24, %v5555_v36  ;;  %v1869_v2 = vsel %vm326_vm7, %v1837_v46, %v5571_v40 }
 0x1f8   : > { %366 = vst.msk [vmem:[#allocation3 + $0x131] sm:$0x1] %vm335_vm10, %v9386_v7  ;;  %367 = vst.msk [vmem:[#allocation3 + $0x149] sm:$0x1] %vm335_vm10, %v9386_v7  ;;  %5713 = vrot.lane.b32.xlu1 %v5712_v45, %s6211_s11  ;;  %v5586_v58 = vunpack.i.h.bf16 %v7613_v59  ;;  %v5585_v48 = vunpack.i.l.bf16 %v7613_v59  ;;  %v6180_v45 = vld [vmem:[#allocation2 + $0x108] sm:$0xff]  ;;  %v9391_v59 = vld [vmem:[#allocation19_spill] sm:$0xff] }
 0x1f9   : > { %368 = vst.msk [vmem:[#allocation3 + $0x161] sm:$0x1] %vm335_vm10, %v9386_v7  ;;  %369 = vst.msk [vmem:[#allocation3 + $0x179] sm:$0x1] %vm335_vm10, %v9386_v7  ;;  %v7623_v53 = vpop.permute.xlu1 %5593  ;;  %v1901_v4 = vsel %vm1781_vm8, %v1869_v2, %v5581_v50 }
 0x1fa   : > { %370 = vst.msk [vmem:[#allocation3 + $0x191] sm:$0x1] %vm335_vm10, %v9386_v7  ;;  %371 = vst.msk [vmem:[#allocation3 + $0x1a9] sm:$0x1] %vm335_vm10, %v9386_v7  ;;  %v1898_v7 = vsel %vm1781_vm8, %v1866_v10, %v5550_v39  ;;  %v7630_v31 = vpop.permute.xlu0 %5588  ;;  %v7632_v63 = vpop.f32.mrb[32].mxu0 }
 0x1fb   : > { %v7638_v26 = vpop.f32.mrb[33].mxu0  ;;  %v1941_v25 = vpack.c.bf16 %v1899_v23, %v1898_v7  ;;  %v1940_v7 = vpack.c.bf16 %v1803_v1, %v1802_v32  ;;  %v5575_v23 = vunpack.i.l.bf16 %v7586_v38  ;;  %v5591_v17 = vunpack.i.h.bf16 %v7630_v31 }
 0x1fc   : > { %v7643_v28 = vpop.f32.mrb[34].mxu0  ;;  %v5590_v55 = vunpack.i.l.bf16 %v7630_v31  ;;  %v1739_v38 = vsel %vm280_vm3, %v6180_v45, %v5565_v14  ;;  %v5595_v32 = vunpack.i.l.bf16 %v7623_v53 }
 0x1fd   : > { %2262 = vmatmul.mubr.bf16.gmra.mrb[52].mxu1 %v1937_v37  ;;  %v7647_v56 = vpop.f32.mrb[35].mxu0  ;;  %v7649_v60 = vpop.permute.xlu1 %5603  ;;  %v1868_v37 = vsel %vm326_vm7, %v1836_v11, %v5570_v49  ;;  %v6179_v49 = vld [vmem:[#allocation2 + $0x110] sm:$0xff]  ;;  %v1771_v41 = vsel %vm326_vm7, %v1739_v38, %v5575_v23  ;;  %v1839_v22 = vsel %vm280_vm3, %v9391_v59, %v5591_v17  ;;  %v5596_v11 = vunpack.i.h.bf16 %v7623_v53  ;;  %v6182_v23 = vld [vmem:[#allocation2 + $0x120] sm:$0xff] }
 0x1fe   : > { %v5599_v39 = vpop.permute.xlu0 %5598  ;;  %2269 = vmatprep.mubr.bf16.mxu1 %v1941_v25  ;;  %v1900_v10 = vsel %vm1781_vm8, %v1868_v37, %v5580_v51  ;;  %v1740_v25 = vsel %vm280_vm3, %v6179_v49, %v5566_v16  ;;  %v1838_v50 = vsel %vm280_vm3, %v9392_v9, %v5590_v55  ;;  %v1804_v42 = vsel %vm1781_vm8, %v1771_v41, %v5585_v48 }
 0x1ff   : > { %v5601_v36 = vunpack.i.h.bf16 %v5599_v39  ;;  %v5600_v30 = vunpack.i.l.bf16 %v5599_v39  ;;  %v1944_v27 = vpack.c.bf16 %v1901_v4, %v1900_v10  ;;  %v1772_v31 = vsel %vm326_vm7, %v1740_v25, %v5576_v34 }
 0x200   : > { %v1805_v39 = vsel %vm1781_vm8, %v1772_v31, %v5586_v58  ;;  %v5606_v37 = vunpack.i.h.bf16 %v7649_v60  ;;  %v5605_v2 = vunpack.i.l.bf16 %v7649_v60  ;;  %v1741_v58 = vsel %vm280_vm3, %v6182_v23, %v5595_v32 }
 0x201   : > { %v5614_v62 = vpop.permute.xlu1 %5613  ;;  %v1870_v51 = vsel %vm326_vm7, %v1838_v50, %v5600_v30  ;;  %v1871_v24 = vsel %vm326_vm7, %v1839_v22, %v5601_v36  ;;  %v1943_v10 = vpack.c.bf16 %v1805_v39, %v1804_v42  ;;  %v6184_v39 = vld [vmem:[#allocation2 + $0x138] sm:$0xff] }
 0x202   : > { %v5609_v44 = vpop.permute.xlu0 %5608  ;;  %v5616_v4 = vunpack.i.h.bf16 %v5614_v62  ;;  %v5615_v16 = vunpack.i.l.bf16 %v5614_v62  ;;  %v1773_v55 = vsel %vm326_vm7, %v1741_v58, %v5605_v2 }
 0x203   : > { %v5611_v52 = vunpack.i.h.bf16 %v5609_v44  ;;  %v5610_v40 = vunpack.i.l.bf16 %v5609_v44  ;;  %v6181_v44 = vld [vmem:[#allocation2 + $0x128] sm:$0xff] }
 0x204   : > { %v7694_v53 = vpop.f32.mrb[36].mxu0  ;;  %v1806_v62 = vsel %vm1781_vm8, %v1773_v55, %v5615_v16 }
 0x205   : > { %2270 = vmatmul.mubr.bf16.gmra.mrb[56].mxu1 %v1940_v7  ;;  %v5624_v18 = vpop.permute.xlu1 %5623  ;;  %v1902_v46 = vsel %vm1781_vm8, %v1870_v51, %v5610_v40  ;;  %v1903_v6 = vsel %vm1781_vm8, %v1871_v24, %v5611_v52  ;;  %v1742_v7 = vsel %vm280_vm3, %v6181_v44, %v5596_v11  ;;  %v7698_v48 = vpop.f32.mrb[37].mxu0  ;;  %v6183_v24 = vld [vmem:[#allocation2 + $0x140] sm:$0xff] }
 0x206   : > { %v5619_v19 = vpop.permute.xlu0 %5618  ;;  %2277 = vmatprep.mubr.bf16.mxu1 %v1944_v27  ;;  %v1947_v14 = vpack.c.bf16 %v1903_v6, %v1902_v46  ;;  %v1774_v60 = vsel %vm326_vm7, %v1742_v7, %v5606_v37  ;;  %v7702_v30 = vpop.f32.mrb[38].mxu0  ;;  %v5626_v27 = vunpack.i.h.bf16 %v5624_v18  ;;  %v5625_v52 = vunpack.i.l.bf16 %v5624_v18  ;;  %v9393_v6 = vld [vmem:[#allocation9_spill] sm:$0xff] }
 0x207   : > { %v1807_v36 = vsel %vm1781_vm8, %v1774_v60, %v5616_v4  ;;  %v7704_v49 = vpop.f32.mrb[39].mxu0  ;;  %v5621_v25 = vunpack.i.h.bf16 %v5619_v19  ;;  %v5620_v45 = vunpack.i.l.bf16 %v5619_v19  ;;  %v9394_v19 = vld [vmem:[#allocation10_spill] sm:$0xff] }
 0x208   : > { %v1946_v9 = vpack.c.bf16 %v1807_v36, %v1806_v62  ;;  %v1744_v42 = vsel %vm280_vm3, %v6183_v24, %v5626_v27  ;;  %v1743_v46 = vsel %vm280_vm3, %v6184_v39, %v5625_v52 }
 0x209   : > { %v5634_v20 = vpop.permute.xlu1 %5633  ;;  %v1841_v11 = vsel %vm280_vm3, %v9393_v6, %v5621_v25 }
 0x20a   : > { %v5629_v1 = vpop.permute.xlu0 %5628  ;;  %v5636_v38 = vunpack.i.h.bf16 %v5634_v20  ;;  %v5635_v41 = vunpack.i.l.bf16 %v5634_v20  ;;  %v1840_v20 = vsel %vm280_vm3, %v9394_v19, %v5620_v45 }
 0x20b   : > { %v5631_v50 = vunpack.i.h.bf16 %v5629_v1  ;;  %v5630_v51 = vunpack.i.l.bf16 %v5629_v1 }
 0x20c   : > { %v1775_v32 = vsel %vm326_vm7, %v1743_v46, %v5635_v41  ;;  %v1776_v37 = vsel %vm326_vm7, %v1744_v42, %v5636_v38  ;;  %v9395_v46 = vld [vmem:[#allocation24_spill] sm:$0xff] }
 0x20d   : > { %2278 = vmatmul.mubr.bf16.gmra.mrb[60].mxu1 %v1943_v10  ;;  %v5639_v34 = vpop.permute.xlu1 %5638  ;;  %v1872_v44 = vsel %vm326_vm7, %v1840_v20, %v5630_v51  ;;  %v1873_v7 = vsel %vm326_vm7, %v1841_v11, %v5631_v50 }
 0x20e   : > { %v7692_v17 = vpop.permute.xlu0 %5648  ;;  %2285 = vmatprep.mubr.bf16.mxu1 %v1947_v14  ;;  %v5641_v59 = vunpack.i.h.bf16 %v5639_v34  ;;  %v5640_v22 = vunpack.i.l.bf16 %v5639_v34 }
 0x20f   : > { %v5650_v50 = vunpack.i.l.bf16 %v7692_v17 }
 0x210   : > { %v7714_v1 = vpop.f32.mrb[40].mxu0  ;;  %v1808_v16 = vsel %vm1781_vm8, %v1775_v32, %v5640_v22  ;;  %v1809_v14 = vsel %vm1781_vm8, %v1776_v37, %v5641_v59  ;;  %v6186_v32 = vld [vmem:[#allocation2 + $0x150] sm:$0xff] }
 0x211   : > { %v5644_v40 = vpop.permute.xlu1 %5643  ;;  %v7718_v34 = vpop.f32.mrb[41].mxu0  ;;  %v1949_v45 = vpack.c.bf16 %v1809_v14, %v1808_v16 }
 0x212   : > { %v5659_v31 = vpop.permute.xlu0 %5658  ;;  %v7722_v23 = vpop.f32.mrb[42].mxu0  ;;  %v5646_v36 = vunpack.i.h.bf16 %v5644_v40  ;;  %v5645_v27 = vunpack.i.l.bf16 %v5644_v40  ;;  %v9396_v40 = vld [vmem:[#allocation23_spill] sm:$0xff] }
 0x213   : > { %v7726_v62 = vpop.f32.mrb[43].mxu0  ;;  %v5661_v42 = vunpack.i.h.bf16 %v5659_v31  ;;  %v5660_v39 = vunpack.i.l.bf16 %v5659_v31 }
 0x214   : > { %v1745_v37 = vsel %vm280_vm3, %v6186_v32, %v5645_v27 }
 0x215   : > { %2286 = vmatmul.mubr.bf16.gmra.mrb[64].mxu1 %v1946_v9  ;;  %v5654_v18 = vpop.permute.xlu1 %5653  ;;  %v5651_v9 = vunpack.i.h.bf16 %v7692_v17 }
 0x216   : > { %v5669_v2 = vpop.permute.xlu0 %5668  ;;  %v5656_v38 = vunpack.i.h.bf16 %v5654_v18  ;;  %v5655_v41 = vunpack.i.l.bf16 %v5654_v18  ;;  %v6185_v18 = vld [vmem:[#allocation2 + $0x158] sm:$0xff] }
 0x217   : > { %v5671_v10 = vunpack.i.h.bf16 %v5669_v2  ;;  %v5670_v4 = vunpack.i.l.bf16 %v5669_v2  ;;  %v1746_v20 = vsel %vm280_vm3, %v6185_v18, %v5646_v36 }
 0x218   : > { %v1777_v31 = vsel %vm326_vm7, %v1745_v37, %v5655_v41 }
 0x219   : > { %v5664_v58 = vpop.permute.xlu1 %5663  ;;  %v1904_v55 = vsel %vm1781_vm8, %v1872_v44, %v5670_v4  ;;  %v1905_v60 = vsel %vm1781_vm8, %v1873_v7, %v5671_v10  ;;  %v1778_v4 = vsel %vm326_vm7, %v1746_v20, %v5656_v38 }
 0x21a   : > { %v5674_v52 = vpop.permute.xlu0 %5673  ;;  %v1950_v25 = vpack.c.bf16 %v1905_v60, %v1904_v55  ;;  %v5666_v51 = vunpack.i.h.bf16 %v5664_v58  ;;  %v5665_v24 = vunpack.i.l.bf16 %v5664_v58 }
 0x21b   : > { %v5676_v59 = vunpack.i.h.bf16 %v5674_v52  ;;  %v5675_v22 = vunpack.i.l.bf16 %v5674_v52 }
 0x21c   : > { %2293 = vmatprep.mubr.bf16.mxu1 %v1950_v25  ;;  %v1810_v7 = vsel %vm1781_vm8, %v1777_v31, %v5665_v24  ;;  %v1811_v58 = vsel %vm1781_vm8, %v1778_v4, %v5666_v51 }
 0x21d   : > { %v1843_v6 = vsel %vm280_vm3, %v9395_v46, %v5676_v59  ;;  %v1842_v11 = vsel %vm280_vm3, %v9396_v40, %v5675_v22  ;;  %2294 = vmatmul.mubr.bf16.gmra.mrb[68].mxu1 %v1949_v45  ;;  %v5694_v19 = vpop.permute.xlu1 %5693  ;;  %v1952_v59 = vpack.c.bf16 %v1811_v58, %v1810_v7  ;;  %v5993_v58 = vld [vmem:[%s9272_s5 + $0xc0] sm:$0xff]  }
 0x21e   : > { %v5679_v17 = vpop.permute.xlu0 %5678  ;;  %v1874_v2 = vsel %vm326_vm7, %v1842_v11, %v5650_v50  ;;  %v1875_v10 = vsel %vm326_vm7, %v1843_v6, %v5651_v9  ;;  %v5696_v55 = vunpack.i.h.bf16 %v5694_v19  ;;  %v5695_v60 = vunpack.i.l.bf16 %v5694_v19  ;;  %v6187_v9 = vld [vmem:[#allocation2 + $0x170] sm:$0xff]  ;;  %v9398_v6 = vld [vmem:[#allocation13_spill] sm:$0xff]  ;;  %4966 = vmatprep.subr.bf16.mxu1 %v5993_v58  ;;  %v6008_v58 = vld [vmem:[%s9272_s5 + $0x20] sm:$0xff]  }
 0x21f   : > { %v1906_v16 = vsel %vm1781_vm8, %v1874_v2, %v5660_v39  ;;  %v1907_v14 = vsel %vm1781_vm8, %v1875_v10, %v5661_v42  ;;  %v5681_v27 = vunpack.i.h.bf16 %v5679_v17  ;;  %v5680_v52 = vunpack.i.l.bf16 %v5679_v17  ;;  %v6188_v42 = vld [vmem:[#allocation2 + $0x168] sm:$0xff]  ;;  %v9397_v39 = vld [vmem:[#allocation14_spill] sm:$0xff] }
 0x220   : > { %v1953_v44 = vpack.c.bf16 %v1907_v14, %v1906_v16  ;;  %v1748_v50 = vsel %vm280_vm3, %v6187_v9, %v5696_v55  ;;  %v1747_v24 = vsel %vm280_vm3, %v6188_v42, %v5695_v60  ;;  %v5994_v55 = vld [vmem:[%s9272_s5 + $0x80] sm:$0xff]  }
 0x221   : > { %v5699_v36 = vpop.permute.xlu1 %5698  ;;  %v1845_v46 = vsel %vm280_vm3, %v9397_v39, %v5681_v27  ;;  %v1844_v40 = vsel %vm280_vm3, %v9398_v6, %v5680_v52  ;;  %v5995_v60 = vld [vmem:[%s9272_s5 + $0x40] sm:$0xff]   ;;  %4967 = vmatpush3.bf16.msra.mxu1 %v5994_v55 }
 0x222   : > { %v5684_v25 = vpop.permute.xlu0 %5683  ;;  %2301 = vmatprep.mubr.bf16.mxu1 %v1953_v44  ;;  %v5701_v45 = vunpack.i.h.bf16 %v5699_v36  ;;  %v5700_v41 = vunpack.i.l.bf16 %v5699_v36  ;;  %v5996_v36 = vld [vmem:[%s9272_s5] sm:$0xff]   ;;  %4854 = vmatprep.subr.bf16.mxu0 %v5995_v60 }
 0x223   : > { %v5686_v38 = vunpack.i.h.bf16 %v5684_v25  ;;  %v5685_v22 = vunpack.i.l.bf16 %v5684_v25  ;;  %4855 = vmatpush3.bf16.msra.mxu0 %v5996_v36  ;;  %v7773_v52 = vld [vmem:[%s9271_s4] ss:$0 sm:$0xff] }
 0x224   : > { %v1779_v20 = vsel %vm326_vm7, %v1747_v24, %v5700_v41  ;;  %v1780_v32 = vsel %vm326_vm7, %v1748_v50, %v5701_v45 }
 0x225   : > { %2302 = vmatmul.mubr.bf16.gmra.mrb[72].mxu1 %v1952_v59  ;;  %v5704_v51 = vpop.permute.xlu1 %5703  ;;  %v1876_v2 = vsel %vm326_vm7, %v1844_v40, %v5685_v22  ;;  %v1877_v10 = vsel %vm326_vm7, %v1845_v46, %v5686_v38  ;;  %v5997_v59 = vld [vmem:[%s9272_s5 + $0x48] sm:$0xff]  }
 0x226   : > { %v5689_v11 = vpop.permute.xlu0 %5688  ;;  %v5706_v19 = vunpack.i.h.bf16 %v5704_v51  ;;  %v5705_v18 = vunpack.i.l.bf16 %v5704_v51  ;;  %v5998_v38 = vld [vmem:[%s9272_s5 + $0x8] sm:$0xff]   ;;  %4856 = vmatprep.subr.bf16.mxu0 %v5997_v59 }
 0x227   : > { %v5691_v37 = vunpack.i.h.bf16 %v5689_v11  ;;  %v5690_v17 = vunpack.i.l.bf16 %v5689_v11  ;;  %4857 = vmatpush3.bf16.msra.mxu0 %v5998_v38  ;;  %v5999_v46 = vld [vmem:[%s9272_s5 + $0xc8] sm:$0xff]  }
 0x228   : > { %v1812_v31 = vsel %vm1781_vm8, %v1779_v20, %v5705_v18  ;;  %v1813_v4 = vsel %vm1781_vm8, %v1780_v32, %v5706_v19  ;;  %4968 = vmatprep.subr.bf16.mxu1 %v5999_v46  ;;  %v6000_v40 = vld [vmem:[%s9272_s5 + $0x88] sm:$0xff]   ;;  %v6003_v19 = vld [vmem:[%s9272_s5 + $0x58] sm:$0xff]   ;;  %v6012_v46 = vld [vmem:[%s9272_s5 + $0x30] sm:$0xff]  }
 0x229   : > { %v1908_v16 = vsel %vm1781_vm8, %v1876_v2, %v5690_v17  ;;  %v1909_v14 = vsel %vm1781_vm8, %v1877_v10, %v5691_v37  ;;  %v1955_v44 = vpack.c.bf16 %v1813_v4, %v1812_v31  ;;  %4969 = vmatpush3.bf16.msra.mxu1 %v6000_v40  ;;  %v6004_v18 = vld [vmem:[%s9272_s5 + $0x18] sm:$0xff]   ;;  %v6009_v59 = vld [vmem:[%s9272_s5 + $0x68] sm:$0xff]  }
 0x22a   : > { %v1956_v7 = vpack.c.bf16 %v1909_v14, %v1908_v16  ;;  %v6005_v14 = vld [vmem:[%s9272_s5 + $0xd0] sm:$0xff]  }
 0x22b   : > { %4970 = vmatprep.subr.bf16.mxu1 %v6005_v14  ;;  %v6016_v14 = vld [vmem:[%s9272_s5 + $0x38] sm:$0xff]  }
 0x22c   : > { %2309 = vmatprep.mubr.bf16.mxu1 %v1956_v7  ;;  %v6007_v7 = vld [vmem:[%s9272_s5 + $0x60] sm:$0xff]  }
 0x22d   : > { %2310 = vmatmul.mubr.bf16.gmra.mrb[76].mxu1 %v1955_v44  ;;  %v6006_v44 = vld [vmem:[%s9272_s5 + $0x90] sm:$0xff]  }
 0x22e   : > { %4971 = vmatpush3.bf16.msra.mxu1 %v6006_v44 }
 0x262   : > { %v4740_v27 = vpop.f32.mrb[16].mxu1 }
 0x263   : > { %v4741_v25 = vpop.f32.mrb[17].mxu1 }
 0x264   : > { %v4742_v45 = vadd.f32 %v4741_v25, %v4740_v27  ;;  %v4743_v41 = vpop.f32.mrb[18].mxu1 }
 0x265   : > { %v4744_v22 = vpop.f32.mrb[19].mxu1 }
 0x266   : > { %v2192_v9 = vadd.f32 %v4742_v45, %v7773_v52  ;;  %v4745_v50 = vadd.f32 %v4744_v22, %v4743_v41 }
 0x268   : > { %v2353_v42 = vadd.f32 %v7387_v57, %v2192_v9  ;;  %v2195_v24 = vadd.f32 %v4745_v50, %v7773_v52  ;;  %v6001_v57 = vld [vmem:[%s9272_s5 + $0x50] sm:$0xff]  }
 0x269   : > { %4858 = vmatprep.subr.bf16.mxu0 %v6001_v57 }
 0x26a   : > { %v2479_v51 = vmax.f32 %v2353_v42, 0.0  ;;  %v2356_v39 = vadd.f32 %v7401_v15, %v2195_v24  ;;  %v6002_v15 = vld [vmem:[%s9272_s5 + $0x10] sm:$0xff]   ;;  %v6010_v42 = vld [vmem:[%s9272_s5 + $0x28] sm:$0xff]  }
 0x26b   : > { %4859 = vmatpush3.bf16.msra.mxu0 %v6002_v15  ;;  %v6011_v24 = vld [vmem:[%s9272_s5 + $0x70] sm:$0xff]  }
 0x26c   : > { %2512 = vst.msk [vmem:[#allocation3 + $0x19] sm:$0xff] %vm326_vm7, %v2479_v51  ;;  %v2480_v6 = vmax.f32 %v2356_v39, 0.0  ;;  %4860 = vmatprep.subr.bf16.mxu0 %v6003_v19 }
 0x26e   : > { %2513 = vst.msk [vmem:[#allocation3 + $0x21] sm:$0xff] %vm326_vm7, %v2480_v6 }
 0x26f   : > { %4861 = vmatpush3.bf16.msra.mxu0 %v6004_v18 }
 0x270   : > { %4862 = vmatprep.subr.bf16.mxu0 %v6007_v7 }
 0x273   : > { %v7799_v11 = vld [vmem:[#allocation3 + $0x18] sm:$0xff]  ;;  %4863 = vmatpush3.bf16.msra.mxu0 %v6008_v58 }
 0x274   : > { %v2651_v2 = vrot.slane %v7799_v11, 1  ;;  %4864 = vmatprep.subr.bf16.mxu0 %v6009_v59 }
 0x275   : > { %v7807_v20 = vld [vmem:[#allocation3 + $0x20] sm:$0xff]  ;;  %v7809_v32 = vld [vmem:[#allocation3 + $0x28] sm:$0x3] }
 0x276   : > { %v2652_v37 = vrot.slane %v7807_v20, 1  ;;  %v5707_v17 = vpack.i.bf16 %v7807_v20, %v7799_v11  ;;  %v2654_v10 = vrot.slane %v7809_v32, 1 }
 0x277   : > { %4865 = vmatpush3.bf16.msra.mxu0 %v6010_v42 }
 0x278   : > { %5708 = vrot.lane.b32.xlu0 %v5707_v17, %s6211_s11  ;;  %v7818_v31 = vsel %vm890_vm6, %v2651_v2, %v2652_v37  ;;  %v7821_v4 = vsel %vm890_vm6, %v2652_v37, %v2654_v10  ;;  %4866 = vmatprep.subr.bf16.mxu0 %v6011_v24  ;;  %v7902_v24 = vld [vmem:[%s9272_s5 + $0x100] sm:$0xff]  }
 0x279   : > { %9399 = vst [vmem:[#allocation5_spill] sm:$0xff] %v7818_v31  ;;  %9400 = vst [vmem:[#allocation4_spill] sm:$0xff] %v7821_v4  ;;  %v5722_v16 = vpack.i.bf16 %v7821_v4, %v7818_v31  ;;  %v7838_v55 = vpop.f32.mrb[44].mxu0 }
 0x27a   : > { %v7840_v60 = vpop.f32.mrb[45].mxu0 }
 0x27b   : > { %5723 = vrot.lane.b32.xlu1 %v5722_v16, %s6211_s11  ;;  %v7842_v41 = vpop.f32.mrb[46].mxu0  ;;  %4867 = vmatpush3.bf16.msra.mxu0 %v6012_v46  ;;  %v6015_v16 = vld [vmem:[%s9272_s5 + $0x98] sm:$0xff]  }
 0x27c   : > { %v7847_v22 = vpop.f32.mrb[47].mxu0 }
 0x280   : > { %v4746_v36 = vpop.f32.mrb[20].mxu1 }
 0x281   : > { %v4747_v27 = vpop.f32.mrb[21].mxu1 }
 0x282   : > { %v4748_v25 = vadd.f32 %v4747_v27, %v4746_v36  ;;  %v4749_v45 = vpop.f32.mrb[22].mxu1 }
 0x283   : > { %v4750_v38 = vpop.f32.mrb[23].mxu1 }
 0x284   : > { %v2200_v9 = vadd.f32 %v4748_v25, %v7773_v52  ;;  %v4751_v50 = vadd.f32 %v4750_v38, %v4749_v45  ;;  %v6017_v25 = vld [vmem:[%s9272_s5 + $0xe0] sm:$0xff]  }
 0x285   : > { %v6018_v38 = vld [vmem:[%s9272_s5 + $0xa0] sm:$0xff]  }
 0x286   : > { %v2361_v51 = vadd.f32 %v7381_v61, %v2200_v9  ;;  %v2203_v39 = vadd.f32 %v4751_v50, %v7773_v52  ;;  %v6013_v61 = vld [vmem:[%s9272_s5 + $0xd8] sm:$0xff]  }
 0x287   : > { %4972 = vmatprep.subr.bf16.mxu1 %v6013_v61 }
 0x288   : > { %v2481_v6 = vmax.f32 %v2361_v51, 0.0  ;;  %v2364_v40 = vadd.f32 %v7393_v5, %v2203_v39  ;;  %v4752_v57 = vpop.f32.mrb[24].mxu1  ;;  %v6014_v5 = vld [vmem:[%s9272_s5 + $0x78] sm:$0xff]   ;;  %4973 = vmatpush3.bf16.msra.mxu1 %v6015_v16 }
 0x289   : > { %v4753_v15 = vpop.f32.mrb[25].mxu1  ;;  %4868 = vmatprep.subr.bf16.mxu0 %v6014_v5  ;;  %4974 = vmatprep.subr.bf16.mxu1 %v6017_v25 }
 0x28a   : > { %2514 = vst.msk [vmem:[#allocation3 + $0x31] sm:$0xff] %vm326_vm7, %v2481_v6  ;;  %v2482_v19 = vmax.f32 %v2364_v40, 0.0  ;;  %v4754_v18 = vadd.f32 %v4753_v15, %v4752_v57  ;;  %v4755_v37 = vpop.f32.mrb[26].mxu1  ;;  %4869 = vmatpush3.bf16.msra.mxu0 %v6016_v14 }
 0x28b   : > { %v4756_v17 = vpop.f32.mrb[27].mxu1  ;;  %5170 = vmatprep.subr.bf16.mxu0 %v7902_v24 }
 0x28c   : > { %2515 = vst.msk [vmem:[#allocation3 + $0x39] sm:$0xff] %vm326_vm7, %v2482_v19  ;;  %v2208_v2 = vadd.f32 %v4754_v18, %v7773_v52  ;;  %v4757_v10 = vadd.f32 %v4756_v17, %v4755_v37  ;;  %4975 = vmatpush3.bf16.msra.mxu1 %v6018_v38 }
 0x28e   : > { %v2369_v44 = vadd.f32 %v7433_v29, %v2208_v2  ;;  %v2211_v7 = vadd.f32 %v4757_v10, %v7773_v52 }
 0x290   : > { %v2483_v58 = vmax.f32 %v2369_v44, 0.0  ;;  %v2372_v36 = vadd.f32 %v7444_v47, %v2211_v7 }
 0x291   : > { %v7880_v27 = vld [vmem:[#allocation3 + $0x30] sm:$0xff] }
 0x292   : > { %2516 = vst.msk [vmem:[#allocation3 + $0x49] sm:$0xff] %vm326_vm7, %v2483_v58  ;;  %v2484_v45 = vmax.f32 %v2372_v36, 0.0  ;;  %v2656_v9 = vrot.slane %v7880_v27, 1 }
 0x293   : > { %v7886_v59 = vld [vmem:[#allocation3 + $0x38] sm:$0xff]  ;;  %v7888_v29 = vld [vmem:[#allocation3 + $0x40] sm:$0x3] }
 0x294   : > { %2517 = vst.msk [vmem:[#allocation3 + $0x51] sm:$0xff] %vm326_vm7, %v2484_v45  ;;  %v5717_v47 = vpack.i.bf16 %v7886_v59, %v7880_v27  ;;  %v2657_v50 = vrot.slane %v7886_v59, 1  ;;  %v2659_v42 = vrot.slane %v7888_v29, 1 }
 0x296   : > { %5718 = vrot.lane.b32.xlu0 %v5717_v47, %s6211_s11  ;;  %v7906_v51 = vsel %vm890_vm6, %v2656_v9, %v2657_v50  ;;  %v7909_v39 = vsel %vm890_vm6, %v2657_v50, %v2659_v42 }
 0x297   : > { %9401 = vst [vmem:[#allocation12_spill] sm:$0xff] %v7906_v51  ;;  %9402 = vst [vmem:[#allocation11_spill] sm:$0xff] %v7909_v39  ;;  %v5732_v46 = vpack.i.bf16 %v7909_v39, %v7906_v51 }
 0x298   : > { %v4758_v6 = vpop.f32.mrb[28].mxu1 }
 0x299   : > { %v4759_v40 = vpop.f32.mrb[29].mxu1  ;;  %5733 = vrot.lane.b32.xlu1 %v5732_v46, %s6211_s11  ;;  %v7915_v57 = vld [vmem:[#allocation3 + $0x48] sm:$0xff] }
 0x29a   : > { %v4760_v15 = vadd.f32 %v4759_v40, %v4758_v6  ;;  %v4761_v19 = vpop.f32.mrb[30].mxu1  ;;  %v2661_v17 = vrot.slane %v7915_v57, 1 }
 0x29b   : > { %v4762_v18 = vpop.f32.mrb[31].mxu1  ;;  %v7917_v37 = vld [vmem:[#allocation3 + $0x50] sm:$0xff]  ;;  %v7919_v61 = vld [vmem:[#allocation3 + $0x58] sm:$0x3] }
 0x29c   : > { %v2216_v2 = vadd.f32 %v4760_v15, %v7773_v52  ;;  %v4763_v10 = vadd.f32 %v4762_v18, %v4761_v19  ;;  %v5727_v5 = vpack.i.bf16 %v7917_v37, %v7915_v57  ;;  %v2662_v16 = vrot.slane %v7917_v37, 1 }
 0x29d   : > { %v2664_v14 = vrot.slane %v7919_v61, 1 }
 0x29e   : > { %v2377_v44 = vadd.f32 %v7424_v54, %v2216_v2  ;;  %v2219_v7 = vadd.f32 %v4763_v10, %v7773_v52  ;;  %5728 = vrot.lane.b32.xlu0 %v5727_v5, %s6211_s11  ;;  %v7931_v58 = vsel %vm890_vm6, %v2661_v17, %v2662_v16  ;;  %v6020_v54 = vld [vmem:[%s9272_s5 + $0xe8] sm:$0xff]  }
 0x29f   : > { %9403 = vst [vmem:[#allocation20_spill] sm:$0xff] %v7931_v58  ;;  %v7934_v36 = vsel %vm890_vm6, %v2662_v16, %v2664_v14  ;;  %4976 = vmatprep.subr.bf16.mxu1 %v6020_v54 }
 0x2a0   : > { %9404 = vst [vmem:[#allocation22_spill] sm:$0xff] %v7934_v36  ;;  %v2485_v25 = vmax.f32 %v2377_v44, 0.0  ;;  %v2380_v45 = vadd.f32 %v7438_v35, %v2219_v7  ;;  %v4764_v38 = vpop.f32.mrb[32].mxu1  ;;  %v5742_v47 = vpack.i.bf16 %v7934_v36, %v7931_v58  ;;  %v6021_v35 = vld [vmem:[%s9272_s5 + $0xa8] sm:$0xff]   ;;  %v6191_v58 = vld [vmem:[#allocation3 + $0x8] sm:$0xff] }
 0x2a1   : > { %v4765_v9 = vpop.f32.mrb[33].mxu1  ;;  %4977 = vmatpush3.bf16.msra.mxu1 %v6021_v35 }
 0x2a2   : > { %2518 = vst.msk [vmem:[#allocation3 + $0x61] sm:$0xff] %vm326_vm7, %v2485_v25  ;;  %v2486_v50 = vmax.f32 %v2380_v45, 0.0  ;;  %v4766_v42 = vadd.f32 %v4765_v9, %v4764_v38  ;;  %5743 = vrot.lane.b32.xlu1 %v5742_v47, %s6211_s11  ;;  %v4767_v46 = vpop.f32.mrb[34].mxu1  ;;  %v6022_v47 = vld [vmem:[%s9272_s5 + $0xf0] sm:$0xff]  }
 0x2a3   : > { %v4768_v6 = vpop.f32.mrb[35].mxu1  ;;  %v6023_v9 = vld [vmem:[%s9272_s5 + $0xb0] sm:$0xff]   ;;  %4978 = vmatprep.subr.bf16.mxu1 %v6022_v47 }
 0x2a4   : > { %2519 = vst.msk [vmem:[#allocation3 + $0x69] sm:$0xff] %vm326_vm7, %v2486_v50  ;;  %v2224_v40 = vadd.f32 %v4766_v42, %v7773_v52  ;;  %v4769_v15 = vadd.f32 %v4768_v6, %v4767_v46 }
 0x2a5   : > { %4979 = vmatpush3.bf16.msra.mxu1 %v6023_v9 }
 0x2a6   : > { %v2385_v19 = vadd.f32 %v7475_v12, %v2224_v40  ;;  %v2227_v18 = vadd.f32 %v4769_v15, %v7773_v52 }
 0x2a8   : > { %v2487_v17 = vmax.f32 %v2385_v19, 0.0  ;;  %v2388_v2 = vadd.f32 %v7488_v3, %v2227_v18 }
 0x2a9   : > { %v7952_v10 = vld [vmem:[#allocation3 + $0x60] sm:$0xff] }
 0x2aa   : > { %2520 = vst.msk [vmem:[#allocation3 + $0x79] sm:$0xff] %vm326_vm7, %v2487_v17  ;;  %v2488_v5 = vmax.f32 %v2388_v2, 0.0  ;;  %v2666_v12 = vrot.slane %v7952_v10, 1 }
 0x2ab   : > { %v7955_v16 = vld [vmem:[#allocation3 + $0x68] sm:$0xff]  ;;  %v7957_v14 = vld [vmem:[#allocation3 + $0x70] sm:$0x3] }
 0x2ac   : > { %2521 = vst.msk [vmem:[#allocation3 + $0x81] sm:$0xff] %vm326_vm7, %v2488_v5  ;;  %v5737_v44 = vpack.i.bf16 %v7955_v16, %v7952_v10  ;;  %v2667_v7 = vrot.slane %v7955_v16, 1  ;;  %v2669_v3 = vrot.slane %v7957_v14, 1 }
 0x2ae   : > { %5738 = vrot.lane.b32.xlu0 %v5737_v44, %s6211_s11  ;;  %v7967_v25 = vsel %vm890_vm6, %v2666_v12, %v2667_v7  ;;  %v7970_v45 = vsel %vm890_vm6, %v2667_v7, %v2669_v3 }
 0x2af   : > { %9405 = vst [vmem:[#allocation6_spill] sm:$0xff] %v7967_v25  ;;  %9406 = vst [vmem:[#allocation21_spill] sm:$0xff] %v7970_v45  ;;  %v5752_v38 = vpack.i.bf16 %v7970_v45, %v7967_v25 }
 0x2b0   : > { %v4770_v54 = vpop.f32.mrb[36].mxu1 }
 0x2b1   : > { %v4771_v50 = vpop.f32.mrb[37].mxu1  ;;  %5753 = vrot.lane.b32.xlu1 %v5752_v38, %s6211_s11  ;;  %v7981_v42 = vld [vmem:[#allocation3 + $0x78] sm:$0xff] }
 0x2b2   : > { %v4772_v46 = vadd.f32 %v4771_v50, %v4770_v54  ;;  %v4773_v6 = vpop.f32.mrb[38].mxu1  ;;  %v2671_v19 = vrot.slane %v7981_v42, 1 }
 0x2b3   : > { %v4774_v35 = vpop.f32.mrb[39].mxu1  ;;  %v7983_v40 = vld [vmem:[#allocation3 + $0x80] sm:$0xff]  ;;  %v7985_v15 = vld [vmem:[#allocation3 + $0x88] sm:$0x3] }
 0x2b4   : > { %v2232_v18 = vadd.f32 %v4772_v46, %v7773_v52  ;;  %v4775_v17 = vadd.f32 %v4774_v35, %v4773_v6  ;;  %v5747_v2 = vpack.i.bf16 %v7983_v40, %v7981_v42  ;;  %v2672_v5 = vrot.slane %v7983_v40, 1 }
 0x2b5   : > { %v2674_v44 = vrot.slane %v7985_v15, 1 }
 0x2b6   : > { %v2393_v12 = vadd.f32 %v7470_v43, %v2232_v18  ;;  %v2235_v7 = vadd.f32 %v4775_v17, %v7773_v52  ;;  %5748 = vrot.lane.b32.xlu0 %v5747_v2, %s6211_s11  ;;  %v7997_v3 = vsel %vm890_vm6, %v2671_v19, %v2672_v5 }
 0x2b7   : > { %9407 = vst [vmem:[#allocation7_spill] sm:$0xff] %v7997_v3  ;;  %v8000_v38 = vsel %vm890_vm6, %v2672_v5, %v2674_v44 }
 0x2b8   : > { %9408 = vst [vmem:[#allocation16_spill] sm:$0xff] %v8000_v38  ;;  %v2489_v47 = vmax.f32 %v2393_v12, 0.0  ;;  %v2396_v9 = vadd.f32 %v7480_v0, %v2235_v7  ;;  %v4776_v54 = vpop.f32.mrb[40].mxu1  ;;  %v5762_v50 = vpack.i.bf16 %v8000_v38, %v7997_v3 }
 0x2b9   : > { %v4777_v46 = vpop.f32.mrb[41].mxu1 }
 0x2ba   : > { %2522 = vst.msk [vmem:[#allocation3 + $0x91] sm:$0xff] %vm326_vm7, %v2489_v47  ;;  %v2490_v43 = vmax.f32 %v2396_v9, 0.0  ;;  %v4778_v6 = vadd.f32 %v4777_v46, %v4776_v54  ;;  %5763 = vrot.lane.b32.xlu1 %v5762_v50, %s6211_s11  ;;  %v4779_v35 = vpop.f32.mrb[42].mxu1  ;;  %v6025_v9 = vld [vmem:[%s9272_s5 + $0xf8] sm:$0xff]  }
 0x2bb   : > { %v4780_v19 = vpop.f32.mrb[43].mxu1  ;;  %v6026_v54 = vld [vmem:[%s9272_s5 + $0xb8] sm:$0xff]   ;;  %4980 = vmatprep.subr.bf16.mxu1 %v6025_v9 }
 0x2bc   : > { %2523 = vst.msk [vmem:[#allocation3 + $0x99] sm:$0xff] %vm326_vm7, %v2490_v43  ;;  %v2240_v18 = vadd.f32 %v4778_v6, %v7773_v52  ;;  %v4781_v17 = vadd.f32 %v4780_v19, %v4779_v35  ;;  %4981 = vmatpush3.bf16.msra.mxu1 %v6026_v54 }
 0x2be   : > { %v2401_v0 = vadd.f32 %v7600_v21, %v2240_v18  ;;  %v2243_v2 = vadd.f32 %v4781_v17, %v7773_v52 }
 0x2c0   : > { %v2491_v5 = vmax.f32 %v2401_v0, 0.0  ;;  %v2404_v44 = vadd.f32 %v7611_v33, %v2243_v2  ;;  %v4782_v12 = vpop.f32.mrb[44].mxu1 }
 0x2c1   : > { %v4783_v7 = vpop.f32.mrb[45].mxu1  ;;  %v8012_v47 = vld [vmem:[#allocation3 + $0x90] sm:$0xff] }
 0x2c2   : > { %2524 = vst.msk [vmem:[#allocation3 + $0xa9] sm:$0xff] %vm326_vm7, %v2491_v5  ;;  %v2492_v21 = vmax.f32 %v2404_v44, 0.0  ;;  %v4784_v50 = vadd.f32 %v4783_v7, %v4782_v12  ;;  %v4785_v46 = vpop.f32.mrb[46].mxu1  ;;  %v2676_v35 = vrot.slane %v8012_v47, 1 }
 0x2c3   : > { %v4786_v43 = vpop.f32.mrb[47].mxu1  ;;  %v8021_v6 = vld [vmem:[#allocation3 + $0x98] sm:$0xff]  ;;  %v8023_v33 = vld [vmem:[#allocation3 + $0xa0] sm:$0x3] }
 0x2c4   : > { %2525 = vst.msk [vmem:[#allocation3 + $0xb1] sm:$0xff] %vm326_vm7, %v2492_v21  ;;  %v2248_v19 = vadd.f32 %v4784_v50, %v7773_v52  ;;  %v4787_v18 = vadd.f32 %v4786_v43, %v4785_v46  ;;  %v5757_v17 = vpack.i.bf16 %v8021_v6, %v8012_v47  ;;  %v2677_v0 = vrot.slane %v8021_v6, 1 }
 0x2c5   : > { %v2679_v2 = vrot.slane %v8023_v33, 1 }
 0x2c6   : > { %v2409_v5 = vadd.f32 %v7594_v13, %v2248_v19  ;;  %v2251_v44 = vadd.f32 %v4787_v18, %v7773_v52  ;;  %5758 = vrot.lane.b32.xlu0 %v5757_v17, %s6211_s11  ;;  %v8036_v12 = vsel %vm890_vm6, %v2676_v35, %v2677_v0 }
 0x2c7   : > { %9409 = vst [vmem:[#allocation15_spill] sm:$0xff] %v8036_v12  ;;  %v8039_v7 = vsel %vm890_vm6, %v2677_v0, %v2679_v2 }
 0x2c8   : > { %9410 = vst [vmem:[#allocation17_spill] sm:$0xff] %v8039_v7  ;;  %v2493_v9 = vmax.f32 %v2409_v5, 0.0  ;;  %v2412_v21 = vadd.f32 %v7606_v8, %v2251_v44  ;;  %v4788_v50 = vpop.f32.mrb[48].mxu1  ;;  %v5772_v54 = vpack.i.bf16 %v8039_v7, %v8036_v12 }
 0x2c9   : > { %v4789_v46 = vpop.f32.mrb[49].mxu1  ;;  %v8044_v43 = vld [vmem:[#allocation3 + $0xa8] sm:$0xff] }
 0x2ca   : > { %2526 = vst.msk [vmem:[#allocation3 + $0xc1] sm:$0xff] %vm326_vm7, %v2493_v9  ;;  %v2494_v13 = vmax.f32 %v2412_v21, 0.0  ;;  %v4790_v19 = vadd.f32 %v4789_v46, %v4788_v50  ;;  %5773 = vrot.lane.b32.xlu1 %v5772_v54, %s6211_s11  ;;  %v4791_v35 = vpop.f32.mrb[50].mxu1  ;;  %v2681_v8 = vrot.slane %v8044_v43, 1 }
 0x2cb   : > { %v4792_v18 = vpop.f32.mrb[51].mxu1  ;;  %v8048_v17 = vld [vmem:[#allocation3 + $0xb0] sm:$0xff]  ;;  %v8050_v0 = vld [vmem:[#allocation3 + $0xb8] sm:$0x3] }
 0x2cc   : > { %2527 = vst.msk [vmem:[#allocation3 + $0xc9] sm:$0xff] %vm326_vm7, %v2494_v13  ;;  %v2256_v2 = vadd.f32 %v4790_v19, %v7773_v52  ;;  %v4793_v5 = vadd.f32 %v4792_v18, %v4791_v35  ;;  %v5767_v44 = vpack.i.bf16 %v8048_v17, %v8044_v43  ;;  %v2682_v9 = vrot.slane %v8048_v17, 1 }
 0x2cd   : > { %v2684_v21 = vrot.slane %v8050_v0, 1  ;;  %v2828_v13 = vrot.slane %v7807_v20, 2  ;;  %v2830_v35 = vrot.slane %v7809_v32, 2 }
 0x2ce   : > { %v2417_v50 = vadd.f32 %v7638_v26, %v2256_v2  ;;  %v2259_v54 = vadd.f32 %v4793_v5, %v7773_v52  ;;  %5768 = vrot.lane.b32.xlu0 %v5767_v44, %s6211_s11  ;;  %v8063_v46 = vsel %vm890_vm6, %v2681_v8, %v2682_v9  ;;  %v2827_v2 = vrot.slane %v7799_v11, 2 }
 0x2cf   : > { %9411 = vst [vmem:[#allocation8_spill] sm:$0xff] %v8063_v46  ;;  %v8067_v19 = vsel %vm890_vm6, %v2682_v9, %v2684_v21 }
 0x2d0   : > { %9412 = vst [vmem:[#allocation19_spill] sm:$0xff] %v8067_v19  ;;  %v2495_v18 = vmax.f32 %v2417_v50, 0.0  ;;  %v2420_v7 = vadd.f32 %v7647_v56, %v2259_v54  ;;  %v4794_v12 = vpop.f32.mrb[52].mxu1  ;;  %v5782_v26 = vpack.i.bf16 %v8067_v19, %v8063_v46  ;;  %v8081_v56 = vsel %vm556_vm1, %v2827_v2, %v2828_v13 }
 0x2d1   : > { %v4795_v5 = vpop.f32.mrb[53].mxu1  ;;  %v8076_v21 = vld [vmem:[#allocation3 + $0xc0] sm:$0xff]  ;;  %v8084_v50 = vsel %vm556_vm1, %v2828_v13, %v2830_v35 }
 0x2d2   : > { %2528 = vst.msk [vmem:[#allocation3 + $0xd9] sm:$0xff] %vm326_vm7, %v2495_v18  ;;  %v2496_v8 = vmax.f32 %v2420_v7, 0.0  ;;  %v4796_v44 = vadd.f32 %v4795_v5, %v4794_v12  ;;  %5783 = vrot.lane.b32.xlu1 %v5782_v26, %s6211_s11  ;;  %v4797_v20 = vpop.f32.mrb[54].mxu1  ;;  %v2686_v13 = vrot.slane %v8076_v21, 1  ;;  %v5787_v35 = vpack.i.bf16 %v8084_v50, %v8081_v56 }
 0x2d3   : > { %v4798_v9 = vpop.f32.mrb[55].mxu1  ;;  %v8078_v32 = vld [vmem:[#allocation3 + $0xc8] sm:$0xff]  ;;  %v8086_v11 = vld [vmem:[#allocation3 + $0xd0] sm:$0x3] }
 0x2d4   : > { %2529 = vst.msk [vmem:[#allocation3 + $0xe1] sm:$0xff] %vm326_vm7, %v2496_v8  ;;  %v2264_v12 = vadd.f32 %v4796_v44, %v7773_v52  ;;  %v4799_v7 = vadd.f32 %v4798_v9, %v4797_v20  ;;  %v5777_v54 = vpack.i.bf16 %v8078_v32, %v8076_v21  ;;  %v2687_v18 = vrot.slane %v8078_v32, 1 }
 0x2d5   : > { %v2689_v26 = vrot.slane %v8086_v11, 1  ;;  %v2833_v8 = vrot.slane %v7886_v59, 2  ;;  %v2835_v44 = vrot.slane %v7888_v29, 2 }
 0x2d6   : > { %v2425_v2 = vadd.f32 %v7632_v63, %v2264_v12  ;;  %v2267_v5 = vadd.f32 %v4799_v7, %v7773_v52  ;;  %5778 = vrot.lane.b32.xlu0 %v5777_v54, %s6211_s11  ;;  %v8104_v46 = vsel %vm890_vm6, %v2686_v13, %v2687_v18  ;;  %v2832_v7 = vrot.slane %v7880_v27, 2 }
 0x2d7   : > { %9413 = vst [vmem:[#allocation18_spill] sm:$0xff] %v8104_v46  ;;  %v8107_v63 = vsel %vm890_vm6, %v2687_v18, %v2689_v26  ;;  %v8122_v26 = vsel %vm556_vm1, %v2833_v8, %v2835_v44  ;;  %v2840_v44 = vrot.slane %v7919_v61, 2 }
 0x2d8   : > { %v2497_v20 = vmax.f32 %v2425_v2, 0.0  ;;  %v2428_v9 = vadd.f32 %v7643_v28, %v2267_v5  ;;  %v4800_v19 = vpop.f32.mrb[56].mxu1  ;;  %9414 = vst [vmem:[#allocation9_spill] sm:$0xff] %v8107_v63  ;;  %v5797_v28 = vpack.i.bf16 %v8107_v63, %v8104_v46  ;;  %v8119_v18 = vsel %vm556_vm1, %v2832_v7, %v2833_v8  ;;  %9416 = vst [vmem:[#allocation24_spill] sm:$0xff] %v8122_v26 }
 0x2d9   : > { %v4801_v12 = vpop.f32.mrb[57].mxu1  ;;  %v8114_v2 = vld [vmem:[#allocation3 + $0xd8] sm:$0xff]  ;;  %9415 = vst [vmem:[#allocation10_spill] sm:$0xff] %v8119_v18 }
 0x2da   : > { %2530 = vst.msk [vmem:[#allocation3 + $0xf1] sm:$0xff] %vm326_vm7, %v2497_v20  ;;  %v2498_v54 = vmax.f32 %v2428_v9, 0.0  ;;  %v4802_v38 = vadd.f32 %v4801_v12, %v4800_v19  ;;  %v4803_v3 = vpop.f32.mrb[58].mxu1  ;;  %5788 = vrot.lane.b32.xlu0 %v5787_v35, %s6211_s11  ;;  %v2691_v8 = vrot.slane %v8114_v2, 1 }
 0x2db   : > { %v4804_v29 = vpop.f32.mrb[59].mxu1  ;;  %v8116_v5 = vld [vmem:[#allocation3 + $0xe0] sm:$0xff]  ;;  %v8124_v13 = vld [vmem:[#allocation3 + $0xe8] sm:$0x3] }
 0x2dc   : > { %2531 = vst.msk [vmem:[#allocation3 + $0xf9] sm:$0xff] %vm326_vm7, %v2498_v54  ;;  %v2272_v19 = vadd.f32 %v4802_v38, %v7773_v52  ;;  %v4805_v35 = vadd.f32 %v4804_v29, %v4803_v3  ;;  %v5792_v20 = vpack.i.bf16 %v8116_v5, %v8114_v2  ;;  %v2692_v9 = vrot.slane %v8116_v5, 1 }
 0x2dd   : > { %v2694_v12 = vrot.slane %v8124_v13, 1  ;;  %v5802_v3 = vpack.i.bf16 %v8122_v26, %v8119_v18  ;;  %v2838_v38 = vrot.slane %v7917_v37, 2 }
 0x2de   : > { %v2433_v7 = vadd.f32 %v7698_v48, %v2272_v19  ;;  %v2275_v63 = vadd.f32 %v4805_v35, %v7773_v52  ;;  %5798 = vrot.lane.b32.xlu0 %v5797_v28, %s6211_s11  ;;  %5793 = vrot.lane.b32.xlu1 %v5792_v20, %s6211_s11  ;;  %v8143_v48 = vsel %vm890_vm6, %v2691_v8, %v2692_v9  ;;  %v2837_v35 = vrot.slane %v7915_v57, 2  ;;  %v6189_v20 = vld [vmem:[#allocation3 + $0x10] sm:$0x3] }
 0x2df   : > { %9417 = vst [vmem:[#allocation23_spill] sm:$0xff] %v8143_v48  ;;  %v8146_v28 = vsel %vm890_vm6, %v2692_v9, %v2694_v12  ;;  %v2825_v45 = vrot.slane %v6189_v20, 2 }
 0x2e0   : > { %v2499_v54 = vmax.f32 %v2433_v7, 0.0  ;;  %v2436_v29 = vadd.f32 %v7704_v49, %v2275_v63  ;;  %v4806_v46 = vpop.f32.mrb[60].mxu1  ;;  %9418 = vst [vmem:[#allocation14_spill] sm:$0xff] %v8146_v28  ;;  %v5714_v49 = vpop.permute.xlu1 %5713  ;;  %v5812_v9 = vpack.i.bf16 %v8146_v28, %v8143_v48  ;;  %v8158_v57 = vsel %vm556_vm1, %v2837_v35, %v2838_v38  ;;  %v6190_v35 = vld [vmem:[#allocation3] sm:$0xff] }
 0x2e1   : > { %v4807_v19 = vpop.f32.mrb[61].mxu1  ;;  %v8151_v7 = vld [vmem:[#allocation3 + $0xf0] sm:$0xff]  ;;  %v5716_v12 = vunpack.i.h.bf16 %v5714_v49  ;;  %v5715_v28 = vunpack.i.l.bf16 %v5714_v49  ;;  %v2822_v36 = vrot.slane %v6190_v35, 2  ;;  %v2842_v49 = vrot.slane %v7952_v10, 2 }
 0x2e2   : > { %2532 = vst.msk [vmem:[#allocation3 + $0x109] sm:$0xff] %vm326_vm7, %v2499_v54  ;;  %v2500_v37 = vmax.f32 %v2436_v29, 0.0  ;;  %v4808_v25 = vadd.f32 %v4807_v19, %v4806_v46  ;;  %v4809_v61 = vpop.f32.mrb[62].mxu1  ;;  %5803 = vrot.lane.b32.xlu1 %v5802_v3, %s6211_s11  ;;  %v8161_v54 = vsel %vm556_vm1, %v2838_v38, %v2840_v44  ;;  %v2823_v38 = vrot.slane %v6191_v58, 2 }
 0x2e3   : > { %v4810_v63 = vpop.f32.mrb[63].mxu1  ;;  %v8153_v8 = vld [vmem:[#allocation3 + $0xf8] sm:$0xff]  ;;  %v8163_v46 = vld [vmem:[#allocation3 + $0x100] sm:$0x3] }
 0x2e4   : > { %2533 = vst.msk [vmem:[#allocation3 + $0x111] sm:$0xff] %vm326_vm7, %v2500_v37  ;;  %v2280_v3 = vadd.f32 %v4808_v25, %v7773_v52  ;;  %v4811_v29 = vadd.f32 %v4810_v63, %v4809_v61  ;;  %v5807_v19 = vpack.i.bf16 %v8153_v8, %v8151_v7  ;;  %v2697_v20 = vrot.slane %v8153_v8, 1 }
 0x2e5   : > { %v2699_v48 = vrot.slane %v8163_v46, 1  ;;  %v2696_v25 = vrot.slane %v8151_v7, 1  ;;  %v2843_v37 = vrot.slane %v7955_v16, 2  ;;  %v5817_v61 = vpack.i.bf16 %v8161_v54, %v8158_v57 }
 0x2e6   : > { %v2441_v44 = vadd.f32 %v7694_v53, %v2280_v3  ;;  %v2283_v39 = vadd.f32 %v4811_v29, %v7773_v52  ;;  %5808 = vrot.lane.b32.xlu0 %v5807_v19, %s6211_s11  ;;  %5813 = vrot.lane.b32.xlu1 %v5812_v9, %s6211_s11  ;;  %v2845_v63 = vrot.slane %v7957_v14, 2  ;;  %v3201_v19 = vsel %vm326_vm7, %v6191_v58, %v5716_v12 }
 0x2e7   : > { %v8183_v29 = vsel %vm890_vm6, %v2696_v25, %v2697_v20  ;;  %v8186_v9 = vsel %vm890_vm6, %v2697_v20, %v2699_v48  ;;  %v3200_v16 = vsel %vm326_vm7, %v6190_v35, %v5715_v28  ;;  %v2824_v4 = vsel %vm556_vm1, %v2822_v36, %v2823_v38 }
 0x2e8   : > { %v2501_v51 = vmax.f32 %v2441_v44, 0.0  ;;  %v2444_v53 = vadd.f32 %v7702_v30, %v2283_v39  ;;  %v4812_v3 = vpop.f32.mrb[64].mxu1  ;;  %9419 = vst [vmem:[#allocation13_spill] sm:$0xff] %v8183_v29  ;;  %9420 = vst [vmem:[#allocation25_spill] sm:$0xff] %v8186_v9  ;;  %v2826_v39 = vsel %vm556_vm1, %v2823_v38, %v2825_v45  ;;  %v8195_v48 = vsel %vm556_vm1, %v2842_v49, %v2843_v37 }
 0x2e9   : > { %v4813_v31 = vpop.f32.mrb[65].mxu1  ;;  %v5827_v28 = vpack.i.bf16 %v8186_v9, %v8183_v29  ;;  %v8199_v36 = vld [vmem:[#allocation3 + $0x108] sm:$0xff] }
 0x2ea   : > { %2534 = vst.msk [vmem:[#allocation3 + $0x121] sm:$0xff] %vm326_vm7, %v2501_v51  ;;  %v2502_v10 = vmax.f32 %v2444_v53, 0.0  ;;  %v4814_v14 = vadd.f32 %v4813_v31, %v4812_v3  ;;  %v4815_v44 = vpop.f32.mrb[66].mxu1  ;;  %v5709_v30 = vpop.permute.xlu0 %5708  ;;  %5818 = vrot.lane.b32.xlu0 %v5817_v61, %s6211_s11  ;;  %v8204_v31 = vsel %vm556_vm1, %v2843_v37, %v2845_v63  ;;  %v3300_v37 = vpack.c.bf16 %v3201_v19, %v3200_v16 }
 0x2eb   : > { %v5711_v20 = vunpack.i.h.bf16 %v5709_v30  ;;  %v5710_v58 = vunpack.i.l.bf16 %v5709_v30  ;;  %v4816_v12 = vpop.f32.mrb[67].mxu1  ;;  %v8201_v51 = vld [vmem:[#allocation3 + $0x110] sm:$0xff]  ;;  %v8206_v35 = vld [vmem:[#allocation3 + $0x118] sm:$0x3] }
 0x2ec   : > { %2535 = vst.msk [vmem:[#allocation3 + $0x129] sm:$0xff] %vm326_vm7, %v2502_v10  ;;  %v2288_v45 = vadd.f32 %v4814_v14, %v7773_v52  ;;  %v4817_v38 = vadd.f32 %v4816_v12, %v4815_v44  ;;  %v5822_v25 = vpack.i.bf16 %v8201_v51, %v8199_v36  ;;  %v2702_v61 = vrot.slane %v8201_v51, 1  ;;  %v6024_v12 = vld [vmem:[%s9272_s5 + $0x108] sm:$0xff]  }
 0x2ed   : > { %v3232_v49 = vsel %vm326_vm7, %v2824_v4, %v5710_v58  ;;  %v3233_v53 = vsel %vm326_vm7, %v2826_v39, %v5711_v20  ;;  %v2704_v3 = vrot.slane %v8206_v35, 1  ;;  %v2701_v10 = vrot.slane %v8199_v36, 1 }
 0x2ee   : > { %v2449_v63 = vadd.f32 %v7718_v34, %v2288_v45  ;;  %v2291_v30 = vadd.f32 %v4817_v38, %v7773_v52  ;;  %5828 = vrot.lane.b32.xlu0 %v5827_v28, %s6211_s11  ;;  %5823 = vrot.lane.b32.xlu1 %v5822_v25, %s6211_s11  ;;  %v3301_v14 = vpack.c.bf16 %v3233_v53, %v3232_v49  ;;  %v2848_v4 = vrot.slane %v7983_v40, 2 }
 0x2ef   : > { %v5832_v44 = vpack.i.bf16 %v8204_v31, %v8195_v48  ;;  %v2850_v39 = vrot.slane %v7985_v15, 2  ;;  %v8227_v16 = vsel %vm890_vm6, %v2701_v10, %v2702_v61  ;;  %v8230_v58 = vsel %vm890_vm6, %v2702_v61, %v2704_v3 }
 0x2f0   : > { %v2503_v20 = vmax.f32 %v2449_v63, 0.0  ;;  %v2452_v19 = vadd.f32 %v7726_v62, %v2291_v30  ;;  %v4818_v34 = vpop.f32.mrb[68].mxu1  ;;  %9421 = vst [vmem:[#allocation26_spill] sm:$0xff] %v8227_v16  ;;  %9422 = vst [vmem:[#allocation27_spill] sm:$0xff] %v8230_v58  ;;  %3741 = vmatprep.mubr.bf16.mxu0 %v3301_v14  ;;  %v2847_v40 = vrot.slane %v7981_v42, 2  ;;  %v5842_v49 = vpack.i.bf16 %v8230_v58, %v8227_v16  ;;  %v6027_v14 = vld [vmem:[%s9272_s5 + $0x110] sm:$0xff]  }
 0x2f1   : > { %v4819_v28 = vpop.f32.mrb[69].mxu1  ;;  %3742 = vmatmul.mubr.bf16.vlgmr.msra.gmra.mrb[48].mxu0 %v3300_v37  ;;  %v8238_v25 = vld [vmem:[#allocation3 + $0x120] sm:$0xff]  ;;  %v8248_v42 = vsel %vm556_vm1, %v2848_v4, %v2850_v39 }
 0x2f2   : > { %2536 = vst.msk [vmem:[#allocation3 + $0x139] sm:$0xff] %vm326_vm7, %v2503_v20  ;;  %v2504_v15 = vmax.f32 %v2452_v19, 0.0  ;;  %v4820_v45 = vadd.f32 %v4819_v28, %v4818_v34  ;;  %v4821_v62 = vpop.f32.mrb[70].mxu1  ;;  %5833 = vrot.lane.b32.xlu1 %v5832_v44, %s6211_s11  ;;  %v8245_v53 = vsel %vm556_vm1, %v2847_v40, %v2848_v4  ;;  %5171 = vmatpush3.bf16.msra.mxu0 %v7902_v24  ;;  %v2706_v39 = vrot.slane %v8238_v25, 1 }
 0x2f3   : > { %v4822_v38 = vpop.f32.mrb[71].mxu1  ;;  %v8240_v61 = vld [vmem:[#allocation3 + $0x128] sm:$0xff]  ;;  %v8250_v3 = vld [vmem:[#allocation3 + $0x130] sm:$0x3]  ;;  %5172 = vmatprep.subr.bf16.mxu0 %v6024_v12  ;;  %v5847_v20 = vpack.i.bf16 %v8248_v42, %v8245_v53  ;;  %v2853_v19 = vrot.slane %v8021_v6, 2  ;;  %v2855_v34 = vrot.slane %v8023_v33, 2 }
 0x2f4   : > { %2537 = vst.msk [vmem:[#allocation3 + $0x141] sm:$0xff] %vm326_vm7, %v2504_v15  ;;  %v2296_v37 = vadd.f32 %v4820_v45, %v7773_v52  ;;  %v4823_v63 = vadd.f32 %v4822_v38, %v4821_v62  ;;  %v5837_v30 = vpack.i.bf16 %v8240_v61, %v8238_v25  ;;  %v2707_v10 = vrot.slane %v8240_v61, 1  ;;  %v6028_v62 = vld [vmem:[%s9272_s5 + $0x118] sm:$0xff]  }
 0x2f5   : > { %v2709_v44 = vrot.slane %v8250_v3, 1 }
 0x2f6   : > { %v2457_v4 = vadd.f32 %v7714_v1, %v2296_v37  ;;  %v2299_v24 = vadd.f32 %v4823_v63, %v7773_v52  ;;  %5838 = vrot.lane.b32.xlu0 %v5837_v30, %s6211_s11  ;;  %5843 = vrot.lane.b32.xlu1 %v5842_v49, %s6211_s11  ;;  %v8273_v15 = vsel %vm890_vm6, %v2706_v39, %v2707_v10  ;;  %v2852_v49 = vrot.slane %v8012_v47, 2 }
 0x2f7   : > { %5173 = vmatpush3.bf16.msra.mxu0 %v6024_v12  ;;  %9423 = vst [vmem:[#allocation28_spill] sm:$0xff] %v8273_v15  ;;  %v8276_v45 = vsel %vm890_vm6, %v2707_v10, %v2709_v44 }
 0x2f8   : > { %v2505_v28 = vmax.f32 %v2457_v4, 0.0  ;;  %v2460_v40 = vadd.f32 %v7722_v23, %v2299_v24  ;;  %v4824_v1 = vpop.f32.mrb[72].mxu1  ;;  %9424 = vst [vmem:[#allocation29_spill] sm:$0xff] %v8276_v45  ;;  %5174 = vmatprep.subr.bf16.mxu0 %v6027_v14  ;;  %v5857_v63 = vpack.i.bf16 %v8276_v45, %v8273_v15  ;;  %v8291_v44 = vsel %vm556_vm1, %v2852_v49, %v2853_v19 }
 0x2f9   : > { %v4825_v38 = vpop.f32.mrb[73].mxu1  ;;  %v8286_v30 = vld [vmem:[#allocation3 + $0x138] sm:$0xff]  ;;  %v8294_v4 = vsel %vm556_vm1, %v2853_v19, %v2855_v34  ;;  %v2858_v49 = vrot.slane %v8048_v17, 2 }
 0x2fa   : > { %2538 = vst.msk [vmem:[#allocation3 + $0x151] sm:$0xff] %vm326_vm7, %v2505_v28  ;;  %v2506_v33 = vmax.f32 %v2460_v40, 0.0  ;;  %v4826_v12 = vadd.f32 %v4825_v38, %v4824_v1  ;;  %v4827_v23 = vpop.f32.mrb[74].mxu1  ;;  %5848 = vrot.lane.b32.xlu0 %v5847_v20, %s6211_s11  ;;  %v5862_v34 = vpack.i.bf16 %v8294_v4, %v8291_v44 }
 0x2fb   : > { %v4828_v37 = vpop.f32.mrb[75].mxu1  ;;  %v8288_v10 = vld [vmem:[#allocation3 + $0x140] sm:$0xff]  ;;  %v8296_v24 = vld [vmem:[#allocation3 + $0x148] sm:$0x3]  ;;  %5175 = vmatpush3.bf16.msra.mxu0 %v6027_v14  ;;  %v2711_v14 = vrot.slane %v8286_v30, 1 }
 0x2fc   : > { %2539 = vst.msk [vmem:[#allocation3 + $0x159] sm:$0xff] %vm326_vm7, %v2506_v33  ;;  %v2304_v39 = vadd.f32 %v4826_v12, %v7773_v52  ;;  %v4829_v20 = vadd.f32 %v4828_v37, %v4827_v23  ;;  %v5852_v28 = vpack.i.bf16 %v8288_v10, %v8286_v30  ;;  %v2712_v40 = vrot.slane %v8288_v10, 1  ;;  %5176 = vmatprep.subr.bf16.mxu0 %v6028_v62 }
 0x2fd   : > { %v2714_v1 = vrot.slane %v8296_v24, 1  ;;  %v2860_v33 = vrot.slane %v8050_v0, 2 }
 0x2fe   : > { %v2465_v38 = vadd.f32 %v7840_v60, %v2304_v39  ;;  %v2307_v19 = vadd.f32 %v4829_v20, %v7773_v52  ;;  %5858 = vrot.lane.b32.xlu0 %v5857_v63, %s6211_s11  ;;  %5853 = vrot.lane.b32.xlu1 %v5852_v28, %s6211_s11  ;;  %v8315_v52 = vsel %vm890_vm6, %v2711_v14, %v2712_v40  ;;  %v2857_v39 = vrot.slane %v8044_v43, 2  ;;  %v5724_v20 = vpop.permute.xlu1 %5723 }
 0x2ff   : > { %5177 = vmatpush3.bf16.msra.mxu0 %v6028_v62  ;;  %9425 = vst [vmem:[#allocation30_spill] sm:$0xff] %v8315_v52  ;;  %v8318_v37 = vsel %vm890_vm6, %v2712_v40, %v2714_v1 }
 0x300   : > { %v2507_v12 = vmax.f32 %v2465_v38, 0.0  ;;  %v2468_v23 = vadd.f32 %v7847_v22, %v2307_v19  ;;  %v4830_v60 = vpop.f32.mrb[76].mxu1  ;;  %9426 = vst [vmem:[#allocation31_spill] sm:$0xff] %v8318_v37  ;;  %v5872_v40 = vpack.i.bf16 %v8318_v37, %v8315_v52  ;;  %v8330_v1 = vsel %vm556_vm1, %v2857_v39, %v2858_v49 }
 0x301   : > { %v4831_v63 = vpop.f32.mrb[77].mxu1  ;;  %v8323_v22 = vld [vmem:[#allocation3 + $0x150] sm:$0xff]  ;;  %v8333_v19 = vsel %vm556_vm1, %v2858_v49, %v2860_v33  ;;  %v5726_v39 = vunpack.i.h.bf16 %v5724_v20  ;;  %v2863_v49 = vrot.slane %v8078_v32, 2  ;;  %v2865_v33 = vrot.slane %v8086_v11, 2 }
 0x302   : > { %2540 = vst.msk [vmem:[#allocation3 + $0x169] sm:$0xff] %vm326_vm7, %v2507_v12  ;;  %v2508_v28 = vmax.f32 %v2468_v23, 0.0  ;;  %v4832_v45 = vadd.f32 %v4831_v63, %v4830_v60  ;;  %v4833_v0 = vpop.f32.mrb[78].mxu1  ;;  %5863 = vrot.lane.b32.xlu1 %v5862_v34, %s6211_s11  ;;  %9427 = vst [vmem:[#allocation32_spill] sm:$0xff] %v8323_v22  ;;  %v6192_v34 = vld [vmem:[%s9271_s4] ss:$0 sm:$0xff]  ;;  %v5725_v52 = vunpack.i.l.bf16 %v5724_v20 }
 0x303   : > { %v4834_v62 = vpop.f32.mrb[79].mxu1  ;;  %v8325_v38 = vld [vmem:[#allocation3 + $0x158] sm:$0xff]  ;;  %v8335_v14 = vld [vmem:[#allocation3 + $0x160] sm:$0x3] }
 0x304   : > { %9428 = vst [vmem:[#allocation33_spill] sm:$0xff] %v8325_v38  ;;  %2541 = vst.msk [vmem:[#allocation3 + $0x171] sm:$0xff] %vm326_vm7, %v2508_v28  ;;  %v2312_v12 = vadd.f32 %v6192_v34, %v4832_v45  ;;  %v4835_v23 = vadd.f32 %v4834_v62, %v4833_v0  ;;  %v5867_v60 = vpack.i.bf16 %v8325_v38, %v8323_v22  ;;  %v2717_v63 = vrot.slane %v8325_v38, 1 }
 0x305   : > { %v2719_v37 = vrot.slane %v8335_v14, 1  ;;  %v2716_v45 = vrot.slane %v8323_v22, 1  ;;  %v5877_v0 = vpack.i.bf16 %v8333_v19, %v8330_v1  ;;  %v2862_v62 = vrot.slane %v8076_v21, 2 }
 0x306   : > { %v2473_v28 = vadd.f32 %v7838_v55, %v2312_v12  ;;  %v2315_v15 = vadd.f32 %v6192_v34, %v4835_v23  ;;  %5868 = vrot.lane.b32.xlu0 %v5867_v60, %s6211_s11  ;;  %5873 = vrot.lane.b32.xlu1 %v5872_v40, %s6211_s11  ;;  %v8365_v12 = vsel %vm556_vm1, %v2863_v49, %v2865_v33  ;;  %v6194_v60 = vld [vmem:[#allocation3 + $0x20] sm:$0xff] }
 0x307   : > { %v8356_v11 = vsel %vm890_vm6, %v2716_v45, %v2717_v63  ;;  %v8359_v55 = vsel %vm890_vm6, %v2717_v63, %v2719_v37  ;;  %v8362_v40 = vsel %vm556_vm1, %v2862_v62, %v2863_v49  ;;  %v3203_v37 = vsel %vm326_vm7, %v6194_v60, %v5726_v39 }
 0x308   : > { %v2509_v58 = vmax.f32 %v2473_v28, 0.0  ;;  %v2476_v16 = vadd.f32 %v7842_v41, %v2315_v15  ;;  %v5719_v9 = vpop.permute.xlu0 %5718  ;;  %9429 = vst [vmem:[#allocation34_spill] sm:$0xff] %v8356_v11  ;;  %9430 = vst [vmem:[#allocation35_spill] sm:$0xff] %v8359_v55  ;;  %v6193_v41 = vld [vmem:[#allocation3 + $0x18] sm:$0xff]  ;;  %v2867_v63 = vrot.slane %v8114_v2, 2  ;;  %v5887_v28 = vpack.i.bf16 %v8359_v55, %v8356_v11 }
 0x309   : > { %v5721_v20 = vunpack.i.h.bf16 %v5719_v9  ;;  %v5720_v34 = vunpack.i.l.bf16 %v5719_v9  ;;  %v3202_v15 = vsel %vm326_vm7, %v6193_v41, %v5725_v52  ;;  %v2868_v39 = vrot.slane %v8116_v5, 2 }
 0x30a   : > { %2542 = vst.msk [vmem:[#allocation3 + $0x181] sm:$0xff] %vm326_vm7, %v2509_v58  ;;  %v2510_v23 = vmax.f32 %v2476_v16, 0.0  ;;  %5878 = vrot.lane.b32.xlu0 %v5877_v0, %s6211_s11  ;;  %v8378_v58 = vld [vmem:[#allocation3 + $0x168] sm:$0xff] }
 0x30b   : > { %v5734_v9 = vpop.permute.xlu1 %5733  ;;  %v3234_v49 = vsel %vm326_vm7, %v8081_v56, %v5720_v34  ;;  %v3235_v16 = vsel %vm326_vm7, %v8084_v50, %v5721_v20  ;;  %9431 = vst [vmem:[#allocation36_spill] sm:$0xff] %v8378_v58  ;;  %v8380_v33 = vld [vmem:[#allocation3 + $0x170] sm:$0xff]  ;;  %v8382_v52 = vld [vmem:[#allocation3 + $0x178] sm:$0x3]  ;;  %v3305_v56 = vpack.c.bf16 %v3203_v37, %v3202_v15  ;;  %v2870_v34 = vrot.slane %v8124_v13, 2 }
 0x30c   : > { %9432 = vst [vmem:[#allocation37_spill] sm:$0xff] %v8380_v33  ;;  %2543 = vst.msk [vmem:[#allocation3 + $0x189] sm:$0xff] %vm326_vm7, %v2510_v23  ;;  %v5736_v45 = vunpack.i.h.bf16 %v5734_v9  ;;  %v5735_v0 = vunpack.i.l.bf16 %v5734_v9  ;;  %v3306_v62 = vpack.c.bf16 %v3235_v16, %v3234_v49  ;;  %v5882_v41 = vpack.i.bf16 %v8380_v33, %v8378_v58 }
 0x30d   : > { %v2873_v50 = vrot.slane %v8153_v8, 2  ;;  %v2875_v20 = vrot.slane %v8163_v46, 2  ;;  %v2722_v9 = vrot.slane %v8380_v33, 1  ;;  %v2724_v49 = vrot.slane %v8382_v52, 1 }
 0x30e   : > { %5888 = vrot.lane.b32.xlu0 %v5887_v28, %s6211_s11  ;;  %3749 = vmatprep.mubr.bf16.mxu0 %v3306_v62  ;;  %v3204_v60 = vsel %vm326_vm7, %v7880_v27, %v5735_v0  ;;  %v3205_v23 = vsel %vm326_vm7, %v7886_v59, %v5736_v45  ;;  %v2872_v15 = vrot.slane %v8151_v7, 2  ;;  %v5892_v37 = vpack.i.bf16 %v8365_v12, %v8362_v40 }
 0x30f   : > { %5883 = vrot.lane.b32.xlu1 %v5882_v41, %s6211_s11  ;;  %3750 = vmatmul.mubr.bf16.gmra.mrb[52].mxu0 %v3305_v56  ;;  %v3303_v13 = vpack.c.bf16 %v3205_v23, %v3204_v60  ;;  %v2721_v28 = vrot.slane %v8378_v58, 1  ;;  %v8404_v27 = vsel %vm556_vm1, %v2867_v63, %v2868_v39  ;;  %v8407_v45 = vsel %vm556_vm1, %v2868_v39, %v2870_v34 }
 0x310   : > { %v5729_v46 = vpop.permute.xlu0 %5728  ;;  %v8410_v0 = vsel %vm556_vm1, %v2872_v15, %v2873_v50  ;;  %v8416_v41 = vsel %vm890_vm6, %v2722_v9, %v2724_v49  ;;  %v8419_v56 = vsel %vm556_vm1, %v2873_v50, %v2875_v20  ;;  %v2878_v63 = vrot.slane %v8201_v51, 2 }
 0x311   : > { %v5731_v59 = vunpack.i.h.bf16 %v5729_v46  ;;  %v5730_v16 = vunpack.i.l.bf16 %v5729_v46  ;;  %3902 = vmatprep.mubr.bf16.mxu1 %v3303_v13  ;;  %v8413_v62 = vsel %vm890_vm6, %v2721_v28, %v2722_v9  ;;  %9434 = vst [vmem:[#allocation39_spill] sm:$0xff] %v8416_v41  ;;  %v8423_v60 = vld [vmem:[#allocation3 + $0x180] sm:$0xff]  ;;  %v2880_v9 = vrot.slane %v8206_v35, 2 }
 0x312   : > { %9433 = vst [vmem:[#allocation38_spill] sm:$0xff] %v8413_v62  ;;  %9435 = vst [vmem:[#allocation40_spill] sm:$0xff] %v8423_v60  ;;  %v2883_v49 = vrot.slane %v8240_v61, 2  ;;  %v2877_v46 = vrot.slane %v8199_v36, 2  ;;  %v5902_v28 = vpack.i.bf16 %v8416_v41, %v8413_v62  ;;  %v5907_v35 = vpack.i.bf16 %v8407_v45, %v8404_v27 }
 0x313   : > { %5893 = vrot.lane.b32.xlu1 %v5892_v37, %s6211_s11  ;;  %v8425_v39 = vld [vmem:[#allocation3 + $0x188] sm:$0xff]  ;;  %v3236_v34 = vsel %vm326_vm7, %v8119_v18, %v5730_v16  ;;  %v3237_v23 = vsel %vm326_vm7, %v8122_v26, %v5731_v59  ;;  %v2594_v50 = vld [vmem:[#allocation3 + $0x190] sm:$0x3]  ;;  %v2882_v37 = vrot.slane %v8238_v25, 2  ;;  %v2885_v16 = vrot.slane %v8250_v3, 2 }
 0x314   : > { %9436 = vst [vmem:[#allocation41_spill] sm:$0xff] %v8425_v39  ;;  %v5897_v20 = vpack.i.bf16 %v8425_v39, %v8423_v60  ;;  %v3310_v15 = vpack.c.bf16 %v3237_v23, %v3236_v34  ;;  %v3071_v59 = vrot.slane %v8425_v39, 2  ;;  %v3073_v55 = vrot.slane %v2594_v50, 2 }
 0x315   : > { %v5912_v34 = vpack.i.bf16 %v8419_v56, %v8410_v0  ;;  %v3070_v23 = vrot.slane %v8423_v60, 2  ;;  %v8449_v41 = vsel %vm556_vm1, %v2877_v46, %v2878_v63  ;;  %v8452_v3 = vsel %vm556_vm1, %v2878_v63, %v2880_v9 }
 0x316   : > { %5898 = vrot.lane.b32.xlu0 %v5897_v20, %s6211_s11  ;;  %3757 = vmatprep.mubr.bf16.mxu0 %v3310_v15  ;;  %v8455_v20 = vsel %vm556_vm1, %v2882_v37, %v2883_v49  ;;  %v2888_v15 = vrot.slane %v8288_v10, 2  ;;  %v2890_v62 = vrot.slane %v8296_v24, 2  ;;  %v8463_v29 = vsel %vm556_vm1, %v3071_v59, %v3073_v55  ;;  %v5744_v37 = vpop.permute.xlu1 %5743 }
 0x317   : > { %5903 = vrot.lane.b32.xlu1 %v5902_v28, %s6211_s11  ;;  %3758 = vmatmul.mubr.bf16.gmra.mrb[56].mxu0 %v3303_v13  ;;  %v8460_v11 = vsel %vm556_vm1, %v3070_v23, %v3071_v59  ;;  %v8466_v13 = vsel %vm556_vm1, %v2883_v49, %v2885_v16  ;;  %v2893_v46 = vrot.slane %v8325_v38, 2  ;;  %v2895_v63 = vrot.slane %v8335_v14, 2  ;;  %v8486_v59 = vld [vmem:[#allocation3 + $0x198] sm:$0xff]  ;;  %v8490_v23 = vld [vmem:[#allocation3 + $0x1a8] sm:$0x3] }
 0x318   : > { %v2887_v24 = vrot.slane %v8286_v30, 2  ;;  %v2892_v55 = vrot.slane %v8323_v22, 2  ;;  %v5917_v49 = vpack.i.bf16 %v8452_v3, %v8449_v41  ;;  %v5922_v28 = vpack.i.bf16 %v8466_v13, %v8455_v20  ;;  %9437 = vst [vmem:[#allocation42_spill] sm:$0xff] %v8486_v59  ;;  %9439 = vst [vmem:[#allocation44_spill] sm:$0xff] %v8490_v23 }
 0x319   : > { %v8484_v16 = vsel %vm556_vm1, %v2888_v15, %v2890_v62  ;;  %v8496_v9 = vsel %vm556_vm1, %v2893_v46, %v2895_v63  ;;  %v3034_v26 = vrot.slane %v8425_v39, 1  ;;  %v3036_v18 = vrot.slane %v2594_v50, 1 }
 0x31a   : > { %5908 = vrot.lane.b32.xlu0 %v5907_v35, %s6211_s11  ;;  %v8481_v14 = vsel %vm556_vm1, %v2887_v24, %v2888_v15  ;;  %v8488_v35 = vld [vmem:[#allocation3 + $0x1a0] sm:$0xff]  ;;  %9440 = vst [vmem:[#allocation45_spill] sm:$0xff] %v8496_v9  ;;  %v5746_v24 = vunpack.i.h.bf16 %v5744_v37  ;;  %v5745_v38 = vunpack.i.l.bf16 %v5744_v37  ;;  %v2898_v62 = vrot.slane %v8380_v33, 2 }
 0x31b   : > { %5913 = vrot.lane.b32.xlu1 %v5912_v34, %s6211_s11  ;;  %9438 = vst [vmem:[#allocation43_spill] sm:$0xff] %v8488_v35  ;;  %v8493_v34 = vsel %vm556_vm1, %v2892_v55, %v2893_v46  ;;  %v2900_v15 = vrot.slane %v8382_v52, 2  ;;  %v3033_v22 = vrot.slane %v8423_v60, 1  ;;  %v3174_v55 = vrot.slane %v8486_v59, 1  ;;  %v6195_v60 = vld [vmem:[#allocation3 + $0x48] sm:$0xff] }
 0x31c   : > { %v3175_v46 = vrot.slane %v8488_v35, 1  ;;  %v3177_v63 = vrot.slane %v8490_v23, 1  ;;  %v5927_v50 = vpack.i.bf16 %v8484_v16, %v8481_v14  ;;  %v5932_v37 = vpack.i.bf16 %v8496_v9, %v8493_v34 }
 0x31d   : > { %v8516_v59 = vsel %vm890_vm6, %v3034_v26, %v3036_v18  ;;  %v8523_v35 = vsel %vm556_vm1, %v2898_v62, %v2900_v15  ;;  %v3206_v9 = vsel %vm326_vm7, %v6195_v60, %v5745_v38 }
 0x31e   : > { %5918 = vrot.lane.b32.xlu0 %v5917_v49, %s6211_s11  ;;  %v2897_v49 = vrot.slane %v8378_v58, 2  ;;  %v6196_v58 = vld [vmem:[#allocation3 + $0x50] sm:$0xff] }
 0x31f   : > { %5923 = vrot.lane.b32.xlu1 %v5922_v28, %s6211_s11  ;;  %v8513_v28 = vsel %vm890_vm6, %v3033_v22, %v3034_v26 }
 0x320   : > { %v5739_v39 = vpop.permute.xlu0 %5738  ;;  %v8520_v23 = vsel %vm556_vm1, %v2897_v49, %v2898_v62  ;;  %v3178_v62 = vsel %vm890_vm6, %v3175_v46, %v3177_v63  ;;  %v5937_v15 = vpack.i.bf16 %v8516_v59, %v8513_v28  ;;  %v5952_v49 = vpack.i.bf16 %v8463_v29, %v8460_v11 }
 0x321   : > { %v5741_v52 = vunpack.i.h.bf16 %v5739_v39  ;;  %v5740_v33 = vunpack.i.l.bf16 %v5739_v39  ;;  %v3207_v39 = vsel %vm326_vm7, %v6196_v58, %v5746_v24  ;;  %v5942_v58 = vpack.i.bf16 %v8523_v35, %v8520_v23 }
 0x322   : > { %5928 = vrot.lane.b32.xlu0 %v5927_v50, %s6211_s11  ;;  %v3176_v50 = vsel %vm890_vm6, %v3174_v55, %v3175_v46  ;;  %v8538_v60 = vpack.c.bf16 %v3207_v39, %v3206_v9  ;;  %v6198_v39 = vld [vmem:[#allocation3 + $0x68] sm:$0xff] }
 0x323   : > { %5933 = vrot.lane.b32.xlu1 %v5932_v37, %s6211_s11  ;;  %v5754_v22 = vpop.permute.xlu1 %5753  ;;  %v3238_v18 = vsel %vm326_vm7, %v8158_v57, %v5740_v33  ;;  %v3239_v26 = vsel %vm326_vm7, %v8161_v54, %v5741_v52  ;;  %v5947_v33 = vpack.i.bf16 %v3178_v62, %v3176_v50  ;;  %v6197_v52 = vld [vmem:[#allocation3 + $0x60] sm:$0xff] }
 0x324   : > { %v3314_v38 = vpack.c.bf16 %v3239_v26, %v3238_v18  ;;  %v5756_v24 = vunpack.i.h.bf16 %v5754_v22  ;;  %v5755_v37 = vunpack.i.l.bf16 %v5754_v22 }
 0x326   : > { %5938 = vrot.lane.b32.xlu0 %v5937_v15, %s6211_s11  ;;  %3765 = vmatprep.mubr.bf16.mxu0 %v3314_v38  ;;  %v3208_v9 = vsel %vm326_vm7, %v6197_v52, %v5755_v37  ;;  %v3209_v22 = vsel %vm326_vm7, %v6198_v39, %v5756_v24  ;;  %v6200_v52 = vld [vmem:[#allocation3 + $0x80] sm:$0xff] }
 0x327   : > { %5943 = vrot.lane.b32.xlu1 %v5942_v58, %s6211_s11  ;;  %3766 = vmatmul.mubr.bf16.gmra.mrb[60].mxu0 %v8538_v60  ;;  %v8553_v62 = vpack.c.bf16 %v3209_v22, %v3208_v9 }
 0x328   : > { %v5749_v55 = vpop.permute.xlu0 %5748 }
 0x329   : > { %v5751_v46 = vunpack.i.h.bf16 %v5749_v55  ;;  %v5750_v63 = vunpack.i.l.bf16 %v5749_v55  ;;  %v6199_v55 = vld [vmem:[#allocation3 + $0x78] sm:$0xff] }
 0x32a   : > { %5948 = vrot.lane.b32.xlu0 %v5947_v33, %s6211_s11 }
 0x32b   : > { %5953 = vrot.lane.b32.xlu1 %v5952_v49, %s6211_s11  ;;  %v3240_v18 = vsel %vm326_vm7, %v8195_v48, %v5750_v63  ;;  %v3241_v26 = vsel %vm326_vm7, %v8204_v31, %v5751_v46 }
 0x32c   : > { %v3318_v50 = vpack.c.bf16 %v3241_v26, %v3240_v18  ;;  %v5764_v15 = vpop.permute.xlu1 %5763 }
 0x32d   : > { %v5766_v38 = vunpack.i.h.bf16 %v5764_v15  ;;  %v5765_v58 = vunpack.i.l.bf16 %v5764_v15 }
 0x32e   : > { %3773 = vmatprep.mubr.bf16.mxu0 %v3318_v50 }
 0x32f   : > { %3774 = vmatmul.mubr.bf16.gmra.mrb[64].mxu0 %v8553_v62  ;;  %v3210_v49 = vsel %vm326_vm7, %v6199_v55, %v5765_v58  ;;  %v3211_v63 = vsel %vm326_vm7, %v6200_v52, %v5766_v38 }
 0x330   : > { %v8562_v18 = vpack.c.bf16 %v3211_v63, %v3210_v49 }
 0x338   : > { %v5759_v24 = vpop.permute.xlu0 %5758 }
 0x339   : > { %v5761_v37 = vunpack.i.h.bf16 %v5759_v24  ;;  %v5760_v33 = vunpack.i.l.bf16 %v5759_v24 }
 0x33b   : > { %v3242_v46 = vsel %vm326_vm7, %v8245_v53, %v5760_v33  ;;  %v3243_v9 = vsel %vm326_vm7, %v8248_v42, %v5761_v37 }
 0x33c   : > { %v5774_v39 = vpop.permute.xlu1 %5773  ;;  %v3322_v22 = vpack.c.bf16 %v3243_v9, %v3242_v46 }
 0x33d   : > { %v5776_v26 = vunpack.i.h.bf16 %v5774_v39  ;;  %v5775_v50 = vunpack.i.l.bf16 %v5774_v39 }
 0x33e   : > { %3781 = vmatprep.mubr.bf16.mxu0 %v3322_v22 }
 0x33f   : > { %3782 = vmatmul.mubr.bf16.gmra.mrb[68].mxu0 %v8562_v18  ;;  %v3212_v38 = vsel %vm326_vm7, %v8012_v47, %v5775_v50  ;;  %v3213_v33 = vsel %vm326_vm7, %v8021_v6, %v5776_v26 }
 0x340   : > { %v5769_v15 = vpop.permute.xlu0 %5768  ;;  %v8573_v63 = vpack.c.bf16 %v3213_v33, %v3212_v38 }
 0x341   : > { %v5771_v58 = vunpack.i.h.bf16 %v5769_v15  ;;  %v5770_v24 = vunpack.i.l.bf16 %v5769_v15 }
 0x343   : > { %v3244_v37 = vsel %vm326_vm7, %v8291_v44, %v5770_v24  ;;  %v3245_v55 = vsel %vm326_vm7, %v8294_v4, %v5771_v58 }
 0x344   : > { %v5784_v49 = vpop.permute.xlu1 %5783  ;;  %v3326_v52 = vpack.c.bf16 %v3245_v55, %v3244_v37  ;;  %v9441_v55 = vld [vmem:[#allocation4_spill] sm:$0xff] }
 0x345   : > { %v5786_v46 = vunpack.i.h.bf16 %v5784_v49  ;;  %v5785_v9 = vunpack.i.l.bf16 %v5784_v49 }
 0x346   : > { %3789 = vmatprep.mubr.bf16.mxu0 %v3326_v52 }
 0x347   : > { %3790 = vmatmul.mubr.bf16.gmra.mrb[72].mxu0 %v8573_v63  ;;  %v3214_v6 = vsel %vm326_vm7, %v8044_v43, %v5785_v9  ;;  %v3215_v26 = vsel %vm326_vm7, %v8048_v17, %v5786_v46  ;;  %v9442_v43 = vld [vmem:[#allocation5_spill] sm:$0xff] }
 0x348   : > { %v5779_v39 = vpop.permute.xlu0 %5778  ;;  %v8584_v37 = vpack.c.bf16 %v3215_v26, %v3214_v6 }
 0x349   : > { %v5781_v47 = vunpack.i.h.bf16 %v5779_v39  ;;  %v5780_v22 = vunpack.i.l.bf16 %v5779_v39 }
 0x34b   : > { %v3246_v50 = vsel %vm326_vm7, %v8330_v1, %v5780_v22  ;;  %v3247_v15 = vsel %vm326_vm7, %v8333_v19, %v5781_v47 }
 0x34c   : > { %v5789_v58 = vpop.permute.xlu0 %5788  ;;  %v3330_v24 = vpack.c.bf16 %v3247_v15, %v3246_v50 }
 0x34d   : > { %v5791_v38 = vunpack.i.h.bf16 %v5789_v58  ;;  %v5790_v33 = vunpack.i.l.bf16 %v5789_v58 }
 0x34e   : > { %3797 = vmatprep.mubr.bf16.mxu0 %v3330_v24 }
 0x34f   : > { %v3265_v49 = vsel %vm326_vm7, %v9441_v55, %v5791_v38  ;;  %v3264_v52 = vsel %vm326_vm7, %v9442_v43, %v5790_v33  ;;  %3798 = vmatmul.mubr.bf16.gmra.mrb[76].mxu0 %v8584_v37 }
 0x350   : > { %v3302_v17 = vpack.c.bf16 %v3265_v49, %v3264_v52  ;;  %v5799_v46 = vpop.permute.xlu0 %5798  ;;  %v5794_v9 = vpop.permute.xlu1 %5793  ;;  %v9444_v52 = vld [vmem:[#allocation11_spill] sm:$0xff] }
 0x351   : > { %v5801_v39 = vunpack.i.h.bf16 %v5799_v46  ;;  %v5800_v47 = vunpack.i.l.bf16 %v5799_v46  ;;  %v5796_v22 = vunpack.i.h.bf16 %v5794_v9  ;;  %v5795_v50 = vunpack.i.l.bf16 %v5794_v9 }
 0x352   : > { %3903 = vmatmul.mubr.bf16.vlgmr.msra.gmra.mrb[80].mxu1 %v3302_v17 }
 0x353   : > { %3910 = vmatprep.mubr.bf16.mxu1 %v8538_v60  ;;  %v3248_v6 = vsel %vm326_vm7, %v8362_v40, %v5795_v50  ;;  %v3249_v26 = vsel %vm326_vm7, %v8365_v12, %v5796_v22  ;;  %v3216_v15 = vsel %vm326_vm7, %v8076_v21, %v5800_v47  ;;  %v3217_v58 = vsel %vm326_vm7, %v8078_v32, %v5801_v39  ;;  %v9443_v60 = vld [vmem:[#allocation12_spill] sm:$0xff] }
 0x354   : > { %v5804_v24 = vpop.permute.xlu1 %5803  ;;  %v3334_v38 = vpack.c.bf16 %v3249_v26, %v3248_v6  ;;  %v8600_v33 = vpack.c.bf16 %v3217_v58, %v3216_v15 }
 0x355   : > { %v5806_v55 = vunpack.i.h.bf16 %v5804_v24  ;;  %v5805_v49 = vunpack.i.l.bf16 %v5804_v24 }
 0x356   : > { %3805 = vmatprep.mubr.bf16.mxu0 %v3334_v38 }
 0x357   : > { %3806 = vmatmul.mubr.bf16.gmra.mrb[80].mxu0 %v8600_v33  ;;  %v3266_v43 = vsel %vm326_vm7, %v9443_v60, %v5805_v49  ;;  %v3267_v17 = vsel %vm326_vm7, %v9444_v52, %v5806_v55 }
 0x358   : > { %v5809_v46 = vpop.permute.xlu0 %5808  ;;  %v5814_v21 = vpop.permute.xlu1 %5813  ;;  %v3307_v9 = vpack.c.bf16 %v3267_v17, %v3266_v43  ;;  %v9446_v43 = vld [vmem:[#allocation22_spill] sm:$0xff] }
 0x359   : > { %v5811_v47 = vunpack.i.h.bf16 %v5809_v46  ;;  %v5810_v32 = vunpack.i.l.bf16 %v5809_v46  ;;  %v5816_v39 = vunpack.i.h.bf16 %v5814_v21  ;;  %v5815_v22 = vunpack.i.l.bf16 %v5814_v21 }
 0x35a   : > { %3911 = vmatmul.mubr.bf16.gmra.mrb[84].mxu1 %v3307_v9 }
 0x35b   : > { %3918 = vmatprep.mubr.bf16.mxu1 %v8553_v62  ;;  %v3250_v50 = vsel %vm326_vm7, %v8404_v27, %v5810_v32  ;;  %v3251_v6 = vsel %vm326_vm7, %v8407_v45, %v5811_v47  ;;  %v3218_v26 = vsel %vm326_vm7, %v8114_v2, %v5815_v22  ;;  %v3219_v15 = vsel %vm326_vm7, %v8116_v5, %v5816_v39  ;;  %v9445_v62 = vld [vmem:[#allocation20_spill] sm:$0xff] }
 0x35c   : > { %v5819_v58 = vpop.permute.xlu0 %5818  ;;  %v3338_v24 = vpack.c.bf16 %v3251_v6, %v3250_v50  ;;  %v8616_v38 = vpack.c.bf16 %v3219_v15, %v3218_v26 }
 0x35d   : > { %v5821_v55 = vunpack.i.h.bf16 %v5819_v58  ;;  %v5820_v49 = vunpack.i.l.bf16 %v5819_v58 }
 0x35e   : > { %3813 = vmatprep.mubr.bf16.mxu0 %v3338_v24 }
 0x35f   : > { %3814 = vmatmul.mubr.bf16.gmra.mrb[84].mxu0 %v8616_v38  ;;  %v3268_v60 = vsel %vm326_vm7, %v9445_v62, %v5820_v49  ;;  %v3269_v52 = vsel %vm326_vm7, %v9446_v43, %v5821_v55  ;;  %v9448_v49 = vld [vmem:[#allocation21_spill] sm:$0xff] }
 0x360   : > { %v5829_v17 = vpop.permute.xlu0 %5828  ;;  %v5824_v2 = vpop.permute.xlu1 %5823  ;;  %v3311_v46 = vpack.c.bf16 %v3269_v52, %v3268_v60 }
 0x361   : > { %v5831_v21 = vunpack.i.h.bf16 %v5829_v17  ;;  %v5830_v5 = vunpack.i.l.bf16 %v5829_v17  ;;  %v5826_v9 = vunpack.i.h.bf16 %v5824_v2  ;;  %v5825_v47 = vunpack.i.l.bf16 %v5824_v2 }
 0x362   : > { %3919 = vmatmul.mubr.bf16.gmra.mrb[88].mxu1 %v3311_v46 }
 0x363   : > { %3926 = vmatprep.mubr.bf16.mxu1 %v8562_v18  ;;  %v3252_v32 = vsel %vm326_vm7, %v8410_v0, %v5825_v47  ;;  %v3253_v39 = vsel %vm326_vm7, %v8419_v56, %v5826_v9  ;;  %v3220_v22 = vsel %vm326_vm7, %v8151_v7, %v5830_v5  ;;  %v3221_v50 = vsel %vm326_vm7, %v8153_v8, %v5831_v21  ;;  %v9447_v18 = vld [vmem:[#allocation6_spill] sm:$0xff] }
 0x364   : > { %v5834_v6 = vpop.permute.xlu1 %5833  ;;  %v3342_v26 = vpack.c.bf16 %v3253_v39, %v3252_v32  ;;  %v8632_v15 = vpack.c.bf16 %v3221_v50, %v3220_v22 }
 0x365   : > { %v5836_v58 = vunpack.i.h.bf16 %v5834_v6  ;;  %v5835_v24 = vunpack.i.l.bf16 %v5834_v6 }
 0x366   : > { %3821 = vmatprep.mubr.bf16.mxu0 %v3342_v26  ;;  %v9450_v26 = vld [vmem:[#allocation16_spill] sm:$0xff] }
 0x367   : > { %3822 = vmatmul.mubr.bf16.gmra.mrb[88].mxu0 %v8632_v15  ;;  %v3270_v55 = vsel %vm326_vm7, %v9447_v18, %v5835_v24  ;;  %v3271_v62 = vsel %vm326_vm7, %v9448_v49, %v5836_v58 }
 0x368   : > { %v5839_v60 = vpop.permute.xlu0 %5838  ;;  %v5844_v7 = vpop.permute.xlu1 %5843  ;;  %v3315_v43 = vpack.c.bf16 %v3271_v62, %v3270_v55 }
 0x369   : > { %v5841_v52 = vunpack.i.h.bf16 %v5839_v60  ;;  %v5840_v8 = vunpack.i.l.bf16 %v5839_v60  ;;  %v5846_v17 = vunpack.i.h.bf16 %v5844_v7  ;;  %v5845_v2 = vunpack.i.l.bf16 %v5844_v7 }
 0x36a   : > { %3927 = vmatmul.mubr.bf16.gmra.mrb[92].mxu1 %v3315_v43 }
 0x36b   : > { %3934 = vmatprep.mubr.bf16.mxu1 %v8573_v63  ;;  %v3254_v46 = vsel %vm326_vm7, %v8449_v41, %v5840_v8  ;;  %v3255_v21 = vsel %vm326_vm7, %v8452_v3, %v5841_v52  ;;  %v3222_v5 = vsel %vm326_vm7, %v8199_v36, %v5845_v2  ;;  %v3223_v9 = vsel %vm326_vm7, %v8201_v51, %v5846_v17  ;;  %v9449_v63 = vld [vmem:[#allocation7_spill] sm:$0xff] }
 0x36c   : > { %v5849_v47 = vpop.permute.xlu0 %5848  ;;  %v3346_v32 = vpack.c.bf16 %v3255_v21, %v3254_v46  ;;  %v8648_v39 = vpack.c.bf16 %v3223_v9, %v3222_v5  ;;  %v9452_v9 = vld [vmem:[#allocation17_spill] sm:$0xff] }
 0x36d   : > { %v5851_v22 = vunpack.i.h.bf16 %v5849_v47  ;;  %v5850_v50 = vunpack.i.l.bf16 %v5849_v47 }
 0x36e   : > { %3829 = vmatprep.mubr.bf16.mxu0 %v3346_v32 }
 0x36f   : > { %3830 = vmatmul.mubr.bf16.gmra.mrb[92].mxu0 %v8648_v39  ;;  %v3272_v6 = vsel %vm326_vm7, %v9449_v63, %v5850_v50  ;;  %v3273_v58 = vsel %vm326_vm7, %v9450_v26, %v5851_v22 }
 0x370   : > { %v5859_v24 = vpop.permute.xlu0 %5858  ;;  %v5854_v36 = vpop.permute.xlu1 %5853  ;;  %v3319_v18 = vpack.c.bf16 %v3273_v58, %v3272_v6 }
 0x371   : > { %v5861_v55 = vunpack.i.h.bf16 %v5859_v24  ;;  %v5860_v51 = vunpack.i.l.bf16 %v5859_v24  ;;  %v5856_v49 = vunpack.i.h.bf16 %v5854_v36  ;;  %v5855_v62 = vunpack.i.l.bf16 %v5854_v36 }
 0x372   : > { %3935 = vmatmul.mubr.bf16.gmra.mrb[96].mxu1 %v3319_v18 }
 0x373   : > { %3942 = vmatprep.mubr.bf16.mxu1 %v8584_v37  ;;  %v3256_v60 = vsel %vm326_vm7, %v8455_v20, %v5855_v62  ;;  %v3257_v7 = vsel %vm326_vm7, %v8466_v13, %v5856_v49  ;;  %v3224_v43 = vsel %vm326_vm7, %v8238_v25, %v5860_v51  ;;  %v3225_v52 = vsel %vm326_vm7, %v8240_v61, %v5861_v55  ;;  %v9451_v37 = vld [vmem:[#allocation15_spill] sm:$0xff] }
 0x374   : > { %v5864_v8 = vpop.permute.xlu1 %5863  ;;  %v3350_v17 = vpack.c.bf16 %v3257_v7, %v3256_v60  ;;  %v8664_v2 = vpack.c.bf16 %v3225_v52, %v3224_v43  ;;  %v9454_v7 = vld [vmem:[#allocation19_spill] sm:$0xff] }
 0x375   : > { %v5866_v46 = vunpack.i.h.bf16 %v5864_v8  ;;  %v5865_v21 = vunpack.i.l.bf16 %v5864_v8 }
 0x376   : > { %3837 = vmatprep.mubr.bf16.mxu0 %v3350_v17 }
 0x377   : > { %3838 = vmatmul.mubr.bf16.gmra.mrb[96].mxu0 %v8664_v2  ;;  %v3274_v5 = vsel %vm326_vm7, %v9451_v37, %v5865_v21  ;;  %v3275_v47 = vsel %vm326_vm7, %v9452_v9, %v5866_v46  ;;  %v9455_v37 = vld [vmem:[#allocation32_spill] sm:$0xff]  ;;  %v9456_v9 = vld [vmem:[#allocation33_spill] sm:$0xff] }
 0x378   : > { %v5869_v32 = vpop.permute.xlu0 %5868  ;;  %v5874_v25 = vpop.permute.xlu1 %5873  ;;  %v3323_v22 = vpack.c.bf16 %v3275_v47, %v3274_v5 }
 0x379   : > { %v5871_v50 = vunpack.i.h.bf16 %v5869_v32  ;;  %v5870_v61 = vunpack.i.l.bf16 %v5869_v32  ;;  %v5876_v63 = vunpack.i.h.bf16 %v5874_v25  ;;  %v5875_v6 = vunpack.i.l.bf16 %v5874_v25  ;;  %v9457_v25 = vld [vmem:[#allocation45_spill] sm:$0xff] }
 0x37a   : > { %3943 = vmatmul.mubr.bf16.gmra.mrb[100].mxu1 %v3323_v22 }
 0x37b   : > { %3950 = vmatprep.mubr.bf16.mxu1 %v8600_v33  ;;  %v3258_v26 = vsel %vm326_vm7, %v8481_v14, %v5870_v61  ;;  %v3259_v58 = vsel %vm326_vm7, %v8484_v16, %v5871_v50  ;;  %v3226_v24 = vsel %vm326_vm7, %v8286_v30, %v5875_v6  ;;  %v3227_v36 = vsel %vm326_vm7, %v8288_v10, %v5876_v63  ;;  %v9453_v33 = vld [vmem:[#allocation8_spill] sm:$0xff] }
 0x37c   : > { %v5879_v18 = vpop.permute.xlu0 %5878  ;;  %v3354_v55 = vpack.c.bf16 %v3259_v58, %v3258_v26  ;;  %v8680_v51 = vpack.c.bf16 %v3227_v36, %v3226_v24  ;;  %v9458_v58 = vld [vmem:[#allocation18_spill] sm:$0xff]  ;;  %v9459_v36 = vld [vmem:[#allocation9_spill] sm:$0xff] }
 0x37d   : > { %v5881_v49 = vunpack.i.h.bf16 %v5879_v18  ;;  %v5880_v62 = vunpack.i.l.bf16 %v5879_v18 }
 0x37e   : > { %3845 = vmatprep.mubr.bf16.mxu0 %v3354_v55 }
 0x37f   : > { %3846 = vmatmul.mubr.bf16.gmra.mrb[100].mxu0 %v8680_v51  ;;  %v3276_v60 = vsel %vm326_vm7, %v9453_v33, %v5880_v62  ;;  %v3277_v43 = vsel %vm326_vm7, %v9454_v7, %v5881_v49 }
 0x380   : > { %v5889_v52 = vpop.permute.xlu0 %5888  ;;  %v3327_v30 = vpack.c.bf16 %v3277_v43, %v3276_v60 }
 0x381   : > { %v5891_v8 = vunpack.i.h.bf16 %v5889_v52  ;;  %v5890_v17 = vunpack.i.l.bf16 %v5889_v52  ;;  %v5884_v10 = vpop.permute.xlu1 %5883 }
 0x382   : > { %v5886_v46 = vunpack.i.h.bf16 %v5884_v10  ;;  %v5885_v21 = vunpack.i.l.bf16 %v5884_v10  ;;  %3951 = vmatmul.mubr.bf16.gmra.mrb[104].mxu1 %v3327_v30 }
 0x383   : > { %3958 = vmatprep.mubr.bf16.mxu1 %v8616_v38  ;;  %v3228_v5 = vsel %vm326_vm7, %v9455_v37, %v5890_v17  ;;  %v3229_v47 = vsel %vm326_vm7, %v9456_v9, %v5891_v8  ;;  %v9460_v17 = vld [vmem:[#allocation36_spill] sm:$0xff] }
 0x384   : > { %v3260_v32 = vsel %vm326_vm7, %v8493_v34, %v5885_v21  ;;  %v3261_v22 = vsel %vm326_vm7, %v9457_v25, %v5886_v46  ;;  %v8696_v50 = vpack.c.bf16 %v3229_v47, %v3228_v5  ;;  %v9461_v46 = vld [vmem:[#allocation37_spill] sm:$0xff] }
 0x385   : > { %v5894_v61 = vpop.permute.xlu1 %5893  ;;  %v3358_v63 = vpack.c.bf16 %v3261_v22, %v3260_v32  ;;  %v9462_v32 = vld [vmem:[#allocation10_spill] sm:$0xff]  ;;  %v9463_v22 = vld [vmem:[#allocation24_spill] sm:$0xff] }
 0x386   : > { %v5896_v6 = vunpack.i.h.bf16 %v5894_v61  ;;  %v5895_v26 = vunpack.i.l.bf16 %v5894_v61  ;;  %v3304_v61 = vpack.c.bf16 %v9463_v22, %v9462_v32  ;;  %v9473_v22 = vld [vmem:[#allocation31_spill] sm:$0xff] }
 0x387   : > { %3853 = vmatprep.mubr.bf16.mxu0 %v3358_v63  ;;  %v9464_v63 = vld [vmem:[#allocation23_spill] sm:$0xff] }
 0x388   : > { %3854 = vmatmul.mubr.bf16.gmra.mrb[104].mxu0 %v8696_v50  ;;  %v5899_v38 = vpop.permute.xlu0 %5898  ;;  %v3278_v24 = vsel %vm326_vm7, %v9458_v58, %v5895_v26  ;;  %v3279_v18 = vsel %vm326_vm7, %v9459_v36, %v5896_v6  ;;  %v3309_v36 = vpack.c.bf16 %v8161_v54, %v8158_v57  ;;  %v3317_v57 = vpack.c.bf16 %v8248_v42, %v8245_v53  ;;  %v9468_v54 = vld [vmem:[#allocation26_spill] sm:$0xff]  ;;  %v9470_v42 = vld [vmem:[#allocation28_spill] sm:$0xff] }
 0x389   : > { %v5901_v55 = vunpack.i.h.bf16 %v5899_v38  ;;  %v5900_v49 = vunpack.i.l.bf16 %v5899_v38  ;;  %v5904_v62 = vpop.permute.xlu1 %5903  ;;  %v3331_v33 = vpack.c.bf16 %v3279_v18, %v3278_v24  ;;  %v9466_v18 = vld [vmem:[#allocation13_spill] sm:$0xff]  ;;  %v3325_v53 = vpack.c.bf16 %v8333_v19, %v8330_v1  ;;  %v9472_v19 = vld [vmem:[#allocation30_spill] sm:$0xff] }
 0x38a   : > { %v5906_v60 = vunpack.i.h.bf16 %v5904_v62  ;;  %v5905_v7 = vunpack.i.l.bf16 %v5904_v62  ;;  %v3333_v1 = vpack.c.bf16 %v8407_v45, %v8404_v27  ;;  %v3341_v45 = vpack.c.bf16 %v8452_v3, %v8449_v41 }
 0x38b   : > { %3959 = vmatmul.mubr.bf16.gmra.mrb[108].mxu1 %v3331_v33  ;;  %v3262_v43 = vsel %vm326_vm7, %v8520_v23, %v5900_v49  ;;  %v3263_v52 = vsel %vm326_vm7, %v8523_v35, %v5901_v55  ;;  %v9467_v49 = vld [vmem:[#allocation25_spill] sm:$0xff] }
 0x38c   : > { %3966 = vmatprep.mubr.bf16.mxu1 %v8632_v15  ;;  %v5909_v30 = vpop.permute.xlu0 %5908  ;;  %v3362_v8 = vpack.c.bf16 %v3263_v52, %v3262_v43  ;;  %v3230_v10 = vsel %vm326_vm7, %v9460_v17, %v5905_v7  ;;  %v3231_v21 = vsel %vm326_vm7, %v9461_v46, %v5906_v60  ;;  %v9465_v15 = vld [vmem:[#allocation14_spill] sm:$0xff]  ;;  %v3313_v60 = vpack.c.bf16 %v8204_v31, %v8195_v48 }
 0x38d   : > { %v5911_v37 = vunpack.i.h.bf16 %v5909_v30  ;;  %v5910_v5 = vunpack.i.l.bf16 %v5909_v30  ;;  %v3356_v9 = vpack.c.bf16 %v3231_v21, %v3230_v10  ;;  %v5914_v47 = vpop.permute.xlu1 %5913  ;;  %v9469_v30 = vld [vmem:[#allocation27_spill] sm:$0xff]  ;;  %v3321_v31 = vpack.c.bf16 %v8294_v4, %v8291_v44  ;;  %v9471_v21 = vld [vmem:[#allocation29_spill] sm:$0xff] }
 0x38e   : > { %3861 = vmatprep.mubr.bf16.mxu0 %v3362_v8  ;;  %v5916_v58 = vunpack.i.h.bf16 %v5914_v47  ;;  %v5915_v24 = vunpack.i.l.bf16 %v5914_v47  ;;  %v3329_v4 = vpack.c.bf16 %v8365_v12, %v8362_v40  ;;  %v3337_v12 = vpack.c.bf16 %v8419_v56, %v8410_v0 }
 0x38f   : > { %v3280_v6 = vsel %vm326_vm7, %v9464_v63, %v5910_v5  ;;  %v3281_v26 = vsel %vm326_vm7, %v9465_v15, %v5911_v37 }
 0x390   : > { %3862 = vmatmul.mubr.bf16.gmra.mrb[108].mxu0 %v3356_v9  ;;  %v3335_v38 = vpack.c.bf16 %v3281_v26, %v3280_v6  ;;  %v3282_v55 = vsel %vm326_vm7, %v9466_v18, %v5915_v24  ;;  %v3283_v62 = vsel %vm326_vm7, %v9467_v49, %v5916_v58  ;;  %v5919_v33 = vpop.permute.xlu0 %5918  ;;  %v9475_v24 = vld [vmem:[#allocation35_spill] sm:$0xff]  ;;  %v3345_v18 = vpack.c.bf16 %v8466_v13, %v8455_v20 }
 0x391   : > { %5178 = vmatprep.mubr.msk.bf16.mxu0 %vm326_vm7, %v3304_v61  ;;  %v3339_v7 = vpack.c.bf16 %v3283_v62, %v3282_v55  ;;  %v5921_v43 = vunpack.i.h.bf16 %v5919_v33  ;;  %v5924_v48 = vpop.permute.xlu1 %5923  ;;  %v9476_v55 = vld [vmem:[#allocation40_spill] sm:$0xff]  ;;  %v9477_v62 = vld [vmem:[#allocation41_spill] sm:$0xff]  ;;  %v9479_v13 = vld [vmem:[#allocation43_spill] sm:$0xff] }
 0x392   : > { %v5926_v10 = vunpack.i.h.bf16 %v5924_v48 }
 0x393   : > { %3967 = vmatmul.mubr.bf16.gmra.mrb[112].mxu1 %v3335_v38  ;;  %v3285_v8 = vsel %vm326_vm7, %v9469_v30, %v5921_v43  ;;  %v9474_v38 = vld [vmem:[#allocation34_spill] sm:$0xff] }
 0x394   : > { %3974 = vmatprep.mubr.bf16.mxu1 %v8648_v39  ;;  %v5920_v39 = vunpack.i.l.bf16 %v5919_v33  ;;  %v3287_v37 = vsel %vm326_vm7, %v9471_v21, %v5926_v10  ;;  %v5929_v44 = vpop.permute.xlu0 %5928 }
 0x395   : > { %v5931_v47 = vunpack.i.h.bf16 %v5929_v44  ;;  %v5934_v40 = vpop.permute.xlu1 %5933 }
 0x396   : > { %v3284_v52 = vsel %vm326_vm7, %v9468_v54, %v5920_v39  ;;  %v5935_v15 = vunpack.i.l.bf16 %v5934_v40  ;;  %v9478_v39 = vld [vmem:[#allocation42_spill] sm:$0xff]  ;;  %v3349_v54 = vpack.c.bf16 %v8484_v16, %v8481_v14  ;;  %v3192_v16 = vrot.slane %v9479_v13, 2 }
 0x397   : > { %v3343_v17 = vpack.c.bf16 %v3285_v8, %v3284_v52  ;;  %v3289_v61 = vsel %vm326_vm7, %v9473_v22, %v5931_v47  ;;  %v9480_v52 = vld [vmem:[#allocation38_spill] sm:$0xff]  ;;  %v9481_v8 = vld [vmem:[#allocation39_spill] sm:$0xff]  ;;  %v3191_v14 = vrot.slane %v9478_v39, 2 }
 0x398   : > { %5179 = vmatmul.mubr.msk.bf16.vlgmr.msra.gmra.mrb[112].mxu0 %vm326_vm7, %v3309_v36  ;;  %v5939_v63 = vpop.permute.xlu0 %5938  ;;  %v3290_v58 = vsel %vm326_vm7, %v9474_v38, %v5935_v15 }
 0x399   : > { %5182 = vmatprep.mubr.msk.bf16.mxu0 %vm326_vm7, %v3313_v60  ;;  %v5941_v26 = vunpack.i.h.bf16 %v5939_v63  ;;  %v5940_v27 = vunpack.i.l.bf16 %v5939_v63  ;;  %v5944_v36 = vpop.permute.xlu1 %5943 }
 0x39a   : > { %v5946_v60 = vunpack.i.h.bf16 %v5944_v36 }
 0x39b   : > { %3975 = vmatmul.mubr.bf16.gmra.mrb[116].mxu1 %v3339_v7  ;;  %v3296_v49 = vsel %vm326_vm7, %v9476_v55, %v5940_v27  ;;  %v5945_v7 = vunpack.i.l.bf16 %v5944_v36 }
 0x39c   : > { %3982 = vmatprep.mubr.bf16.mxu1 %v8664_v2  ;;  %v5925_v2 = vunpack.i.l.bf16 %v5924_v48  ;;  %v5949_v56 = vpop.permute.xlu0 %5948  ;;  %v3293_v48 = vsel %vm326_vm7, %v9481_v8, %v5946_v60 }
 0x39d   : > { %v5951_v3 = vunpack.i.h.bf16 %v5949_v56  ;;  %v5950_v33 = vunpack.i.l.bf16 %v5949_v56  ;;  %v3292_v30 = vsel %vm326_vm7, %v9480_v52, %v5945_v7 }
 0x39e   : > { %v3286_v46 = vsel %vm326_vm7, %v9470_v42, %v5925_v2  ;;  %v3359_v2 = vpack.c.bf16 %v3293_v48, %v3292_v30 }
 0x39f   : > { %v3347_v5 = vpack.c.bf16 %v3287_v37, %v3286_v46  ;;  %v3298_v20 = vsel %vm326_vm7, %v9478_v39, %v5950_v33  ;;  %v9482_v46 = vld [vmem:[#allocation44_spill] sm:$0xff] }
 0x3a0   : > { %5183 = vmatmul.mubr.msk.bf16.gmra.mrb[116].mxu0 %vm326_vm7, %v3317_v57  ;;  %v3299_v57 = vsel %vm326_vm7, %v9479_v13, %v5951_v3  ;;  %v3194_v21 = vrot.slane %v9482_v46, 2 }
 0x3a1   : > { %5186 = vmatprep.mubr.msk.bf16.mxu0 %vm326_vm7, %v3321_v31  ;;  %v5954_v31 = vpop.permute.xlu1 %5953  ;;  %v3364_v10 = vpack.c.bf16 %v3299_v57, %v3298_v20 }
 0x3a2   : > { %v5955_v42 = vunpack.i.l.bf16 %v5954_v31 }
 0x3a3   : > { %3983 = vmatmul.mubr.bf16.gmra.mrb[120].mxu1 %v3343_v17  ;;  %v3353_v17 = vpack.c.bf16 %v9457_v25, %v8493_v34  ;;  %v3357_v34 = vpack.c.bf16 %v8523_v35, %v8520_v23  ;;  %v3193_v35 = vsel %vm556_vm1, %v3191_v14, %v3192_v16  ;;  %v3195_v23 = vsel %vm556_vm1, %v3192_v16, %v3194_v21 }
 0x3a4   : > { %3990 = vmatprep.mubr.bf16.mxu1 %v8680_v51  ;;  %v5930_v51 = vunpack.i.l.bf16 %v5929_v44  ;;  %v3294_v25 = vsel %vm326_vm7, %v8513_v28, %v5955_v42 }
 0x3a6   : > { %v3288_v32 = vsel %vm326_vm7, %v9472_v19, %v5930_v51 }
 0x3a7   : > { %v3351_v6 = vpack.c.bf16 %v3289_v61, %v3288_v32  ;;  %v3365_v32 = vpack.c.bf16 %v3195_v23, %v3193_v35 }
 0x3a8   : > { %5187 = vmatmul.mubr.msk.bf16.gmra.mrb[120].mxu0 %vm326_vm7, %v3325_v53  ;;  %v5956_v53 = vunpack.i.h.bf16 %v5954_v31 }
 0x3a9   : > { %5190 = vmatprep.mubr.msk.bf16.mxu0 %vm326_vm7, %v3329_v4 }
 0x3aa   : > { %v3295_v44 = vsel %vm326_vm7, %v8516_v59, %v5956_v53 }
 0x3ab   : > { %3991 = vmatmul.mubr.bf16.gmra.mrb[124].mxu1 %v3347_v5  ;;  %v3363_v19 = vpack.c.bf16 %v3295_v44, %v3294_v25 }
 0x3ac   : > { %3998 = vmatprep.mubr.bf16.mxu1 %v8696_v50  ;;  %v5936_v50 = vunpack.i.h.bf16 %v5934_v40 }
 0x3ae   : > { %v3291_v0 = vsel %vm326_vm7, %v9475_v24, %v5936_v50 }
 0x3af   : > { %v3355_v41 = vpack.c.bf16 %v3291_v0, %v3290_v58 }
 0x3b0   : > { %5191 = vmatmul.mubr.msk.bf16.gmra.mrb[124].mxu0 %vm326_vm7, %v3333_v1  ;;  %v9483_v1 = vpack.c.bf16 %v8463_v29, %v8460_v11 }
 0x3b1   : > { %5194 = vmatprep.mubr.msk.bf16.mxu0 %vm326_vm7, %v3337_v12 }
 0x3b3   : > { %3999 = vmatmul.mubr.bf16.gmra.mrb[128].mxu1 %v3351_v6 }
 0x3b4   : > { %4006 = vmatprep.mubr.bf16.mxu1 %v3356_v9  ;;  %v3297_v9 = vsel %vm326_vm7, %v9477_v62, %v5941_v26 }
 0x3b5   : > { %v3360_v43 = vpack.c.bf16 %v3297_v9, %v3296_v49 }
 0x3b8   : > { %5195 = vmatmul.mubr.msk.bf16.gmra.mrb[128].mxu0 %vm326_vm7, %v3341_v45 }
 0x3b9   : > { %5198 = vmatprep.mubr.msk.bf16.mxu0 %vm326_vm7, %v3345_v18 }
 0x3bb   : > { %4007 = vmatmul.mubr.bf16.gmra.mrb[132].mxu1 %v3355_v41 }
 0x3bc   : > { %4014 = vmatprep.mubr.bf16.mxu1 %v3360_v43 }
 0x3c0   : > { %5199 = vmatmul.mubr.msk.bf16.gmra.mrb[132].mxu0 %vm326_vm7, %v3349_v54 }
 0x3c1   : > { %5202 = vmatprep.mubr.msk.bf16.mxu0 %vm326_vm7, %v3353_v17 }
 0x3c3   : > { %4015 = vmatmul.mubr.bf16.gmra.mrb[136].mxu1 %v3359_v2 }
 0x3c4   : > { %4022 = vmatprep.mubr.bf16.mxu1 %v3364_v10  ;;  %v4870_v37 = vpop.f32.mrb[48].mxu0  ;;  %v8833_v10 = vld [vmem:[%s9273_s6] ss:$0 sm:$0xff] }
 0x3c5   : > { %v4871_v4 = vpop.f32.mrb[49].mxu0 }
 0x3c6   : > { %v4872_v5 = vadd.f32 %v4871_v4, %v4870_v37  ;;  %v4873_v47 = vpop.f32.mrb[50].mxu0 }
 0x3c7   : > { %v4874_v51 = vpop.f32.mrb[51].mxu0 }
 0x3c8   : > { %5203 = vmatmul.mubr.msk.bf16.gmra.mrb[136].mxu0 %vm326_vm7, %v3357_v34  ;;  %v4875_v28 = vadd.f32 %v4874_v51, %v4873_v47  ;;  %v3744_v42 = vadd.f32 %v4872_v5, %v8833_v10 }
 0x3c9   : > { %5206 = vmatprep.mubr.msk.bf16.mxu0 %vm326_vm7, %v9483_v1 }
 0x3ca   : > { %v3747_v21 = vadd.f32 %v4875_v28, %v8833_v10 }
 0x3cb   : > { %4023 = vmatmul.mubr.bf16.gmra.mrb[140].mxu1 %v3363_v19 }
 0x3d0   : > { %5207 = vmatmul.mubr.msk.bf16.gmra.mrb[140].mxu0 %vm326_vm7, %v3365_v32 }
 0x3e2   : > { %v4876_v59 = vpop.f32.mrb[52].mxu0 }
 0x3e3   : > { %v4877_v22 = vpop.f32.mrb[53].mxu0 }
 0x3e4   : > { %v4878_v61 = vadd.f32 %v4877_v22, %v4876_v59  ;;  %v4879_v40 = vpop.f32.mrb[54].mxu0 }
 0x3e5   : > { %v4880_v12 = vpop.f32.mrb[55].mxu0 }
 0x3e6   : > { %v4881_v63 = vadd.f32 %v4880_v12, %v4879_v40  ;;  %v3752_v23 = vadd.f32 %v4878_v61, %v8833_v10 }
 0x3e8   : > { %v3755_v22 = vadd.f32 %v4881_v63, %v8833_v10 }
 0x3ea   : > { %v4882_v6 = vpop.f32.mrb[56].mxu0 }
 0x3eb   : > { %v4883_v29 = vpop.f32.mrb[57].mxu0 }
 0x3ec   : > { %v8808_v11 = vadd.f32 %v4883_v29, %v4882_v6  ;;  %v4885_v50 = vpop.f32.mrb[58].mxu0 }
 0x3ed   : > { %v4886_v15 = vpop.f32.mrb[59].mxu0 }
 0x3ee   : > { %v8810_v26 = vadd.f32 %v4886_v15, %v4885_v50 }
 0x3fa   : > { %v4888_v27 = vpop.f32.mrb[60].mxu0 }
 0x3fb   : > { %v4889_v45 = vpop.f32.mrb[61].mxu0 }
 0x3fc   : > { %v8812_v38 = vadd.f32 %v4889_v45, %v4888_v27  ;;  %v4891_v58 = vpop.f32.mrb[62].mxu0 }
 0x3fd   : > { %v4892_v24 = vpop.f32.mrb[63].mxu0 }
 0x3fe   : > { %v8814_v0 = vadd.f32 %v4892_v24, %v4891_v58 }
 0x402   : > { %v4894_v56 = vpop.f32.mrb[64].mxu0 }
 0x403   : > { %v4895_v36 = vpop.f32.mrb[65].mxu0 }
 0x404   : > { %v8816_v18 = vadd.f32 %v4895_v36, %v4894_v56  ;;  %v4897_v55 = vpop.f32.mrb[66].mxu0  ;;  %v3760_v56 = vadd.f32 %v8808_v11, %v8833_v10 }
 0x405   : > { %v4898_v49 = vpop.f32.mrb[67].mxu0 }
 0x406   : > { %v8818_v62 = vadd.f32 %v4898_v49, %v4897_v55  ;;  %v3763_v49 = vadd.f32 %v8810_v26, %v8833_v10 }
 0x412   : > { %v4900_v9 = vpop.f32.mrb[68].mxu0 }
 0x413   : > { %v4901_v41 = vpop.f32.mrb[69].mxu0 }
 0x414   : > { %v8820_v3 = vadd.f32 %v4901_v41, %v4900_v9  ;;  %v4903_v33 = vpop.f32.mrb[70].mxu0 }
 0x415   : > { %v4904_v60 = vpop.f32.mrb[71].mxu0 }
 0x416   : > { %v8822_v7 = vadd.f32 %v4904_v60, %v4903_v33 }
 0x41a   : > { %v4906_v43 = vpop.f32.mrb[72].mxu0 }
 0x41b   : > { %v4907_v39 = vpop.f32.mrb[73].mxu0 }
 0x41c   : > { %v8824_v20 = vadd.f32 %v4907_v39, %v4906_v43  ;;  %v4909_v13 = vpop.f32.mrb[74].mxu0 }
 0x41d   : > { %v4910_v57 = vpop.f32.mrb[75].mxu0 }
 0x41e   : > { %v8826_v54 = vadd.f32 %v4910_v57, %v4909_v13 }
 0x422   : > { %v4912_v52 = vpop.f32.mrb[76].mxu0 }
 0x423   : > { %v4913_v30 = vpop.f32.mrb[77].mxu0 }
 0x424   : > { %v8828_v8 = vadd.f32 %v4913_v30, %v4912_v52  ;;  %v4915_v48 = vpop.f32.mrb[78].mxu0 }
 0x425   : > { %v4916_v31 = vpop.f32.mrb[79].mxu0  ;;  %v4982_v17 = vpop.f32.mrb[80].mxu1 }
 0x426   : > { %v8835_v2 = vadd.f32 %v4916_v31, %v4915_v48  ;;  %v4983_v53 = vpop.f32.mrb[81].mxu1  ;;  %v3768_v48 = vadd.f32 %v8812_v38, %v8833_v10 }
 0x427   : > { %v4984_v14 = vadd.f32 %v4983_v53, %v4982_v17  ;;  %v4985_v16 = vpop.f32.mrb[82].mxu1  ;;  %v3771_v53 = vadd.f32 %v8814_v0, %v8833_v10 }
 0x428   : > { %v4986_v46 = vpop.f32.mrb[83].mxu1 }
 0x429   : > { %v4987_v37 = vadd.f32 %v4986_v46, %v4985_v16  ;;  %v8839_v34 = vadd.f32 %v4984_v14, %v3744_v42 }
 0x42a   : > { %v4918_v25 = vpop.f32.mrb[80].mxu0 }
 0x42b   : > { %v4919_v44 = vpop.f32.mrb[81].mxu0  ;;  %v8841_v4 = vadd.f32 %v4987_v37, %v3747_v21 }
 0x42c   : > { %v8843_v47 = vadd.f32 %v4919_v44, %v4918_v25  ;;  %v4921_v51 = vpop.f32.mrb[82].mxu0 }
 0x42d   : > { %v4922_v1 = vpop.f32.mrb[83].mxu0  ;;  %v4988_v19 = vpop.f32.mrb[84].mxu1 }
 0x42e   : > { %v8845_v35 = vadd.f32 %v4922_v1, %v4921_v51  ;;  %v4989_v5 = vpop.f32.mrb[85].mxu1 }
 0x42f   : > { %v4990_v32 = vadd.f32 %v4989_v5, %v4988_v19  ;;  %v4991_v59 = vpop.f32.mrb[86].mxu1  ;;  %v3776_v19 = vadd.f32 %v8816_v18, %v8833_v10 }
 0x430   : > { %v4992_v28 = vpop.f32.mrb[87].mxu1 }
 0x431   : > { %v4993_v40 = vadd.f32 %v4992_v28, %v4991_v59  ;;  %v8849_v12 = vadd.f32 %v4990_v32, %v3752_v23  ;;  %v3779_v32 = vadd.f32 %v8818_v62, %v8833_v10 }
 0x432   : > { %v4924_v6 = vpop.f32.mrb[84].mxu0 }
 0x433   : > { %v4925_v29 = vpop.f32.mrb[85].mxu0  ;;  %v8851_v50 = vadd.f32 %v4993_v40, %v3755_v22 }
 0x434   : > { %v8853_v15 = vadd.f32 %v4925_v29, %v4924_v6  ;;  %v4927_v27 = vpop.f32.mrb[86].mxu0 }
 0x435   : > { %v4928_v45 = vpop.f32.mrb[87].mxu0  ;;  %v4994_v58 = vpop.f32.mrb[88].mxu1 }
 0x436   : > { %v8855_v24 = vadd.f32 %v4928_v45, %v4927_v27  ;;  %v4995_v61 = vpop.f32.mrb[89].mxu1 }
 0x437   : > { %v4996_v36 = vadd.f32 %v4995_v61, %v4994_v58  ;;  %v4997_v63 = vpop.f32.mrb[90].mxu1 }
 0x438   : > { %v4998_v55 = vpop.f32.mrb[91].mxu1 }
 0x439   : > { %v4999_v9 = vadd.f32 %v4998_v55, %v4997_v63  ;;  %v8861_v41 = vadd.f32 %v4996_v36, %v3760_v56  ;;  %v3784_v56 = vadd.f32 %v8820_v3, %v8833_v10  ;;  %v3787_v55 = vadd.f32 %v8822_v7, %v8833_v10 }
 0x43a   : > { %v4930_v33 = vpop.f32.mrb[88].mxu0 }
 0x43b   : > { %v4931_v60 = vpop.f32.mrb[89].mxu0  ;;  %v8863_v43 = vadd.f32 %v4999_v9, %v3763_v49 }
 0x43c   : > { %v8865_v39 = vadd.f32 %v4931_v60, %v4930_v33  ;;  %v4933_v13 = vpop.f32.mrb[90].mxu0 }
 0x43d   : > { %v4934_v57 = vpop.f32.mrb[91].mxu0  ;;  %v5000_v52 = vpop.f32.mrb[92].mxu1 }
 0x43e   : > { %v8867_v30 = vadd.f32 %v4934_v57, %v4933_v13  ;;  %v5001_v11 = vpop.f32.mrb[93].mxu1 }
 0x43f   : > { %v5002_v31 = vadd.f32 %v5001_v11, %v5000_v52  ;;  %v5003_v26 = vpop.f32.mrb[94].mxu1 }
 0x440   : > { %v5004_v17 = vpop.f32.mrb[95].mxu1 }
 0x441   : > { %v5005_v42 = vadd.f32 %v5004_v17, %v5003_v26  ;;  %v8873_v14 = vadd.f32 %v5002_v31, %v3768_v48  ;;  %v3792_v26 = vadd.f32 %v8824_v20, %v8833_v10 }
 0x442   : > { %v4936_v16 = vpop.f32.mrb[92].mxu0 }
 0x443   : > { %v4937_v46 = vpop.f32.mrb[93].mxu0  ;;  %v8875_v21 = vadd.f32 %v5005_v42, %v3771_v53  ;;  %v3795_v42 = vadd.f32 %v8826_v54, %v8833_v10 }
 0x444   : > { %v8877_v37 = vadd.f32 %v4937_v46, %v4936_v16  ;;  %v4939_v25 = vpop.f32.mrb[94].mxu0 }
 0x445   : > { %v4940_v44 = vpop.f32.mrb[95].mxu0  ;;  %v5006_v51 = vpop.f32.mrb[96].mxu1 }
 0x446   : > { %v8879_v1 = vadd.f32 %v4940_v44, %v4939_v25  ;;  %v5007_v38 = vpop.f32.mrb[97].mxu1 }
 0x447   : > { %v5008_v5 = vadd.f32 %v5007_v38, %v5006_v51  ;;  %v5009_v0 = vpop.f32.mrb[98].mxu1 }
 0x448   : > { %v5010_v23 = vpop.f32.mrb[99].mxu1 }
 0x449   : > { %v5011_v59 = vadd.f32 %v5010_v23, %v5009_v0  ;;  %v8885_v28 = vadd.f32 %v5008_v5, %v3776_v19 }
 0x44a   : > { %v4942_v22 = vpop.f32.mrb[96].mxu0 }
 0x44b   : > { %v4943_v40 = vpop.f32.mrb[97].mxu0  ;;  %v8887_v6 = vadd.f32 %v5011_v59, %v3779_v32  ;;  %v3800_v32 = vadd.f32 %v8828_v8, %v8833_v10 }
 0x44c   : > { %v8889_v29 = vadd.f32 %v4943_v40, %v4942_v22  ;;  %v4945_v27 = vpop.f32.mrb[98].mxu0  ;;  %v3803_v40 = vadd.f32 %v8835_v2, %v8833_v10 }
 0x44d   : > { %v4946_v45 = vpop.f32.mrb[99].mxu0  ;;  %v5012_v58 = vpop.f32.mrb[100].mxu1 }
 0x44e   : > { %v8891_v61 = vadd.f32 %v4946_v45, %v4945_v27  ;;  %v5013_v18 = vpop.f32.mrb[101].mxu1 }
 0x44f   : > { %v5014_v36 = vadd.f32 %v5013_v18, %v5012_v58  ;;  %v5015_v62 = vpop.f32.mrb[102].mxu1 }
 0x450   : > { %v5016_v63 = vpop.f32.mrb[103].mxu1 }
 0x451   : > { %v5017_v49 = vadd.f32 %v5016_v63, %v5015_v62  ;;  %v8897_v9 = vadd.f32 %v5014_v36, %v3784_v56 }
 0x452   : > { %v4948_v33 = vpop.f32.mrb[100].mxu0 }
 0x453   : > { %v4949_v60 = vpop.f32.mrb[101].mxu0  ;;  %v8899_v13 = vadd.f32 %v5017_v49, %v3787_v55 }
 0x454   : > { %v8901_v57 = vadd.f32 %v4949_v60, %v4948_v33  ;;  %v4951_v52 = vpop.f32.mrb[102].mxu0  ;;  %v3808_v33 = vadd.f32 %v8843_v47, %v8833_v10 }
 0x455   : > { %v4952_v11 = vpop.f32.mrb[103].mxu0  ;;  %v5018_v48 = vpop.f32.mrb[104].mxu1 }
 0x456   : > { %v8903_v31 = vadd.f32 %v4952_v11, %v4951_v52  ;;  %v5019_v3 = vpop.f32.mrb[105].mxu1  ;;  %v3811_v11 = vadd.f32 %v8845_v35, %v8833_v10 }
 0x457   : > { %v5020_v17 = vadd.f32 %v5019_v3, %v5018_v48  ;;  %v5021_v7 = vpop.f32.mrb[106].mxu1 }
 0x458   : > { %v5022_v53 = vpop.f32.mrb[107].mxu1 }
 0x459   : > { %v5023_v16 = vadd.f32 %v5022_v53, %v5021_v7  ;;  %v8909_v46 = vadd.f32 %v5020_v17, %v3792_v26 }
 0x45b   : > { %v4954_v25 = vpop.f32.mrb[104].mxu0  ;;  %v8911_v44 = vadd.f32 %v5023_v16, %v3795_v42 }
 0x45c   : > { %v4955_v51 = vpop.f32.mrb[105].mxu0 }
 0x45d   : > { %v8913_v38 = vadd.f32 %v4955_v51, %v4954_v25  ;;  %v4957_v19 = vpop.f32.mrb[106].mxu0 }
 0x45e   : > { %v4958_v5 = vpop.f32.mrb[107].mxu0  ;;  %v5024_v0 = vpop.f32.mrb[108].mxu1 }
 0x45f   : > { %v8915_v23 = vadd.f32 %v4958_v5, %v4957_v19  ;;  %v5025_v20 = vpop.f32.mrb[109].mxu1 }
 0x460   : > { %v5026_v59 = vadd.f32 %v5025_v20, %v5024_v0  ;;  %v5027_v54 = vpop.f32.mrb[110].mxu1  ;;  %v3816_v0 = vadd.f32 %v8853_v15, %v8833_v10 }
 0x461   : > { %v5028_v22 = vpop.f32.mrb[111].mxu1 }
 0x462   : > { %v5029_v27 = vadd.f32 %v5028_v22, %v5027_v54  ;;  %v8921_v45 = vadd.f32 %v5026_v59, %v3800_v32  ;;  %v3819_v54 = vadd.f32 %v8855_v24, %v8833_v10 }
 0x463   : > { %v4960_v58 = vpop.f32.mrb[108].mxu0 }
 0x464   : > { %v4961_v18 = vpop.f32.mrb[109].mxu0  ;;  %v8923_v56 = vadd.f32 %v5029_v27, %v3803_v40 }
 0x465   : > { %v8925_v36 = vadd.f32 %v4961_v18, %v4960_v58  ;;  %v4963_v62 = vpop.f32.mrb[110].mxu0  ;;  %v4192_v18 = vlaneseq }
 0x466   : > { %v4964_v63 = vpop.f32.mrb[111].mxu0  ;;  %v5030_v55 = vpop.f32.mrb[112].mxu1 }
 0x467   : > { %v8927_v49 = vadd.f32 %v4964_v63, %v4963_v62  ;;  %v5031_v8 = vpop.f32.mrb[113].mxu1 }
 0x468   : > { %v5032_v60 = vadd.f32 %v5031_v8, %v5030_v55  ;;  %v5033_v2 = vpop.f32.mrb[114].mxu1 }
 0x469   : > { %v5034_v52 = vpop.f32.mrb[115].mxu1 }
 0x46a   : > { %v5035_v48 = vadd.f32 %v5034_v52, %v5033_v2  ;;  %v8933_v3 = vadd.f32 %v5032_v60, %v3808_v33  ;;  %v3824_v52 = vadd.f32 %v8865_v39, %v8833_v10 }
 0x46b   : > { %v5180_v26 = vpop.f32.mrb[112].mxu0 }
 0x46c   : > { %v8936_v17 = vadd.f32 %v5180_v26, %v8849_v12  ;;  %v4065_v7 = vpop.f32.mrb[113].mxu0  ;;  %v8938_v53 = vadd.f32 %v5035_v48, %v3811_v11  ;;  %v8978_v26 = vand.u32 127, %v4192_v18 }
 0x46d   : > { %v8941_v42 = vadd.f32 %v4065_v7, %v8839_v34  ;;  %v5181_v47 = vpop.f32.mrb[114].mxu0 }
 0x46e   : > { %v4672_v16 = vmul.f32 -1.442695, %v8936_v17  ;;  %v8945_v25 = vadd.f32 %v5181_v47, %v8851_v50  ;;  %v5036_v35 = vpop.f32.mrb[116].mxu1  ;;  %v4068_v51 = vpop.f32.mrb[115].mxu0  ;;  %vm4194_vm11 = vcmp.lt.s32.totalorder %v8978_v26, 64 }
 0x46f   : > { %v4670_v19 = vmul.f32 -1.442695, %v8941_v42  ;;  %v8949_v5 = vadd.f32 %v4068_v51, %v8841_v4  ;;  %v5037_v12 = vpop.f32.mrb[117].mxu1 }
 0x470   : > { %6029 = vpow2.f32 %v4672_v16  ;;  %v4673_v34 = vmul.f32 -1.442695, %v8945_v25  ;;  %v5038_v20 = vadd.f32 %v5037_v12, %v5036_v35  ;;  %v5039_v32 = vpop.f32.mrb[118].mxu1 }
 0x471   : > { %6031 = vpow2.f32 %v4670_v19  ;;  %v4671_v50 = vmul.f32 -1.442695, %v8949_v5  ;;  %v5040_v59 = vpop.f32.mrb[119].mxu1 }
 0x472   : > { %6033 = vpow2.f32 %v4673_v34  ;;  %v5041_v22 = vadd.f32 %v5040_v59, %v5039_v32  ;;  %v8957_v4 = vadd.f32 %v5038_v20, %v3816_v0 }
 0x473   : > { %6035 = vpow2.f32 %v4671_v50  ;;  %v5184_v40 = vpop.f32.mrb[116].mxu0 }
 0x474   : > { %v8960_v15 = vadd.f32 %v5184_v40, %v8873_v14  ;;  %v4081_v27 = vpop.f32.mrb[117].mxu0  ;;  %v8962_v58 = vadd.f32 %v5041_v22, %v3819_v54 }
 0x475   : > { %v8965_v62 = vadd.f32 %v4081_v27, %v8861_v41  ;;  %v5185_v63 = vpop.f32.mrb[118].mxu0 }
 0x476   : > { %v4676_v55 = vmul.f32 -1.442695, %v8960_v15  ;;  %v8969_v24 = vadd.f32 %v5185_v63, %v8875_v21  ;;  %v5042_v8 = vpop.f32.mrb[120].mxu1  ;;  %v4084_v33 = vpop.f32.mrb[119].mxu0 }
 0x477   : > { %v4674_v60 = vmul.f32 -1.442695, %v8965_v62  ;;  %v8973_v14 = vadd.f32 %v4084_v33, %v8863_v43  ;;  %v5043_v2 = vpop.f32.mrb[121].mxu1  ;;  %v3827_v43 = vadd.f32 %v8867_v30, %v8833_v10 }
 0x478   : > { %6037 = vpow2.f32 %v4676_v55  ;;  %v4677_v41 = vmul.f32 -1.442695, %v8969_v24  ;;  %v5044_v11 = vadd.f32 %v5043_v2, %v5042_v8  ;;  %v5045_v48 = vpop.f32.mrb[122].mxu1  ;;  %v3835_v8 = vadd.f32 %v8879_v1, %v8833_v10 }
 0x479   : > { %6039 = vpow2.f32 %v4674_v60  ;;  %v4675_v21 = vmul.f32 -1.442695, %v8973_v14  ;;  %v5046_v7 = vpop.f32.mrb[123].mxu1 }
 0x47a   : > { %v6030_v47 = vpop.eup %6029  ;;  %6041 = vpow2.f32 %v4677_v41  ;;  %v5047_v16 = vadd.f32 %v5046_v7, %v5045_v48  ;;  %v8983_v35 = vadd.f32 %v5044_v11, %v3824_v52  ;;  %v9012_v52 = vadd.f32 %v8891_v61, %v8833_v10 }
 0x47b   : > { %v6032_v39 = vpop.eup %6031  ;;  %v4325_v51 = vadd.f32 1.0, %v6030_v47  ;;  %6043 = vpow2.f32 %v4675_v21  ;;  %v5188_v19 = vpop.f32.mrb[120].mxu0  ;;  %v9017_v11 = vadd.f32 %v8901_v57, %v8833_v10 }
 0x47c   : > { %v6034_v12 = vpop.eup %6033  ;;  %v4323_v0 = vadd.f32 1.0, %v6032_v39  ;;  %v8986_v34 = vadd.f32 %v5188_v19, %v8897_v9  ;;  %v4097_v20 = vpop.f32.mrb[121].mxu0  ;;  %v8988_v32 = vadd.f32 %v5047_v16, %v3827_v43  ;;  %v3832_v9 = vadd.f32 %v8877_v37, %v8833_v10 }
 0x47d   : > { %v6036_v50 = vpop.eup %6035  ;;  %6045 = vrcp.f32 %v4325_v51  ;;  %v4326_v59 = vadd.f32 1.0, %v6034_v12  ;;  %v8991_v30 = vadd.f32 %v4097_v20, %v8885_v28  ;;  %v5189_v54 = vpop.f32.mrb[122].mxu0  ;;  %v9008_v37 = vadd.f32 %v8889_v29, %v8833_v10 }
 0x47e   : > { %6047 = vrcp.f32 %v4323_v0  ;;  %v4324_v22 = vadd.f32 1.0, %v6036_v50  ;;  %v4680_v40 = vmul.f32 -1.442695, %v8986_v34  ;;  %v5048_v27 = vpop.f32.mrb[124].mxu1  ;;  %v4100_v18 = vpop.f32.mrb[123].mxu0  ;;  %v8999_v55 = vadd.f32 %v5189_v54, %v8899_v13 }
 0x47f   : > { %6049 = vrcp.f32 %v4326_v59  ;;  %v4678_v63 = vmul.f32 -1.442695, %v8991_v30  ;;  %v5049_v28 = vpop.f32.mrb[125].mxu1  ;;  %v9004_v33 = vadd.f32 %v4100_v18, %v8887_v6  ;;  %v9023_v29 = vadd.f32 %v8903_v31, %v8833_v10 }
 0x480   : > { %6051 = vrcp.f32 %v4324_v22  ;;  %v5050_v60 = vadd.f32 %v5049_v28, %v5048_v27  ;;  %v5051_v2 = vpop.f32.mrb[126].mxu1  ;;  %v4681_v13 = vmul.f32 -1.442695, %v8999_v55  ;;  %v4197_v12 = vmax.f32 %v8936_v17, 0.0 }
 0x481   : > { %6053 = vpow2.f32 %v4680_v40  ;;  %v5052_v41 = vpop.f32.mrb[127].mxu1  ;;  %v4679_v6 = vmul.f32 -1.442695, %v9004_v33  ;;  %v4198_v40 = vmax.f32 %v8945_v25, 0.0 }
 0x482   : > { %v6038_v1 = vpop.eup %6037  ;;  %6055 = vpow2.f32 %v4678_v63  ;;  %v5053_v48 = vadd.f32 %v5052_v41, %v5051_v2  ;;  %v9025_v47 = vadd.f32 %v5050_v60, %v3832_v9 }
 0x483   : > { %v6040_v21 = vpop.eup %6039  ;;  %v4329_v61 = vadd.f32 1.0, %v6038_v1  ;;  %6057 = vpow2.f32 %v4681_v13  ;;  %v5192_v7 = vpop.f32.mrb[124].mxu0 }
 0x484   : > { %v6042_v43 = vpop.eup %6041  ;;  %v4327_v16 = vadd.f32 1.0, %v6040_v21  ;;  %6059 = vpow2.f32 %v4679_v6  ;;  %v9028_v57 = vadd.f32 %v5192_v7, %v8921_v45  ;;  %v4113_v39 = vpop.f32.mrb[125].mxu0  ;;  %v9030_v51 = vadd.f32 %v5053_v48, %v3835_v8 }
 0x485   : > { %v6044_v19 = vpop.eup %6043  ;;  %6061 = vrcp.f32 %v4329_v61  ;;  %v4330_v31 = vadd.f32 1.0, %v6042_v43  ;;  %v9034_v0 = vadd.f32 %v4113_v39, %v8909_v46  ;;  %v5193_v20 = vpop.f32.mrb[126].mxu0  ;;  %v4195_v45 = vmax.f32 %v8941_v42, 0.0 }
 0x486   : > { %6063 = vrcp.f32 %v4327_v16  ;;  %v4328_v50 = vadd.f32 1.0, %v6044_v19  ;;  %v4684_v59 = vmul.f32 -1.442695, %v9028_v57  ;;  %v5054_v54 = vpop.f32.mrb[128].mxu1  ;;  %v4116_v17 = vpop.f32.mrb[127].mxu0  ;;  %v9046_v27 = vadd.f32 %v5193_v20, %v8923_v56 }
 0x487   : > { %v6046_v22 = vpop.eup %6045  ;;  %6065 = vrcp.f32 %v4330_v31  ;;  %v4682_v46 = vmul.f32 -1.442695, %v9034_v0  ;;  %v5055_v18 = vpop.f32.mrb[129].mxu1  ;;  %v9051_v63 = vadd.f32 %v4116_v17, %v8911_v44  ;;  %v4196_v56 = vmax.f32 %v8949_v5, 0.0 }
 0x488   : > { %v6048_v9 = vpop.eup %6047  ;;  %v4421_v42 = vsel %vm4194_vm11, %v4197_v12, %v6046_v22  ;;  %6067 = vrcp.f32 %v4328_v50  ;;  %v5056_v28 = vadd.f32 %v5055_v18, %v5054_v54  ;;  %v5057_v8 = vpop.f32.mrb[130].mxu1  ;;  %v4685_v2 = vmul.f32 -1.442695, %v9046_v27 }
 0x489   : > { %v6050_v25 = vpop.eup %6049  ;;  %4453 = vst [vmem:[%s9039_s13 + $0x10] sm:$0xff] %v4421_v42  ;;  %v4419_v60 = vsel %vm4194_vm11, %v4195_v45, %v6048_v9  ;;  %6069 = vpow2.f32 %v4684_v59  ;;  %v5058_v13 = vpop.f32.mrb[131].mxu1  ;;  %v9060_v44 = vadd.f32 %v8913_v38, %v8833_v10  ;;  %v4683_v6 = vmul.f32 -1.442695, %v9051_v63 }
 0x48a   : > { %v6052_v41 = vpop.eup %6051  ;;  %4451 = vst [vmem:[%s9039_s13] sm:$0xff] %v4419_v60  ;;  %v4422_v1 = vsel %vm4194_vm11, %v4198_v40, %v6050_v25  ;;  %6071 = vpow2.f32 %v4682_v46  ;;  %v5059_v21 = vadd.f32 %v5058_v13, %v5057_v8  ;;  %v9070_v7 = vadd.f32 %v5056_v28, %v9008_v37 }
 0x48b   : > { %v6054_v48 = vpop.eup %6053  ;;  %4454 = vst [vmem:[%s9039_s13 + $0x18] sm:$0xff] %v4422_v1  ;;  %v4420_v5 = vsel %vm4194_vm11, %v4196_v56, %v6052_v41  ;;  %6073 = vpow2.f32 %v4685_v2  ;;  %v5196_v61 = vpop.f32.mrb[128].mxu0  ;;  %v9074_v43 = vadd.f32 %v8915_v23, %v8833_v10  ;;  %v4201_v31 = vmax.f32 %v8960_v15, 0.0 }
 0x48c   : > { %v6056_v38 = vpop.eup %6055  ;;  %4452 = vst [vmem:[%s9039_s13 + $0x8] sm:$0xff] %v4420_v5  ;;  %v4333_v16 = vadd.f32 1.0, %v6054_v48  ;;  %6075 = vpow2.f32 %v4683_v6  ;;  %v9078_v39 = vadd.f32 %v5196_v61, %v8957_v4  ;;  %v4129_v19 = vpop.f32.mrb[129].mxu0  ;;  %v9085_v50 = vadd.f32 %v5059_v21, %v9012_v52 }
 0x48d   : > { %v6058_v12 = vpop.eup %6057  ;;  %v4331_v20 = vadd.f32 1.0, %v6056_v38  ;;  %v9082_v45 = vadd.f32 %v4129_v19, %v8933_v3  ;;  %v5197_v37 = vpop.f32.mrb[130].mxu0  ;;  %v4199_v59 = vmax.f32 %v8965_v62, 0.0  ;;  %v4202_v15 = vmax.f32 %v8969_v24, 0.0 }
 0x48e   : > { %v6060_v23 = vpop.eup %6059  ;;  %6077 = vrcp.f32 %v4333_v16  ;;  %v4334_v54 = vadd.f32 1.0, %v6058_v12  ;;  %v4688_v4 = vmul.f32 -1.442695, %v9078_v39  ;;  %v5060_v17 = vpop.f32.mrb[132].mxu1  ;;  %v9094_v9 = vadd.f32 %v5197_v37, %v8962_v58 }
 0x48f   : > { %v4132_v22 = vpop.f32.mrb[131].mxu0  ;;  %v6062_v40 = vpop.eup %6061  ;;  %6079 = vrcp.f32 %v4331_v20  ;;  %v4332_v3 = vadd.f32 1.0, %v6060_v23  ;;  %v4686_v46 = vmul.f32 -1.442695, %v9082_v45  ;;  %v4200_v25 = vmax.f32 %v8973_v14, 0.0 }
 0x490   : > { %v5061_v18 = vpop.f32.mrb[133].mxu1  ;;  %v6064_v52 = vpop.eup %6063  ;;  %v4425_v62 = vsel %vm4194_vm11, %v4201_v31, %v6062_v40  ;;  %6081 = vrcp.f32 %v4334_v54  ;;  %v9097_v42 = vadd.f32 %v4132_v22, %v8938_v53  ;;  %v9105_v58 = vadd.f32 %v8925_v36, %v8833_v10 }
 0x491   : > { %v5063_v28 = vpop.f32.mrb[134].mxu1  ;;  %v6066_v24 = vpop.eup %6065  ;;  %4457 = vst [vmem:[%s9039_s13 + $0x30] sm:$0xff] %v4425_v62  ;;  %v4423_v8 = vsel %vm4194_vm11, %v4199_v59, %v6064_v52  ;;  %6083 = vrcp.f32 %v4332_v3  ;;  %v5062_v60 = vadd.f32 %v5061_v18, %v5060_v17  ;;  %v4689_v13 = vmul.f32 -1.442695, %v9094_v9 }
 0x492   : > { %v5064_v56 = vpop.f32.mrb[135].mxu1  ;;  %v6068_v2 = vpop.eup %6067  ;;  %4455 = vst [vmem:[%s9039_s13 + $0x20] sm:$0xff] %v4423_v8  ;;  %v4426_v53 = vsel %vm4194_vm11, %v4202_v15, %v6066_v24  ;;  %6085 = vpow2.f32 %v4688_v4  ;;  %v9113_v14 = vadd.f32 %v8927_v49, %v8833_v10  ;;  %v4687_v36 = vmul.f32 -1.442695, %v9097_v42 }
 0x493   : > { %v6070_v41 = vpop.eup %6069  ;;  %4458 = vst [vmem:[%s9039_s13 + $0x38] sm:$0xff] %v4426_v53  ;;  %v4424_v1 = vsel %vm4194_vm11, %v4200_v25, %v6068_v2  ;;  %6087 = vpow2.f32 %v4686_v46  ;;  %v5200_v6 = vpop.f32.mrb[132].mxu0  ;;  %v5065_v21 = vadd.f32 %v5064_v56, %v5063_v28  ;;  %v4009_v12 = vadd.f32 %v5062_v60, %v9017_v11 }
 0x494   : > { %v6072_v48 = vpop.eup %6071  ;;  %4456 = vst [vmem:[%s9039_s13 + $0x28] sm:$0xff] %v4424_v1  ;;  %v4337_v5 = vadd.f32 1.0, %v6070_v41  ;;  %6089 = vpow2.f32 %v4689_v13  ;;  %v9121_v61 = vadd.f32 %v5200_v6, %v9025_v47  ;;  %v4145_v38 = vpop.f32.mrb[133].mxu0  ;;  %v4205_v20 = vmax.f32 %v8986_v34, 0.0 }
 0x495   : > { %v6074_v16 = vpop.eup %6073  ;;  %v4335_v10 = vadd.f32 1.0, %v6072_v48  ;;  %6091 = vpow2.f32 %v4687_v36  ;;  %v9124_v49 = vadd.f32 %v4145_v38, %v8983_v35  ;;  %v5201_v19 = vpop.f32.mrb[134].mxu0  ;;  %v4203_v54 = vmax.f32 %v8991_v30, 0.0 }
 0x496   : > { %v6076_v31 = vpop.eup %6075  ;;  %6093 = vrcp.f32 %v4337_v5  ;;  %v4338_v37 = vadd.f32 1.0, %v6074_v16  ;;  %v4692_v23 = vmul.f32 -1.442695, %v9121_v61  ;;  %v5066_v59 = vpop.f32.mrb[136].mxu1  ;;  %v9132_v11 = vadd.f32 %v5201_v19, %v9030_v51 }
 0x497   : > { %v4148_v47 = vpop.f32.mrb[135].mxu0  ;;  %6095 = vrcp.f32 %v4335_v10  ;;  %v4336_v4 = vadd.f32 1.0, %v6076_v31  ;;  %v4690_v35 = vmul.f32 -1.442695, %v9124_v49  ;;  %v5067_v17 = vpop.f32.mrb[137].mxu1  ;;  %v4206_v46 = vmax.f32 %v8999_v55, 0.0 }
 0x498   : > { %v6078_v22 = vpop.eup %6077  ;;  %6097 = vrcp.f32 %v4338_v37  ;;  %v9135_v34 = vadd.f32 %v4148_v47, %v8988_v32  ;;  %v5068_v40 = vadd.f32 %v5067_v17, %v5066_v59  ;;  %v5069_v15 = vpop.f32.mrb[138].mxu1  ;;  %v4012_v52 = vadd.f32 %v5065_v21, %v9023_v29 }
 0x499   : > { %v6080_v3 = vpop.eup %6079  ;;  %v4429_v30 = vsel %vm4194_vm11, %v4205_v20, %v6078_v22  ;;  %6099 = vrcp.f32 %v4336_v4  ;;  %v5070_v18 = vpop.f32.mrb[139].mxu1  ;;  %v4204_v51 = vmax.f32 %v9004_v33, 0.0  ;;  %v4693_v28 = vmul.f32 -1.442695, %v9132_v11 }
 0x49a   : > { %v6082_v62 = vpop.eup %6081  ;;  %4461 = vst [vmem:[%s9039_s13 + $0x50] sm:$0xff] %v4429_v30  ;;  %v4427_v32 = vsel %vm4194_vm11, %v4203_v54, %v6080_v3  ;;  %6101 = vpow2.f32 %v4692_v23  ;;  %v4209_v8 = vmax.f32 %v9028_v57, 0.0  ;;  %v4691_v29 = vmul.f32 -1.442695, %v9135_v34 }
 0x49b   : > { %v6084_v24 = vpop.eup %6083  ;;  %4459 = vst [vmem:[%s9039_s13 + $0x40] sm:$0xff] %v4427_v32  ;;  %v4430_v55 = vsel %vm4194_vm11, %v4206_v46, %v6082_v62  ;;  %6103 = vpow2.f32 %v4690_v35  ;;  %v5204_v25 = vpop.f32.mrb[136].mxu0  ;;  %v5071_v56 = vadd.f32 %v5070_v18, %v5069_v15  ;;  %v4017_v36 = vadd.f32 %v5068_v40, %v9060_v44 }
 0x49c   : > { %v6086_v60 = vpop.eup %6085  ;;  %4462 = vst [vmem:[%s9039_s13 + $0x58] sm:$0xff] %v4430_v55  ;;  %v4428_v33 = vsel %vm4194_vm11, %v4204_v51, %v6084_v24  ;;  %6105 = vpow2.f32 %v4693_v28  ;;  %v9154_v2 = vadd.f32 %v5204_v25, %v4009_v12  ;;  %v4161_v53 = vpop.f32.mrb[137].mxu0  ;;  %v4207_v48 = vmax.f32 %v9034_v0, 0.0 }
 0x49d   : > { %v6088_v13 = vpop.eup %6087  ;;  %4460 = vst [vmem:[%s9039_s13 + $0x48] sm:$0xff] %v4428_v33  ;;  %v4341_v41 = vadd.f32 1.0, %v6086_v60  ;;  %6107 = vpow2.f32 %v4691_v29  ;;  %v9158_v57 = vadd.f32 %v4161_v53, %v9070_v7  ;;  %v5205_v1 = vpop.f32.mrb[138].mxu0  ;;  %v4210_v5 = vmax.f32 %v9046_v27, 0.0 }
 0x49e   : > { %v6090_v6 = vpop.eup %6089  ;;  %v4339_v21 = vadd.f32 1.0, %v6088_v13  ;;  %v9163_v38 = vadd.f32 %v5205_v1, %v4012_v52  ;;  %v5072_v16 = vpop.f32.mrb[140].mxu1  ;;  %v4208_v12 = vmax.f32 %v9051_v63, 0.0  ;;  %v4696_v7 = vmul.f32 -1.442695, %v9154_v2 }
 0x49f   : > { %v4164_v10 = vpop.f32.mrb[139].mxu0  ;;  %v6092_v19 = vpop.eup %6091  ;;  %6109 = vrcp.f32 %v4341_v41  ;;  %v4342_v31 = vadd.f32 1.0, %v6090_v6  ;;  %v4694_v0 = vmul.f32 -1.442695, %v9158_v57  ;;  %v4020_v40 = vadd.f32 %v5071_v56, %v9074_v43 }
 0x4a0   : > { %v5073_v20 = vpop.f32.mrb[141].mxu1  ;;  %v6094_v44 = vpop.eup %6093  ;;  %6111 = vrcp.f32 %v4339_v21  ;;  %v4340_v37 = vadd.f32 1.0, %v6092_v19  ;;  %v4697_v27 = vmul.f32 -1.442695, %v9163_v38  ;;  %v9172_v63 = vadd.f32 %v4164_v10, %v9085_v50 }
 0x4a1   : > { %v5075_v23 = vpop.f32.mrb[142].mxu1  ;;  %v6096_v59 = vpop.eup %6095  ;;  %v4433_v47 = vsel %vm4194_vm11, %v4209_v8, %v6094_v44  ;;  %6113 = vrcp.f32 %v4342_v31  ;;  %v5074_v54 = vadd.f32 %v5073_v20, %v5072_v16  ;;  %v4211_v1 = vmax.f32 %v9082_v45, 0.0 }
 0x4a2   : > { %v5076_v4 = vpop.f32.mrb[143].mxu1  ;;  %v6098_v35 = vpop.eup %6097  ;;  %4465 = vst [vmem:[%s9039_s13 + $0x70] sm:$0xff] %v4433_v47  ;;  %v4431_v17 = vsel %vm4194_vm11, %v4207_v48, %v6096_v59  ;;  %6115 = vrcp.f32 %v4340_v37  ;;  %v4695_v50 = vmul.f32 -1.442695, %v9172_v63  ;;  %v4212_v45 = vmax.f32 %v9097_v42, 0.0 }
 0x4a3   : > { %v5077_v22 = vadd.f32 %v5076_v4, %v5075_v23  ;;  %v6100_v15 = vpop.eup %6099  ;;  %4463 = vst [vmem:[%s9039_s13 + $0x60] sm:$0xff] %v4431_v17  ;;  %v4434_v3 = vsel %vm4194_vm11, %v4210_v5, %v6098_v35  ;;  %6117 = vpow2.f32 %v4696_v7  ;;  %v5208_v30 = vpop.f32.mrb[140].mxu0  ;;  %v4025_v52 = vadd.f32 %v5074_v54, %v9105_v58 }
 0x4a4   : > { %v6102_v46 = vpop.eup %6101  ;;  %4466 = vst [vmem:[%s9039_s13 + $0x78] sm:$0xff] %v4434_v3  ;;  %v4432_v18 = vsel %vm4194_vm11, %v4208_v12, %v6100_v15  ;;  %6119 = vpow2.f32 %v4694_v0  ;;  %v4177_v62 = vpop.f32.mrb[141].mxu0  ;;  %v4213_v58 = vmax.f32 %v9078_v39, 0.0  ;;  %v4214_v5 = vmax.f32 %v9094_v9, 0.0 }
 0x4a5   : > { %v4028_v43 = vadd.f32 %v5077_v22, %v9113_v14  ;;  %v6104_v32 = vpop.eup %6103  ;;  %4464 = vst [vmem:[%s9039_s13 + $0x68] sm:$0xff] %v4432_v18  ;;  %v4345_v51 = vadd.f32 1.0, %v6102_v46  ;;  %6121 = vpow2.f32 %v4697_v27  ;;  %v9188_v28 = vadd.f32 %v4177_v62, %v4017_v36  ;;  %v5209_v24 = vpop.f32.mrb[142].mxu0 }
 0x4a6   : > { %v6106_v55 = vpop.eup %6105  ;;  %v4343_v8 = vadd.f32 1.0, %v6104_v32  ;;  %6123 = vpow2.f32 %v4695_v50  ;;  %v9190_v29 = vadd.f32 %v5208_v30, %v4025_v52  ;;  %v4180_v60 = vpop.f32.mrb[143].mxu0  ;;  %v4217_v0 = vmax.f32 %v9121_v61, 0.0 }
 0x4a7   : > { %v9192_v25 = vadd.f32 %v5209_v24, %v4028_v43  ;;  %v6108_v33 = vpop.eup %6107  ;;  %6125 = vrcp.f32 %v4345_v51  ;;  %v4346_v14 = vadd.f32 1.0, %v6106_v55  ;;  %v4698_v13 = vmul.f32 -1.442695, %v9188_v28 }
 0x4a8   : > { %6127 = vrcp.f32 %v4343_v8  ;;  %v4344_v56 = vadd.f32 1.0, %v6108_v33  ;;  %v4700_v53 = vmul.f32 -1.442695, %v9190_v29  ;;  %v9199_v6 = vadd.f32 %v4180_v60, %v4020_v40 }
 0x4a9   : > { %v6110_v41 = vpop.eup %6109  ;;  %6129 = vrcp.f32 %v4346_v14  ;;  %v4701_v36 = vmul.f32 -1.442695, %v9192_v25  ;;  %v4215_v59 = vmax.f32 %v9124_v49, 0.0  ;;  %v4218_v35 = vmax.f32 %v9132_v11, 0.0 }
 0x4aa   : > { %v6112_v39 = vpop.eup %6111  ;;  %v4437_v48 = vsel %vm4194_vm11, %v4213_v58, %v6110_v41  ;;  %6131 = vrcp.f32 %v4344_v56  ;;  %v4699_v10 = vmul.f32 -1.442695, %v9199_v6  ;;  %v4216_v22 = vmax.f32 %v9135_v34, 0.0 }
 0x4ab   : > { %v6114_v21 = vpop.eup %6113  ;;  %4469 = vst [vmem:[%s9039_s13 + $0x90] sm:$0xff] %v4437_v48  ;;  %v4435_v16 = vsel %vm4194_vm11, %v4211_v1, %v6112_v39  ;;  %6133 = vpow2.f32 %v4700_v53  ;;  %v4221_v52 = vmax.f32 %v9154_v2, 0.0  ;;  %v4219_v32 = vmax.f32 %v9158_v57, 0.0 }
 0x4ac   : > { %v6116_v19 = vpop.eup %6115  ;;  %4467 = vst [vmem:[%s9039_s13 + $0x80] sm:$0xff] %v4435_v16  ;;  %v4438_v12 = vsel %vm4194_vm11, %v4214_v5, %v6114_v21  ;;  %6135 = vpow2.f32 %v4698_v13  ;;  %v4222_v55 = vmax.f32 %v9163_v38, 0.0  ;;  %v4220_v60 = vmax.f32 %v9172_v63, 0.0 }
 0x4ad   : > { %v6118_v31 = vpop.eup %6117  ;;  %4470 = vst [vmem:[%s9039_s13 + $0x98] sm:$0xff] %v4438_v12  ;;  %v4436_v9 = vsel %vm4194_vm11, %v4212_v45, %v6116_v19  ;;  %6137 = vpow2.f32 %v4701_v36  ;;  %v4225_v58 = vmax.f32 %v9190_v29, 0.0  ;;  %v4223_v56 = vmax.f32 %v9188_v28, 0.0 }
 0x4ae   : > { %v6120_v7 = vpop.eup %6119  ;;  %4468 = vst [vmem:[%s9039_s13 + $0x88] sm:$0xff] %v4436_v9  ;;  %v4349_v20 = vadd.f32 1.0, %v6118_v31  ;;  %6139 = vpow2.f32 %v4699_v10  ;;  %v4226_v13 = vmax.f32 %v9192_v25, 0.0  ;;  %v4224_v36 = vmax.f32 %v9199_v6, 0.0 }
 0x4af   : > { %v6122_v42 = vpop.eup %6121  ;;  %v4347_v44 = vadd.f32 1.0, %v6120_v7 }
 0x4b0   : > { %v6124_v37 = vpop.eup %6123  ;;  %6141 = vrcp.f32 %v4349_v20  ;;  %v4350_v27 = vadd.f32 1.0, %v6122_v42 }
 0x4b1   : > { %v6126_v23 = vpop.eup %6125  ;;  %6143 = vrcp.f32 %v4347_v44  ;;  %v4348_v47 = vadd.f32 1.0, %v6124_v37 }
 0x4b2   : > { %v6128_v54 = vpop.eup %6127  ;;  %v4441_v4 = vsel %vm4194_vm11, %v4217_v0, %v6126_v23  ;;  %6145 = vrcp.f32 %v4350_v27 }
 0x4b3   : > { %v6130_v17 = vpop.eup %6129  ;;  %4473 = vst [vmem:[%s9039_s13 + $0xb0] sm:$0xff] %v4441_v4  ;;  %v4439_v61 = vsel %vm4194_vm11, %v4215_v59, %v6128_v54  ;;  %6147 = vrcp.f32 %v4348_v47 }
 0x4b4   : > { %v6132_v49 = vpop.eup %6131  ;;  %4471 = vst [vmem:[%s9039_s13 + $0xa0] sm:$0xff] %v4439_v61  ;;  %v4442_v40 = vsel %vm4194_vm11, %v4218_v35, %v6130_v17 }
 0x4b5   : > { %v6134_v15 = vpop.eup %6133  ;;  %4474 = vst [vmem:[%s9039_s13 + $0xb8] sm:$0xff] %v4442_v40  ;;  %v4440_v3 = vsel %vm4194_vm11, %v4216_v22, %v6132_v49 }
 0x4b6   : > { %v6136_v11 = vpop.eup %6135  ;;  %4472 = vst [vmem:[%s9039_s13 + $0xa8] sm:$0xff] %v4440_v3  ;;  %v4353_v50 = vadd.f32 1.0, %v6134_v15 }
 0x4b7   : > { %v6138_v30 = vpop.eup %6137  ;;  %v4351_v46 = vadd.f32 1.0, %v6136_v11 }
 0x4b8   : > { %v6140_v18 = vpop.eup %6139  ;;  %6149 = vrcp.f32 %v4353_v50  ;;  %v4354_v34 = vadd.f32 1.0, %v6138_v30 }
 0x4b9   : > { %6151 = vrcp.f32 %v4351_v46  ;;  %v4352_v62 = vadd.f32 1.0, %v6140_v18 }
 0x4ba   : > { %v6142_v43 = vpop.eup %6141  ;;  %6153 = vrcp.f32 %v4354_v34 }
 0x4bb   : > { %v6144_v51 = vpop.eup %6143  ;;  %v4445_v24 = vsel %vm4194_vm11, %v4221_v52, %v6142_v43  ;;  %6155 = vrcp.f32 %v4352_v62 }
 0x4bc   : > { %v6146_v8 = vpop.eup %6145  ;;  %4477 = vst [vmem:[%s9039_s13 + $0xd0] sm:$0xff] %v4445_v24  ;;  %v4443_v2 = vsel %vm4194_vm11, %v4219_v32, %v6144_v51 }
 0x4bd   : > { %v6148_v33 = vpop.eup %6147  ;;  %4475 = vst [vmem:[%s9039_s13 + $0xc0] sm:$0xff] %v4443_v2  ;;  %v4446_v57 = vsel %vm4194_vm11, %v4222_v55, %v6146_v8 }
 0x4be   : > { %4478 = vst [vmem:[%s9039_s13 + $0xd8] sm:$0xff] %v4446_v57  ;;  %v4444_v38 = vsel %vm4194_vm11, %v4220_v60, %v6148_v33 }
 0x4bf   : > { %4476 = vst [vmem:[%s9039_s13 + $0xc8] sm:$0xff] %v4444_v38 }
 0x4c2   : > { %v6150_v14 = vpop.eup %6149 }
 0x4c3   : > { %v6152_v53 = vpop.eup %6151  ;;  %v4449_v63 = vsel %vm4194_vm11, %v4225_v58, %v6150_v14 }
 0x4c4   : > { %v6154_v41 = vpop.eup %6153  ;;  %4481 = vst [vmem:[%s9039_s13 + $0xf0] sm:$0xff] %v4449_v63  ;;  %v4447_v1 = vsel %vm4194_vm11, %v4223_v56, %v6152_v53 }
 0x4c5   : > { %v6156_v39 = vpop.eup %6155  ;;  %4479 = vst [vmem:[%s9039_s13 + $0xe0] sm:$0xff] %v4447_v1  ;;  %v4450_v29 = vsel %vm4194_vm11, %v4226_v13, %v6154_v41 }
 0x4c6   : > { %4482 = vst [vmem:[%s9039_s13 + $0xf8] sm:$0xff] %v4450_v29  ;;  %v4448_v28 = vsel %vm4194_vm11, %v4224_v36, %v6156_v39 }
 0x4c7   : > { %4480 = vst [vmem:[%s9039_s13 + $0xe8] sm:$0xff] %v4448_v28 }
 0x4c8 PF: > { %s17_s24 = sadd.s32 1, %s6207_s24  }
 0x4c9   : > { %p14_p4 = scmp.ge.s32.totalorder %s17_s24, 4  }
 0x4cb   :  { %16 = sbr.rel (!%p14_p4) target bundleno = 1 (0x1), region = 82 }

</bundles_post_ra>
